<compile_context>
chip_gen: v7x
topology: tpu7x:2x2x1
jax: 0.10.0
libtpu: 0.0.40
codegen_flags: <defaults>
</compile_context>

<pallas_src>
import functools

import jax
import jax.numpy as jnp
from jax import lax
from jax.experimental import pallas as pl
from jax.experimental.pallas import tpu as pltpu

_VMEM_LIMIT = 32 * 1024 * 1024  # explicit scoped-VMEM ceiling (above v5e's 16 MiB default)


# ----------------------------- small helpers -----------------------------

def _tile_rows(M, cap=256):
    """Largest row tile <= cap that divides M (M must be a multiple of 8).

    Prefers >= 2 grid steps so both v7x TensorCores get work.
    """
    t = min(cap, M)
    t -= t % 8
    while t > 8 and M % t:
        t -= 8
    if t == M and M > 8:                      # force >= 2 parallel grid steps
        t = (M // 2) - ((M // 2) % 8)
        while t > 8 and M % t:
            t -= 8
    return max(t, 8)


def _const_spec(shape):
    nd = len(shape)
    return pl.BlockSpec(shape, lambda b, _nd=nd: (0,) * _nd)


def _bf16(w):
    return w.astype(jnp.bfloat16)


# ----------------------------- in-kernel building blocks -----------------------------

def _layernorm(y, g, b):
    mean = jnp.mean(y, axis=-1, keepdims=True)
    var = jnp.mean(jnp.square(y - mean), axis=-1, keepdims=True)
    return (y - mean) * lax.rsqrt(var + 1e-5) * g + b


def _attn_res_ln(x, kv_in, mneg, wq, bq, wkv, bkv, wo_hde, bo, g, beta,
                 *, n_heads, inv_scale):
    """MHA (x as Q, kv_in as K/V) + residual(x) + LayerNorm, all inside VMEM.

    x, kv_in : (Sq,E), (Sk,E) float32
    mneg     : (Mq,Sk) bool, Mq in {1, Sq}   (mask == 0, computed once)
    wq, wkv  : (E,E), (E,2E) bfloat16
    wo_hde   : (H,D,E) bfloat16 (output projection, head-major rows)
    biases / LN params: float32
    """
    Sq, E = x.shape
    D = E // n_heads

    # fused projections (bf16 MXU operands, f32 accumulation)
    q = jnp.dot(x.astype(jnp.bfloat16), wq,
                preferred_element_type=jnp.float32) + bq
    kv = jnp.dot(kv_in.astype(jnp.bfloat16), wkv,
                 preferred_element_type=jnp.float32) + bkv
    q = q * inv_scale                      # fold 1/sqrt(E) once, not per head
    k = kv[:, :E]
    v = kv[:, E:]

    neg_eps = jnp.float32(-1e-10)          # reference quirk: -epsilon, not -inf
    acc = jnp.zeros((Sq, E), jnp.float32)
    for h in range(n_heads):               # static unroll; live set = 1 head + acc
        sl = slice(h * D, (h + 1) * D)
        energy = lax.dot_general(q[:, sl].astype(jnp.bfloat16),
                                 k[:, sl].astype(jnp.bfloat16),
                                 (((1,), (1,)), ((), ())),
                                 preferred_element_type=jnp.float32)   # (Sq,Sk)
        energy = jnp.where(mneg, neg_eps, energy)
        energy = energy - jnp.max(energy, axis=-1, keepdims=True)
        p = jnp.exp(energy)
        attn = p * pl.reciprocal(jnp.sum(p, axis=-1, keepdims=True), approx=True)
        head = jnp.dot(attn.astype(jnp.bfloat16), v[:, sl].astype(jnp.bfloat16),
                       preferred_element_type=jnp.float32)             # (Sq,D)
        # fold this head straight into the output projection (no concat)
        acc = acc + jnp.dot(head.astype(jnp.bfloat16), wo_hde[h],
                            preferred_element_type=jnp.float32)        # (Sq,E)
    out = acc + bo
    return _layernorm(x + out, g, beta)


def _ffn_ln(x, w1, b1, w2, b2, g, beta, *, add_residual):
    h = jnp.dot(x.astype(jnp.bfloat16), w1,
                preferred_element_type=jnp.float32) + b1
    h = jnp.maximum(h, 0.0)
    f = jnp.dot(h.astype(jnp.bfloat16), w2,
                preferred_element_type=jnp.float32) + b2
    y = x + f if add_residual else f
    return _layernorm(y, g, beta)


# ----------------------------- Pallas kernels -----------------------------

def _encoder_layer_kernel(x_ref, m_ref,
                          wq, bq, wkv, bkv, wo, bo, g1, bt1,
                          w1, b1, w2, b2, g2, bt2,
                          o_ref, *, n_heads, inv_scale):
    x = x_ref[0]                            # (Sx, E)
    mneg = m_ref[0, 0] == 0                 # (1, Sx), hoisted once
    ln1 = _attn_res_ln(x, x, mneg, wq[...], bq[...], wkv[...], bkv[...],
                       wo[...], bo[...], g1[...], bt1[...],
                       n_heads=n_heads, inv_scale=inv_scale)
    o_ref[0] = _ffn_ln(ln1, w1[...], b1[...], w2[...], b2[...],
                       g2[...], bt2[...], add_residual=True)


def _decoder_layer_kernel(y_ref, ctx_ref, ym_ref, xm_ref,
                          swq, sbq, swkv, sbkv, swo, sbo, g1, bt1,
                          ewq, ebq, ewkv, ebkv, ewo, ebo, g2, bt2,
                          w1, b1, w2, b2, g3, bt3,
                          o_ref, *, n_heads, inv_scale):
    yx = y_ref[0]                           # (Sy, E)
    ctx = ctx_ref[0]                        # (Sx, E)
    ymneg = ym_ref[0, 0] == 0               # (Sy, Sy)
    xmneg = xm_ref[0, 0] == 0               # (1, Sx)
    ln1 = _attn_res_ln(yx, yx, ymneg, swq[...], sbq[...], swkv[...], sbkv[...],
                       swo[...], sbo[...], g1[...], bt1[...],
                       n_heads=n_heads, inv_scale=inv_scale)
    ln2 = _attn_res_ln(ln1, ctx, xmneg, ewq[...], ebq[...], ewkv[...], ebkv[...],
                       ewo[...], ebo[...], g2[...], bt2[...],
                       n_heads=n_heads, inv_scale=inv_scale)
    # reference applies the final LayerNorm to the FF output WITHOUT residual
    o_ref[0] = _ffn_ln(ln2, w1[...], b1[...], w2[...], b2[...],
                       g3[...], bt3[...], add_residual=False)


def _linear_kernel(x_ref, w_ref, b_ref, o_ref):
    o_ref[...] = jnp.dot(x_ref[...].astype(jnp.bfloat16), w_ref[...],
                         preferred_element_type=jnp.float32) + b_ref[...]


# ----------------------------- kernel wrappers -----------------------------

def _mha_weight_args(att, E, H):
    D = E // H
    return [
        _bf16(att["wq"]), att["bq"].reshape(1, E),
        _bf16(att["wkv"]), att["bkv"].reshape(1, 2 * E),
        _bf16(att["wo"]).reshape(H, D, E), att["bo"].reshape(1, E),
    ]


def encoder_layer(lp, x, X_mask, *, n_heads, scale):
    B, S, E = x.shape
    P = lp["ff_w1"].shape[1]
    H = n_heads
    w_args = (_mha_weight_args(lp["self_att"], E, H)
              + [lp["ln1_g"].reshape(1, E), lp["ln1_b"].reshape(1, E),
                 _bf16(lp["ff_w1"]), lp["ff_b1"].reshape(1, P),
                 _bf16(lp["ff_w2"]), lp["ff_b2"].reshape(1, E),
                 lp["ln2_g"].reshape(1, E), lp["ln2_b"].reshape(1, E)])
    kernel = functools.partial(_encoder_layer_kernel, n_heads=H,
                               inv_scale=1.0 / scale)
    flops = B * (8 * S * E * E + 4 * S * S * E + 4 * S * E * P)
    trans = B * (H * S * S + 4 * S)
    bytes_acc = (8 * B * S * E + 4 * B * S
                 + 2 * (4 * E * E + 2 * E * P) + 4 * (10 * E + P))
    return pl.pallas_call(
        kernel,
        out_shape=jax.ShapeDtypeStruct((B, S, E), jnp.float32),
        grid=(B,),
        in_specs=[pl.BlockSpec((1, S, E), lambda b: (b, 0, 0)),
                  pl.BlockSpec((1, 1, 1, S), lambda b: (b, 0, 0, 0))]
                 + [_const_spec(a.shape) for a in w_args],
        out_specs=pl.BlockSpec((1, S, E), lambda b: (b, 0, 0)),
        compiler_params=pltpu.CompilerParams(
            dimension_semantics=("parallel",), vmem_limit_bytes=_VMEM_LIMIT),
        cost_estimate=pl.CostEstimate(flops=int(flops), transcendentals=int(trans),
                                      bytes_accessed=int(bytes_acc)),
    )(x, X_mask, *w_args)


def decoder_layer(lp, y, ctx, X_mask, y_mask, *, n_heads, scale):
    B, Sy, E = y.shape
    Sx = ctx.shape[1]
    P = lp["ff_w1"].shape[1]
    H = n_heads
    w_args = (_mha_weight_args(lp["self_att"], E, H)
              + [lp["ln1_g"].reshape(1, E), lp["ln1_b"].reshape(1, E)]
              + _mha_weight_args(lp["enc_att"], E, H)
              + [lp["ln2_g"].reshape(1, E), lp["ln2_b"].reshape(1, E),
                 _bf16(lp["ff_w1"]), lp["ff_b1"].reshape(1, P),
                 _bf16(lp["ff_w2"]), lp["ff_b2"].reshape(1, E),
                 lp["ln3_g"].reshape(1, E), lp["ln3_b"].reshape(1, E)])
    kernel = functools.partial(_decoder_layer_kernel, n_heads=H,
                               inv_scale=1.0 / scale)
    flops = B * (12 * Sy * E * E + 4 * Sx * E * E
                 + 4 * Sy * (Sy + Sx) * E + 4 * Sy * E * P)
    trans = B * (H * Sy * (Sy + Sx) + 8 * Sy)
    bytes_acc = (4 * B * (2 * Sy * E + Sx * E) + 4 * B * (Sy * Sy + Sx)
                 + 2 * (8 * E * E + 2 * E * P) + 4 * (16 * E + P))
    return pl.pallas_call(
        kernel,
        out_shape=jax.ShapeDtypeStruct((B, Sy, E), jnp.float32),
        grid=(B,),
        in_specs=[pl.BlockSpec((1, Sy, E), lambda b: (b, 0, 0)),
                  pl.BlockSpec((1, Sx, E), lambda b: (b, 0, 0)),
                  pl.BlockSpec((1, 1, Sy, Sy), lambda b: (b, 0, 0, 0)),
                  pl.BlockSpec((1, 1, 1, Sx), lambda b: (b, 0, 0, 0))]
                 + [_const_spec(a.shape) for a in w_args],
        out_specs=pl.BlockSpec((1, Sy, E), lambda b: (b, 0, 0)),
        compiler_params=pltpu.CompilerParams(
            dimension_semantics=("parallel",), vmem_limit_bytes=_VMEM_LIMIT),
        cost_estimate=pl.CostEstimate(flops=int(flops), transcendentals=int(trans),
                                      bytes_accessed=int(bytes_acc)),
    )(y, ctx, y_mask, X_mask, *w_args)


def linear(x2d, w, b):
    """x2d @ w + b with a lane-dense (128-multiple) padded output, rows padded to 8."""
    M, K = x2d.shape
    N = w.shape[1]
    Np = ((N + 127) // 128) * 128            # lane-dense output -> unmasked vst
    Mp = ((M + 7) // 8) * 8                  # sublane-aligned row count
    w_pad = jnp.zeros((K, Np), jnp.bfloat16).at[:, :N].set(_bf16(w))
    b_pad = jnp.zeros((1, Np), jnp.float32).at[:, :N].set(b.reshape(1, N))
    x_pad = x2d if Mp == M else jnp.concatenate(
        [x2d, jnp.zeros((Mp - M, K), x2d.dtype)], axis=0)
    tm = _tile_rows(Mp)                      # >= 2 parallel grid steps when possible
    out = pl.pallas_call(
        _linear_kernel,
        out_shape=jax.ShapeDtypeStruct((Mp, Np), jnp.float32),
        grid=(Mp // tm,),
        in_specs=[pl.BlockSpec((tm, K), lambda i: (i, 0)),
                  pl.BlockSpec((K, Np), lambda i: (0, 0)),
                  pl.BlockSpec((1, Np), lambda i: (0, 0))],
        out_specs=pl.BlockSpec((tm, Np), lambda i: (i, 0)),
        compiler_params=pltpu.CompilerParams(
            dimension_semantics=("parallel",), vmem_limit_bytes=_VMEM_LIMIT),
        cost_estimate=pl.CostEstimate(
            flops=int(2 * Mp * K * Np), transcendentals=0,
            bytes_accessed=int(4 * Mp * K + 2 * K * Np + 4 * Mp * Np)),
    )(x_pad, w_pad, b_pad)
    return out[:M, :N]


# ----------------------------- model glue (plain JAX) -----------------------------

def sinusoid_pos_encoding(seq_len, embed_dim):
    pos = jnp.arange(seq_len, dtype=jnp.float32)[:, None]            # (S,1)
    idx_2i = jnp.arange(0, embed_dim, 2, dtype=jnp.float32)          # (E/2,)
    angle = pos / (10000.0 ** (idx_2i / embed_dim))                  # (S,E/2)
    pe = jnp.zeros((seq_len, embed_dim), jnp.float32)
    pe = pe.at[:, 0::2].set(jnp.sin(angle))
    pe = pe.at[:, 1::2].set(jnp.cos(angle))                          # embed_dim even
    return pe


def transformer_forward(params, X, y, *, embed_dim, n_heads):
    E, H = embed_dim, n_heads               # static Python ints (jit-safe)
    B, Sx = X.shape
    Sy = y.shape[1]
    scale = float(E) ** 0.5

    # masks (pad_idx = 0), natural shapes, int32 (no head broadcast in HBM)
    X_mask = (X != 0).astype(jnp.int32)[:, None, None, :]             # (B,1,1,Sx)
    tril = jnp.tril(jnp.ones((Sy, Sy), dtype=jnp.int32))
    y_mask = (y != 0).astype(jnp.int32)[:, None, None, :] * tril[None, None]  # (B,1,Sy,Sy)

    # ---- encoder ----
    X_emb = params["enc_embed"][X] * scale                            # (B,Sx,E)
    pe_x = jnp.broadcast_to(sinusoid_pos_encoding(Sx, E)[None], (B, Sx, E))
    pe_x = jnp.where((X != 0)[:, :, None], pe_x, 0.0)                 # zero PE at pads
    h = X_emb + pe_x                                                  # dropout = identity
    for lp in params["enc_layers"]:
        h = encoder_layer(lp, h, X_mask, n_heads=H, scale=scale)
    enc_out = h

    # ---- decoder ----
    y_emb = params["dec_embed"][y] * scale
    g = y_emb + jnp.broadcast_to(sinusoid_pos_encoding(Sy, E)[None], (B, Sy, E))
    for lp in params["dec_layers"]:
        g = decoder_layer(lp, g, enc_out, X_mask, y_mask, n_heads=H, scale=scale)

    # ---- output projection (lane-dense padded) ----
    logits = linear(g.reshape(B * Sy, E), params["fc_w"], params["fc_b"])
    return logits.reshape(B, Sy, -1)


# ----------------------------- pure-JAX reference (for validation) -----------------------------

def _reference_forward(params, X, y, *, embed_dim, n_heads,
                       matmul_dtype=jnp.float32):
    """Reference forward; matmul operands cast to `matmul_dtype`, f32 accumulation."""
    E, H = embed_dim, n_heads
    D = E // H
    scale = float(E) ** 0.5
    B, Sx = X.shape
    Sy = y.shape[1]

    def mm(a, w):
        return jnp.dot(a.astype(matmul_dtype), w.astype(matmul_dtype),
                       preferred_element_type=jnp.float32)

    def mha(p, q_in, kv_in, mask):
        q = mm(q_in, p["wq"]) + p["bq"]
        kv = mm(kv_in, p["wkv"]) + p["bkv"]
        k, v = kv[..., :E], kv[..., E:]
        split = lambda t: t.reshape(t.shape[0], t.shape[1], H, D).transpose(0, 2, 1, 3)
        qh, kh, vh = split(q), split(k), split(v)
        e = jnp.einsum("bhqd,bhkd->bhqk", qh.astype(matmul_dtype),
                       kh.astype(matmul_dtype),
                       preferred_element_type=jnp.float32) / scale
        e = jnp.where(mask == 0, -1e-10, e)
        a = jax.nn.softmax(e, axis=-1)
        w = jnp.einsum("bhqk,bhkd->bhqd", a.astype(matmul_dtype),
                       vh.astype(matmul_dtype),
                       preferred_element_type=jnp.float32)
        w = w.transpose(0, 2, 1, 3).reshape(q_in.shape[0], -1, E)
        return mm(w, p["wo"]) + p["bo"]

    def ln(x, g, b):
        m = x.mean(-1, keepdims=True)
        v = jnp.square(x - m).mean(-1, keepdims=True)
        return (x - m) * lax.rsqrt(v + 1e-5) * g + b

    def ff(x, lp):
        return mm(jnp.maximum(mm(x, lp["ff_w1"]) + lp["ff_b1"], 0.0),
                  lp["ff_w2"]) + lp["ff_b2"]

    X_mask = (X != 0).astype(jnp.int32)[:, None, None, :]
    tril = jnp.tril(jnp.ones((Sy, Sy), jnp.int32))
    y_mask = (y != 0).astype(jnp.int32)[:, None, None, :] * tril[None, None]

    pe_x = jnp.where((X != 0)[:, :, None],
                     jnp.broadcast_to(sinusoid_pos_encoding(Sx, E)[None], (B, Sx, E)), 0.0)
    h = params["enc_embed"][X] * scale + pe_x
    for lp in params["enc_layers"]:
        h = ln(h + mha(lp["self_att"], h, h, X_mask), lp["ln1_g"], lp["ln1_b"])
        h = ln(h + ff(h, lp), lp["ln2_g"], lp["ln2_b"])
    g = params["dec_embed"][y] * scale + sinusoid_pos_encoding(Sy, E)[None]
    for lp in params["dec_layers"]:
        g = ln(g + mha(lp["self_att"], g, g, y_mask), lp["ln1_g"], lp["ln1_b"])
        g = ln(g + mha(lp["enc_att"], g, h, X_mask), lp["ln2_g"], lp["ln2_b"])
        g = ln(ff(g, lp), lp["ln3_g"], lp["ln3_b"])
    return mm(g, params["fc_w"]) + params["fc_b"]


# ----------------------------- parameter init -----------------------------

def _init_linear(key, fan_in, fan_out):
    k1, k2 = jax.random.split(key)
    bound = 1.0 / (fan_in ** 0.5)
    w = jax.random.uniform(k1, (fan_in, fan_out), jnp.float32, -bound, bound)
    b = jax.random.uniform(k2, (fan_out,), jnp.float32, -bound, bound)
    return w, b


def _init_mha(key, E):
    kq, kk, kv, ko = jax.random.split(key, 4)
    wq, bq = _init_linear(kq, E, E)
    wk, bk = _init_linear(kk, E, E)
    wv, bv = _init_linear(kv, E, E)
    wo, bo = _init_linear(ko, E, E)
    # fuse K|V weights once at init (single (E,2E) matmul at runtime)
    return {"wq": wq, "bq": bq,
            "wkv": jnp.concatenate([wk, wv], axis=1),
            "bkv": jnp.concatenate([bk, bv]),
            "wo": wo, "bo": bo}


def _init_enc_layer(key, E, P):
    ks = jax.random.split(key, 3)
    w1, b1 = _init_linear(ks[1], E, P)
    w2, b2 = _init_linear(ks[2], P, E)
    return {"self_att": _init_mha(ks[0], E),
            "ln1_g": jnp.ones((E,), jnp.float32), "ln1_b": jnp.zeros((E,), jnp.float32),
            "ff_w1": w1, "ff_b1": b1, "ff_w2": w2, "ff_b2": b2,
            "ln2_g": jnp.ones((E,), jnp.float32), "ln2_b": jnp.zeros((E,), jnp.float32)}


def _init_dec_layer(key, E, P):
    ks = jax.random.split(key, 4)
    w1, b1 = _init_linear(ks[2], E, P)
    w2, b2 = _init_linear(ks[3], P, E)
    return {"self_att": _init_mha(ks[0], E),
            "enc_att": _init_mha(ks[1], E),
            "ln1_g": jnp.ones((E,), jnp.float32), "ln1_b": jnp.zeros((E,), jnp.float32),
            "ln2_g": jnp.ones((E,), jnp.float32), "ln2_b": jnp.zeros((E,), jnp.float32),
            "ff_w1": w1, "ff_b1": b1, "ff_w2": w2, "ff_b2": b2,
            "ln3_g": jnp.ones((E,), jnp.float32), "ln3_b": jnp.zeros((E,), jnp.float32)}


def init_params(key, vocab_X, vocab_y, embed_dim, n_layers, n_heads, posff_dim):
    keys = jax.random.split(key, 3 + 2 * n_layers)
    enc_layers = [_init_enc_layer(keys[3 + i], embed_dim, posff_dim)
                  for i in range(n_layers)]
    dec_layers = [_init_dec_layer(keys[3 + n_layers + i], embed_dim, posff_dim)
                  for i in range(n_layers)]
    fc_w, fc_b = _init_linear(keys[2], embed_dim, vocab_y)
    return {
        "enc_embed": jax.random.normal(keys[0], (vocab_X, embed_dim), jnp.float32),
        "dec_embed": jax.random.normal(keys[1], (vocab_y, embed_dim), jnp.float32),
        "enc_layers": enc_layers,
        "dec_layers": dec_layers,
        "fc_w": fc_w,
        "fc_b": fc_b,
    }


# ----------------------------- main -----------------------------

if __name__ == "__main__":
    vocab_X, vocab_y = 11, 13
    embed_dim, n_heads, posff_dim, n_layers = 32, 4, 64, 1
    B, Sx, Sy = 2, 8, 8

    root = jax.random.PRNGKey(0)
    k_params, k_x, k_y = jax.random.split(root, 3)

    params = init_params(k_params, vocab_X, vocab_y,
                         embed_dim, n_layers, n_heads, posff_dim)

    X = jax.random.randint(k_x, (B, Sx), 1, vocab_X, dtype=jnp.int32)
    y = jax.random.randint(k_y, (B, Sy), 1, vocab_y, dtype=jnp.int32)
    # introduce pad tokens (pad_idx = 0) so the masks are exercised
    X = X.at[:, -2:].set(0)
    y = y.at[1, -1].set(0)

    fwd = jax.jit(functools.partial(transformer_forward,
                                    embed_dim=embed_dim, n_heads=n_heads))
    logits = jax.block_until_ready(fwd(params, X, y))

    assert logits.shape == (B, Sy, vocab_y), logits.shape
    assert bool(jnp.all(jnp.isfinite(logits)))

    # tight check vs a bf16-matmul / f32-accumulation reference (same numerics)
    ref_bf16 = _reference_forward(params, X, y, embed_dim=embed_dim,
                                  n_heads=n_heads, matmul_dtype=jnp.bfloat16)
    err_bf16 = float(jnp.max(jnp.abs(logits - ref_bf16)))
    assert bool(jnp.allclose(logits, ref_bf16, rtol=2e-2, atol=2e-2)), err_bf16

    # loose sanity check vs full-f32 math (guards gross semantic errors)
    ref_f32 = _reference_forward(params, X, y, embed_dim=embed_dim,
                                 n_heads=n_heads, matmul_dtype=jnp.float32)
    err_f32 = float(jnp.max(jnp.abs(logits - ref_f32)))
    assert err_f32 < 0.25, err_f32

    print("KERNEL_OK")
</pallas_src>

<mosaic_0001>
module attributes {stable_mosaic.version = 11 : i64} {
  func.func @_decoder_layer_kernel(%arg0: i32, %arg1: memref<1x8x32xf32, #tpu.memory_space<vmem>>, %arg2: memref<1x8x32xf32, #tpu.memory_space<vmem>>, %arg3: memref<1x1x8x8xi32, #tpu.memory_space<vmem>>, %arg4: memref<1x1x1x8xi32, #tpu.memory_space<vmem>>, %arg5: memref<32x32xbf16, #tpu.memory_space<vmem>>, %arg6: memref<1x32xf32, #tpu.memory_space<vmem>>, %arg7: memref<32x64xbf16, #tpu.memory_space<vmem>>, %arg8: memref<1x64xf32, #tpu.memory_space<vmem>>, %arg9: memref<4x8x32xbf16, #tpu.memory_space<vmem>>, %arg10: memref<1x32xf32, #tpu.memory_space<vmem>>, %arg11: memref<1x32xf32, #tpu.memory_space<vmem>>, %arg12: memref<1x32xf32, #tpu.memory_space<vmem>>, %arg13: memref<32x32xbf16, #tpu.memory_space<vmem>>, %arg14: memref<1x32xf32, #tpu.memory_space<vmem>>, %arg15: memref<32x64xbf16, #tpu.memory_space<vmem>>, %arg16: memref<1x64xf32, #tpu.memory_space<vmem>>, %arg17: memref<4x8x32xbf16, #tpu.memory_space<vmem>>, %arg18: memref<1x32xf32, #tpu.memory_space<vmem>>, %arg19: memref<1x32xf32, #tpu.memory_space<vmem>>, %arg20: memref<1x32xf32, #tpu.memory_space<vmem>>, %arg21: memref<32x64xbf16, #tpu.memory_space<vmem>>, %arg22: memref<1x64xf32, #tpu.memory_space<vmem>>, %arg23: memref<64x32xbf16, #tpu.memory_space<vmem>>, %arg24: memref<1x32xf32, #tpu.memory_space<vmem>>, %arg25: memref<1x32xf32, #tpu.memory_space<vmem>>, %arg26: memref<1x32xf32, #tpu.memory_space<vmem>>, %arg27: memref<1x8x32xf32, #tpu.memory_space<vmem>>) attributes {dimension_semantics = [#tpu.dimension_semantics<parallel>], iteration_bounds = array<i64: 2>, scalar_prefetch = 0 : i64, scratch_operands = 0 : i64, tpu.core_type = #tpu.core_type<tc>, window_params = [{transform_indices = @transform_0, window_bounds = array<i64: 1, 8, 32>}, {transform_indices = @transform_1, window_bounds = array<i64: 1, 8, 32>}, {transform_indices = @transform_2, window_bounds = array<i64: 1, 1, 8, 8>}, {transform_indices = @transform_3, window_bounds = array<i64: 1, 1, 1, 8>}, {pipeline_mode = #tpu.pipeline_mode<synchronous>, transform_indices = @transform_4, window_bounds = array<i64: 32, 32>}, {pipeline_mode = #tpu.pipeline_mode<synchronous>, transform_indices = @transform_5, window_bounds = array<i64: 1, 32>}, {pipeline_mode = #tpu.pipeline_mode<synchronous>, transform_indices = @transform_6, window_bounds = array<i64: 32, 64>}, {pipeline_mode = #tpu.pipeline_mode<synchronous>, transform_indices = @transform_7, window_bounds = array<i64: 1, 64>}, {pipeline_mode = #tpu.pipeline_mode<synchronous>, transform_indices = @transform_8, window_bounds = array<i64: 4, 8, 32>}, {pipeline_mode = #tpu.pipeline_mode<synchronous>, transform_indices = @transform_9, window_bounds = array<i64: 1, 32>}, {pipeline_mode = #tpu.pipeline_mode<synchronous>, transform_indices = @transform_10, window_bounds = array<i64: 1, 32>}, {pipeline_mode = #tpu.pipeline_mode<synchronous>, transform_indices = @transform_11, window_bounds = array<i64: 1, 32>}, {pipeline_mode = #tpu.pipeline_mode<synchronous>, transform_indices = @transform_12, window_bounds = array<i64: 32, 32>}, {pipeline_mode = #tpu.pipeline_mode<synchronous>, transform_indices = @transform_13, window_bounds = array<i64: 1, 32>}, {pipeline_mode = #tpu.pipeline_mode<synchronous>, transform_indices = @transform_14, window_bounds = array<i64: 32, 64>}, {pipeline_mode = #tpu.pipeline_mode<synchronous>, transform_indices = @transform_15, window_bounds = array<i64: 1, 64>}, {pipeline_mode = #tpu.pipeline_mode<synchronous>, transform_indices = @transform_16, window_bounds = array<i64: 4, 8, 32>}, {pipeline_mode = #tpu.pipeline_mode<synchronous>, transform_indices = @transform_17, window_bounds = array<i64: 1, 32>}, {pipeline_mode = #tpu.pipeline_mode<synchronous>, transform_indices = @transform_18, window_bounds = array<i64: 1, 32>}, {pipeline_mode = #tpu.pipeline_mode<synchronous>, transform_indices = @transform_19, window_bounds = array<i64: 1, 32>}, {pipeline_mode = #tpu.pipeline_mode<synchronous>, transform_indices = @transform_20, window_bounds = array<i64: 32, 64>}, {pipeline_mode = #tpu.pipeline_mode<synchronous>, transform_indices = @transform_21, window_bounds = array<i64: 1, 64>}, {pipeline_mode = #tpu.pipeline_mode<synchronous>, transform_indices = @transform_22, window_bounds = array<i64: 64, 32>}, {pipeline_mode = #tpu.pipeline_mode<synchronous>, transform_indices = @transform_23, window_bounds = array<i64: 1, 32>}, {pipeline_mode = #tpu.pipeline_mode<synchronous>, transform_indices = @transform_24, window_bounds = array<i64: 1, 32>}, {pipeline_mode = #tpu.pipeline_mode<synchronous>, transform_indices = @transform_25, window_bounds = array<i64: 1, 32>}, {transform_indices = @transform_26, window_bounds = array<i64: 1, 8, 32>}]} {
    %c0 = arith.constant 0 : index
    %c0_0 = arith.constant 0 : index
    %c0_1 = arith.constant 0 : index
    %0 = vector.load %arg1[%c0, %c0_0, %c0_1] : memref<1x8x32xf32, #tpu.memory_space<vmem>>, vector<1x8x32xf32>
    %1 = vector.shape_cast %0 : vector<1x8x32xf32> to vector<8x32xf32>
    %c0_2 = arith.constant 0 : index
    %c0_3 = arith.constant 0 : index
    %c0_4 = arith.constant 0 : index
    %2 = vector.load %arg2[%c0_2, %c0_3, %c0_4] : memref<1x8x32xf32, #tpu.memory_space<vmem>>, vector<1x8x32xf32>
    %3 = vector.shape_cast %2 : vector<1x8x32xf32> to vector<8x32xf32>
    %c0_5 = arith.constant 0 : index
    %c0_6 = arith.constant 0 : index
    %c0_7 = arith.constant 0 : index
    %c0_8 = arith.constant 0 : index
    %4 = vector.load %arg3[%c0_5, %c0_6, %c0_7, %c0_8] : memref<1x1x8x8xi32, #tpu.memory_space<vmem>>, vector<1x1x8x8xi32>
    %5 = vector.shape_cast %4 : vector<1x1x8x8xi32> to vector<8x8xi32>
    %c0_i32 = arith.constant 0 : i32
    %6 = vector.broadcast %c0_i32 : i32 to vector<8x8xi32>
    %7 = arith.cmpi eq, %5, %6 : vector<8x8xi32>
    %c0_9 = arith.constant 0 : index
    %c0_10 = arith.constant 0 : index
    %c0_11 = arith.constant 0 : index
    %c0_12 = arith.constant 0 : index
    %8 = vector.load %arg4[%c0_9, %c0_10, %c0_11, %c0_12] : memref<1x1x1x8xi32, #tpu.memory_space<vmem>>, vector<1x1x1x8xi32>
    %9 = vector.shape_cast %8 : vector<1x1x1x8xi32> to vector<1x8xi32>
    %c0_i32_13 = arith.constant 0 : i32
    %10 = vector.broadcast %c0_i32_13 : i32 to vector<1x8xi32>
    %11 = arith.cmpi eq, %9, %10 : vector<1x8xi32>
    %c0_14 = arith.constant 0 : index
    %c0_15 = arith.constant 0 : index
    %12 = vector.load %arg5[%c0_14, %c0_15] : memref<32x32xbf16, #tpu.memory_space<vmem>>, vector<32x32xbf16>
    %c0_16 = arith.constant 0 : index
    %c0_17 = arith.constant 0 : index
    %13 = vector.load %arg6[%c0_16, %c0_17] : memref<1x32xf32, #tpu.memory_space<vmem>>, vector<1x32xf32>
    %c0_18 = arith.constant 0 : index
    %c0_19 = arith.constant 0 : index
    %14 = vector.load %arg7[%c0_18, %c0_19] : memref<32x64xbf16, #tpu.memory_space<vmem>>, vector<32x64xbf16>
    %c0_20 = arith.constant 0 : index
    %c0_21 = arith.constant 0 : index
    %15 = vector.load %arg8[%c0_20, %c0_21] : memref<1x64xf32, #tpu.memory_space<vmem>>, vector<1x64xf32>
    %c0_22 = arith.constant 0 : index
    %c0_23 = arith.constant 0 : index
    %c0_24 = arith.constant 0 : index
    %16 = vector.load %arg9[%c0_22, %c0_23, %c0_24] : memref<4x8x32xbf16, #tpu.memory_space<vmem>>, vector<4x8x32xbf16>
    %c0_25 = arith.constant 0 : index
    %c0_26 = arith.constant 0 : index
    %17 = vector.load %arg10[%c0_25, %c0_26] : memref<1x32xf32, #tpu.memory_space<vmem>>, vector<1x32xf32>
    %c0_27 = arith.constant 0 : index
    %c0_28 = arith.constant 0 : index
    %18 = vector.load %arg11[%c0_27, %c0_28] : memref<1x32xf32, #tpu.memory_space<vmem>>, vector<1x32xf32>
    %c0_29 = arith.constant 0 : index
    %c0_30 = arith.constant 0 : index
    %19 = vector.load %arg12[%c0_29, %c0_30] : memref<1x32xf32, #tpu.memory_space<vmem>>, vector<1x32xf32>
    %20 = arith.truncf %1 : vector<8x32xf32> to vector<8x32xbf16>
    %cst = arith.constant dense<0.000000e+00> : vector<8x32xf32>
    %21 = tpu.matmul %20, %12, %cst {dimension_numbers = #tpu.dot_dimension_numbers<[1], [0], [0], [1], [0, 0, 1, 1], [], []>} : vector<8x32xbf16>, vector<32x32xbf16>, vector<8x32xf32> -> vector<8x32xf32>
    %22 = vector.broadcast %13 : vector<1x32xf32> to vector<8x32xf32>
    %23 = arith.addf %21, %22 : vector<8x32xf32>
    %24 = arith.truncf %1 : vector<8x32xf32> to vector<8x32xbf16>
    %cst_31 = arith.constant dense<0.000000e+00> : vector<8x64xf32>
    %25 = tpu.matmul %24, %14, %cst_31 {dimension_numbers = #tpu.dot_dimension_numbers<[1], [0], [0], [1], [0, 0, 1, 1], [], []>} : vector<8x32xbf16>, vector<32x64xbf16>, vector<8x64xf32> -> vector<8x64xf32>
    %26 = vector.broadcast %15 : vector<1x64xf32> to vector<8x64xf32>
    %27 = arith.addf %25, %26 : vector<8x64xf32>
    %cst_32 = arith.constant 0.176776692 : f32
    %28 = vector.broadcast %cst_32 : f32 to vector<8x32xf32>
    %29 = arith.mulf %23, %28 : vector<8x32xf32>
    %30 = vector.extract_strided_slice %27 {offsets = [0, 0], sizes = [8, 32], strides = [1, 1]} : vector<8x64xf32> to vector<8x32xf32>
    %31 = vector.extract_strided_slice %27 {offsets = [0, 32], sizes = [8, 32], strides = [1, 1]} : vector<8x64xf32> to vector<8x32xf32>
    %cst_33 = arith.constant 0.000000e+00 : f32
    %32 = vector.broadcast %cst_33 : f32 to vector<8x32xf32>
    %33 = vector.extract_strided_slice %29 {offsets = [0, 0], sizes = [8, 8], strides = [1, 1]} : vector<8x32xf32> to vector<8x8xf32>
    %34 = arith.truncf %33 : vector<8x8xf32> to vector<8x8xbf16>
    %35 = vector.extract_strided_slice %30 {offsets = [0, 0], sizes = [8, 8], strides = [1, 1]} : vector<8x32xf32> to vector<8x8xf32>
    %36 = arith.truncf %35 : vector<8x8xf32> to vector<8x8xbf16>
    %cst_34 = arith.constant dense<0.000000e+00> : vector<8x8xf32>
    %37 = tpu.matmul %34, %36, %cst_34 {dimension_numbers = #tpu.dot_dimension_numbers<[1], [1], [0], [0], [0, 0, 1, 0], [], []>} : vector<8x8xbf16>, vector<8x8xbf16>, vector<8x8xf32> -> vector<8x8xf32>
    %cst_35 = arith.constant -1.000000e-10 : f32
    %38 = vector.broadcast %cst_35 : f32 to vector<8x8xf32>
    %39 = arith.select %7, %38, %37 : vector<8x8xi1>, vector<8x8xf32>
    %cst_36 = arith.constant dense<0xFF800000> : vector<8xf32>
    %40 = vector.multi_reduction <maximumf>, %39, %cst_36 [1] : vector<8x8xf32> to vector<8xf32>
    %41 = vector.shape_cast %40 : vector<8xf32> to vector<8x1xf32>
    %42 = vector.broadcast %41 : vector<8x1xf32> to vector<8x8xf32>
    %43 = arith.subf %39, %42 : vector<8x8xf32>
    %44 = math.exp %43 : vector<8x8xf32>
    %cst_37 = arith.constant dense<0.000000e+00> : vector<8xf32>
    %45 = vector.multi_reduction <add>, %44, %cst_37 [1] : vector<8x8xf32> to vector<8xf32>
    %46 = vector.shape_cast %45 : vector<8xf32> to vector<8x1xf32>
    %47 = tpu.reciprocal %46 {approx = true} : vector<8x1xf32> -> vector<8x1xf32>
    %48 = vector.broadcast %47 : vector<8x1xf32> to vector<8x8xf32>
    %49 = arith.mulf %44, %48 : vector<8x8xf32>
    %50 = arith.truncf %49 : vector<8x8xf32> to vector<8x8xbf16>
    %51 = vector.extract_strided_slice %31 {offsets = [0, 0], sizes = [8, 8], strides = [1, 1]} : vector<8x32xf32> to vector<8x8xf32>
    %52 = arith.truncf %51 : vector<8x8xf32> to vector<8x8xbf16>
    %cst_38 = arith.constant dense<0.000000e+00> : vector<8x8xf32>
    %53 = tpu.matmul %50, %52, %cst_38 {dimension_numbers = #tpu.dot_dimension_numbers<[1], [0], [0], [1], [0, 0, 1, 1], [], []>} : vector<8x8xbf16>, vector<8x8xbf16>, vector<8x8xf32> -> vector<8x8xf32>
    %54 = arith.truncf %53 : vector<8x8xf32> to vector<8x8xbf16>
    %55 = vector.extract_strided_slice %16 {offsets = [0, 0, 0], sizes = [1, 8, 32], strides = [1, 1, 1]} : vector<4x8x32xbf16> to vector<1x8x32xbf16>
    %56 = vector.shape_cast %55 : vector<1x8x32xbf16> to vector<8x32xbf16>
    %cst_39 = arith.constant dense<0.000000e+00> : vector<8x32xf32>
    %57 = tpu.matmul %54, %56, %cst_39 {dimension_numbers = #tpu.dot_dimension_numbers<[1], [0], [0], [1], [0, 0, 1, 1], [], []>} : vector<8x8xbf16>, vector<8x32xbf16>, vector<8x32xf32> -> vector<8x32xf32>
    %58 = arith.addf %32, %57 : vector<8x32xf32>
    %59 = vector.extract_strided_slice %29 {offsets = [0, 8], sizes = [8, 8], strides = [1, 1]} : vector<8x32xf32> to vector<8x8xf32>
    %60 = arith.truncf %59 : vector<8x8xf32> to vector<8x8xbf16>
    %61 = vector.extract_strided_slice %30 {offsets = [0, 8], sizes = [8, 8], strides = [1, 1]} : vector<8x32xf32> to vector<8x8xf32>
    %62 = arith.truncf %61 : vector<8x8xf32> to vector<8x8xbf16>
    %cst_40 = arith.constant dense<0.000000e+00> : vector<8x8xf32>
    %63 = tpu.matmul %60, %62, %cst_40 {dimension_numbers = #tpu.dot_dimension_numbers<[1], [1], [0], [0], [0, 0, 1, 0], [], []>} : vector<8x8xbf16>, vector<8x8xbf16>, vector<8x8xf32> -> vector<8x8xf32>
    %cst_41 = arith.constant -1.000000e-10 : f32
    %64 = vector.broadcast %cst_41 : f32 to vector<8x8xf32>
    %65 = arith.select %7, %64, %63 : vector<8x8xi1>, vector<8x8xf32>
    %cst_42 = arith.constant dense<0xFF800000> : vector<8xf32>
    %66 = vector.multi_reduction <maximumf>, %65, %cst_42 [1] : vector<8x8xf32> to vector<8xf32>
    %67 = vector.shape_cast %66 : vector<8xf32> to vector<8x1xf32>
    %68 = vector.broadcast %67 : vector<8x1xf32> to vector<8x8xf32>
    %69 = arith.subf %65, %68 : vector<8x8xf32>
    %70 = math.exp %69 : vector<8x8xf32>
    %cst_43 = arith.constant dense<0.000000e+00> : vector<8xf32>
    %71 = vector.multi_reduction <add>, %70, %cst_43 [1] : vector<8x8xf32> to vector<8xf32>
    %72 = vector.shape_cast %71 : vector<8xf32> to vector<8x1xf32>
    %73 = tpu.reciprocal %72 {approx = true} : vector<8x1xf32> -> vector<8x1xf32>
    %74 = vector.broadcast %73 : vector<8x1xf32> to vector<8x8xf32>
    %75 = arith.mulf %70, %74 : vector<8x8xf32>
    %76 = arith.truncf %75 : vector<8x8xf32> to vector<8x8xbf16>
    %77 = vector.extract_strided_slice %31 {offsets = [0, 8], sizes = [8, 8], strides = [1, 1]} : vector<8x32xf32> to vector<8x8xf32>
    %78 = arith.truncf %77 : vector<8x8xf32> to vector<8x8xbf16>
    %cst_44 = arith.constant dense<0.000000e+00> : vector<8x8xf32>
    %79 = tpu.matmul %76, %78, %cst_44 {dimension_numbers = #tpu.dot_dimension_numbers<[1], [0], [0], [1], [0, 0, 1, 1], [], []>} : vector<8x8xbf16>, vector<8x8xbf16>, vector<8x8xf32> -> vector<8x8xf32>
    %80 = arith.truncf %79 : vector<8x8xf32> to vector<8x8xbf16>
    %81 = vector.extract_strided_slice %16 {offsets = [1, 0, 0], sizes = [1, 8, 32], strides = [1, 1, 1]} : vector<4x8x32xbf16> to vector<1x8x32xbf16>
    %82 = vector.shape_cast %81 : vector<1x8x32xbf16> to vector<8x32xbf16>
    %cst_45 = arith.constant dense<0.000000e+00> : vector<8x32xf32>
    %83 = tpu.matmul %80, %82, %cst_45 {dimension_numbers = #tpu.dot_dimension_numbers<[1], [0], [0], [1], [0, 0, 1, 1], [], []>} : vector<8x8xbf16>, vector<8x32xbf16>, vector<8x32xf32> -> vector<8x32xf32>
    %84 = arith.addf %58, %83 : vector<8x32xf32>
    %85 = vector.extract_strided_slice %29 {offsets = [0, 16], sizes = [8, 8], strides = [1, 1]} : vector<8x32xf32> to vector<8x8xf32>
    %86 = arith.truncf %85 : vector<8x8xf32> to vector<8x8xbf16>
    %87 = vector.extract_strided_slice %30 {offsets = [0, 16], sizes = [8, 8], strides = [1, 1]} : vector<8x32xf32> to vector<8x8xf32>
    %88 = arith.truncf %87 : vector<8x8xf32> to vector<8x8xbf16>
    %cst_46 = arith.constant dense<0.000000e+00> : vector<8x8xf32>
    %89 = tpu.matmul %86, %88, %cst_46 {dimension_numbers = #tpu.dot_dimension_numbers<[1], [1], [0], [0], [0, 0, 1, 0], [], []>} : vector<8x8xbf16>, vector<8x8xbf16>, vector<8x8xf32> -> vector<8x8xf32>
    %cst_47 = arith.constant -1.000000e-10 : f32
    %90 = vector.broadcast %cst_47 : f32 to vector<8x8xf32>
    %91 = arith.select %7, %90, %89 : vector<8x8xi1>, vector<8x8xf32>
    %cst_48 = arith.constant dense<0xFF800000> : vector<8xf32>
    %92 = vector.multi_reduction <maximumf>, %91, %cst_48 [1] : vector<8x8xf32> to vector<8xf32>
    %93 = vector.shape_cast %92 : vector<8xf32> to vector<8x1xf32>
    %94 = vector.broadcast %93 : vector<8x1xf32> to vector<8x8xf32>
    %95 = arith.subf %91, %94 : vector<8x8xf32>
    %96 = math.exp %95 : vector<8x8xf32>
    %cst_49 = arith.constant dense<0.000000e+00> : vector<8xf32>
    %97 = vector.multi_reduction <add>, %96, %cst_49 [1] : vector<8x8xf32> to vector<8xf32>
    %98 = vector.shape_cast %97 : vector<8xf32> to vector<8x1xf32>
    %99 = tpu.reciprocal %98 {approx = true} : vector<8x1xf32> -> vector<8x1xf32>
    %100 = vector.broadcast %99 : vector<8x1xf32> to vector<8x8xf32>
    %101 = arith.mulf %96, %100 : vector<8x8xf32>
    %102 = arith.truncf %101 : vector<8x8xf32> to vector<8x8xbf16>
    %103 = vector.extract_strided_slice %31 {offsets = [0, 16], sizes = [8, 8], strides = [1, 1]} : vector<8x32xf32> to vector<8x8xf32>
    %104 = arith.truncf %103 : vector<8x8xf32> to vector<8x8xbf16>
    %cst_50 = arith.constant dense<0.000000e+00> : vector<8x8xf32>
    %105 = tpu.matmul %102, %104, %cst_50 {dimension_numbers = #tpu.dot_dimension_numbers<[1], [0], [0], [1], [0, 0, 1, 1], [], []>} : vector<8x8xbf16>, vector<8x8xbf16>, vector<8x8xf32> -> vector<8x8xf32>
    %106 = arith.truncf %105 : vector<8x8xf32> to vector<8x8xbf16>
    %107 = vector.extract_strided_slice %16 {offsets = [2, 0, 0], sizes = [1, 8, 32], strides = [1, 1, 1]} : vector<4x8x32xbf16> to vector<1x8x32xbf16>
    %108 = vector.shape_cast %107 : vector<1x8x32xbf16> to vector<8x32xbf16>
    %cst_51 = arith.constant dense<0.000000e+00> : vector<8x32xf32>
    %109 = tpu.matmul %106, %108, %cst_51 {dimension_numbers = #tpu.dot_dimension_numbers<[1], [0], [0], [1], [0, 0, 1, 1], [], []>} : vector<8x8xbf16>, vector<8x32xbf16>, vector<8x32xf32> -> vector<8x32xf32>
    %110 = arith.addf %84, %109 : vector<8x32xf32>
    %111 = vector.extract_strided_slice %29 {offsets = [0, 24], sizes = [8, 8], strides = [1, 1]} : vector<8x32xf32> to vector<8x8xf32>
    %112 = arith.truncf %111 : vector<8x8xf32> to vector<8x8xbf16>
    %113 = vector.extract_strided_slice %30 {offsets = [0, 24], sizes = [8, 8], strides = [1, 1]} : vector<8x32xf32> to vector<8x8xf32>
    %114 = arith.truncf %113 : vector<8x8xf32> to vector<8x8xbf16>
    %cst_52 = arith.constant dense<0.000000e+00> : vector<8x8xf32>
    %115 = tpu.matmul %112, %114, %cst_52 {dimension_numbers = #tpu.dot_dimension_numbers<[1], [1], [0], [0], [0, 0, 1, 0], [], []>} : vector<8x8xbf16>, vector<8x8xbf16>, vector<8x8xf32> -> vector<8x8xf32>
    %cst_53 = arith.constant -1.000000e-10 : f32
    %116 = vector.broadcast %cst_53 : f32 to vector<8x8xf32>
    %117 = arith.select %7, %116, %115 : vector<8x8xi1>, vector<8x8xf32>
    %cst_54 = arith.constant dense<0xFF800000> : vector<8xf32>
    %118 = vector.multi_reduction <maximumf>, %117, %cst_54 [1] : vector<8x8xf32> to vector<8xf32>
    %119 = vector.shape_cast %118 : vector<8xf32> to vector<8x1xf32>
    %120 = vector.broadcast %119 : vector<8x1xf32> to vector<8x8xf32>
    %121 = arith.subf %117, %120 : vector<8x8xf32>
    %122 = math.exp %121 : vector<8x8xf32>
    %cst_55 = arith.constant dense<0.000000e+00> : vector<8xf32>
    %123 = vector.multi_reduction <add>, %122, %cst_55 [1] : vector<8x8xf32> to vector<8xf32>
    %124 = vector.shape_cast %123 : vector<8xf32> to vector<8x1xf32>
    %125 = tpu.reciprocal %124 {approx = true} : vector<8x1xf32> -> vector<8x1xf32>
    %126 = vector.broadcast %125 : vector<8x1xf32> to vector<8x8xf32>
    %127 = arith.mulf %122, %126 : vector<8x8xf32>
    %128 = arith.truncf %127 : vector<8x8xf32> to vector<8x8xbf16>
    %129 = vector.extract_strided_slice %31 {offsets = [0, 24], sizes = [8, 8], strides = [1, 1]} : vector<8x32xf32> to vector<8x8xf32>
    %130 = arith.truncf %129 : vector<8x8xf32> to vector<8x8xbf16>
    %cst_56 = arith.constant dense<0.000000e+00> : vector<8x8xf32>
    %131 = tpu.matmul %128, %130, %cst_56 {dimension_numbers = #tpu.dot_dimension_numbers<[1], [0], [0], [1], [0, 0, 1, 1], [], []>} : vector<8x8xbf16>, vector<8x8xbf16>, vector<8x8xf32> -> vector<8x8xf32>
    %132 = arith.truncf %131 : vector<8x8xf32> to vector<8x8xbf16>
    %133 = vector.extract_strided_slice %16 {offsets = [3, 0, 0], sizes = [1, 8, 32], strides = [1, 1, 1]} : vector<4x8x32xbf16> to vector<1x8x32xbf16>
    %134 = vector.shape_cast %133 : vector<1x8x32xbf16> to vector<8x32xbf16>
    %cst_57 = arith.constant dense<0.000000e+00> : vector<8x32xf32>
    %135 = tpu.matmul %132, %134, %cst_57 {dimension_numbers = #tpu.dot_dimension_numbers<[1], [0], [0], [1], [0, 0, 1, 1], [], []>} : vector<8x8xbf16>, vector<8x32xbf16>, vector<8x32xf32> -> vector<8x32xf32>
    %136 = arith.addf %110, %135 : vector<8x32xf32>
    %137 = vector.broadcast %17 : vector<1x32xf32> to vector<8x32xf32>
    %138 = arith.addf %136, %137 : vector<8x32xf32>
    %139 = arith.addf %1, %138 : vector<8x32xf32>
    %cst_58 = arith.constant dense<0.000000e+00> : vector<8xf32>
    %140 = vector.multi_reduction <add>, %139, %cst_58 [1] : vector<8x32xf32> to vector<8xf32>
    %141 = vector.shape_cast %140 : vector<8xf32> to vector<8x1xf32>
    %cst_59 = arith.constant 3.200000e+01 : f32
    %142 = vector.broadcast %cst_59 : f32 to vector<8x1xf32>
    %143 = arith.divf %141, %142 : vector<8x1xf32>
    %144 = vector.broadcast %143 : vector<8x1xf32> to vector<8x32xf32>
    %145 = arith.subf %139, %144 : vector<8x32xf32>
    %146 = arith.mulf %145, %145 : vector<8x32xf32>
    %cst_60 = arith.constant dense<0.000000e+00> : vector<8xf32>
    %147 = vector.multi_reduction <add>, %146, %cst_60 [1] : vector<8x32xf32> to vector<8xf32>
    %148 = vector.shape_cast %147 : vector<8xf32> to vector<8x1xf32>
    %cst_61 = arith.constant 3.200000e+01 : f32
    %149 = vector.broadcast %cst_61 : f32 to vector<8x1xf32>
    %150 = arith.divf %148, %149 : vector<8x1xf32>
    %151 = vector.broadcast %143 : vector<8x1xf32> to vector<8x32xf32>
    %152 = arith.subf %139, %151 : vector<8x32xf32>
    %cst_62 = arith.constant 9.99999974E-6 : f32
    %153 = vector.broadcast %cst_62 : f32 to vector<8x1xf32>
    %154 = arith.addf %150, %153 : vector<8x1xf32>
    %155 = math.rsqrt %154 : vector<8x1xf32>
    %156 = vector.broadcast %155 : vector<8x1xf32> to vector<8x32xf32>
    %157 = arith.mulf %152, %156 : vector<8x32xf32>
    %158 = vector.broadcast %18 : vector<1x32xf32> to vector<8x32xf32>
    %159 = arith.mulf %157, %158 : vector<8x32xf32>
    %160 = vector.broadcast %19 : vector<1x32xf32> to vector<8x32xf32>
    %161 = arith.addf %159, %160 : vector<8x32xf32>
    %c0_63 = arith.constant 0 : index
    %c0_64 = arith.constant 0 : index
    %162 = vector.load %arg13[%c0_63, %c0_64] : memref<32x32xbf16, #tpu.memory_space<vmem>>, vector<32x32xbf16>
    %c0_65 = arith.constant 0 : index
    %c0_66 = arith.constant 0 : index
    %163 = vector.load %arg14[%c0_65, %c0_66] : memref<1x32xf32, #tpu.memory_space<vmem>>, vector<1x32xf32>
    %c0_67 = arith.constant 0 : index
    %c0_68 = arith.constant 0 : index
    %164 = vector.load %arg15[%c0_67, %c0_68] : memref<32x64xbf16, #tpu.memory_space<vmem>>, vector<32x64xbf16>
    %c0_69 = arith.constant 0 : index
    %c0_70 = arith.constant 0 : index
    %165 = vector.load %arg16[%c0_69, %c0_70] : memref<1x64xf32, #tpu.memory_space<vmem>>, vector<1x64xf32>
    %c0_71 = arith.constant 0 : index
    %c0_72 = arith.constant 0 : index
    %c0_73 = arith.constant 0 : index
    %166 = vector.load %arg17[%c0_71, %c0_72, %c0_73] : memref<4x8x32xbf16, #tpu.memory_space<vmem>>, vector<4x8x32xbf16>
    %c0_74 = arith.constant 0 : index
    %c0_75 = arith.constant 0 : index
    %167 = vector.load %arg18[%c0_74, %c0_75] : memref<1x32xf32, #tpu.memory_space<vmem>>, vector<1x32xf32>
    %c0_76 = arith.constant 0 : index
    %c0_77 = arith.constant 0 : index
    %168 = vector.load %arg19[%c0_76, %c0_77] : memref<1x32xf32, #tpu.memory_space<vmem>>, vector<1x32xf32>
    %c0_78 = arith.constant 0 : index
    %c0_79 = arith.constant 0 : index
    %169 = vector.load %arg20[%c0_78, %c0_79] : memref<1x32xf32, #tpu.memory_space<vmem>>, vector<1x32xf32>
    %170 = arith.truncf %161 : vector<8x32xf32> to vector<8x32xbf16>
    %cst_80 = arith.constant dense<0.000000e+00> : vector<8x32xf32>
    %171 = tpu.matmul %170, %162, %cst_80 {dimension_numbers = #tpu.dot_dimension_numbers<[1], [0], [0], [1], [0, 0, 1, 1], [], []>} : vector<8x32xbf16>, vector<32x32xbf16>, vector<8x32xf32> -> vector<8x32xf32>
    %172 = vector.broadcast %163 : vector<1x32xf32> to vector<8x32xf32>
    %173 = arith.addf %171, %172 : vector<8x32xf32>
    %174 = arith.truncf %3 : vector<8x32xf32> to vector<8x32xbf16>
    %cst_81 = arith.constant dense<0.000000e+00> : vector<8x64xf32>
    %175 = tpu.matmul %174, %164, %cst_81 {dimension_numbers = #tpu.dot_dimension_numbers<[1], [0], [0], [1], [0, 0, 1, 1], [], []>} : vector<8x32xbf16>, vector<32x64xbf16>, vector<8x64xf32> -> vector<8x64xf32>
    %176 = vector.broadcast %165 : vector<1x64xf32> to vector<8x64xf32>
    %177 = arith.addf %175, %176 : vector<8x64xf32>
    %cst_82 = arith.constant 0.176776692 : f32
    %178 = vector.broadcast %cst_82 : f32 to vector<8x32xf32>
    %179 = arith.mulf %173, %178 : vector<8x32xf32>
    %180 = vector.extract_strided_slice %177 {offsets = [0, 0], sizes = [8, 32], strides = [1, 1]} : vector<8x64xf32> to vector<8x32xf32>
    %181 = vector.extract_strided_slice %177 {offsets = [0, 32], sizes = [8, 32], strides = [1, 1]} : vector<8x64xf32> to vector<8x32xf32>
    %cst_83 = arith.constant 0.000000e+00 : f32
    %182 = vector.broadcast %cst_83 : f32 to vector<8x32xf32>
    %183 = vector.extract_strided_slice %179 {offsets = [0, 0], sizes = [8, 8], strides = [1, 1]} : vector<8x32xf32> to vector<8x8xf32>
    %184 = arith.truncf %183 : vector<8x8xf32> to vector<8x8xbf16>
    %185 = vector.extract_strided_slice %180 {offsets = [0, 0], sizes = [8, 8], strides = [1, 1]} : vector<8x32xf32> to vector<8x8xf32>
    %186 = arith.truncf %185 : vector<8x8xf32> to vector<8x8xbf16>
    %cst_84 = arith.constant dense<0.000000e+00> : vector<8x8xf32>
    %187 = tpu.matmul %184, %186, %cst_84 {dimension_numbers = #tpu.dot_dimension_numbers<[1], [1], [0], [0], [0, 0, 1, 0], [], []>} : vector<8x8xbf16>, vector<8x8xbf16>, vector<8x8xf32> -> vector<8x8xf32>
    %cst_85 = arith.constant -1.000000e-10 : f32
    %188 = vector.shape_cast %11 : vector<1x8xi1> to vector<1x8xi1>
    %189 = vector.broadcast %188 : vector<1x8xi1> to vector<8x8xi1>
    %190 = vector.broadcast %cst_85 : f32 to vector<8x8xf32>
    %191 = arith.select %189, %190, %187 : vector<8x8xi1>, vector<8x8xf32>
    %cst_86 = arith.constant dense<0xFF800000> : vector<8xf32>
    %192 = vector.multi_reduction <maximumf>, %191, %cst_86 [1] : vector<8x8xf32> to vector<8xf32>
    %193 = vector.shape_cast %192 : vector<8xf32> to vector<8x1xf32>
    %194 = vector.broadcast %193 : vector<8x1xf32> to vector<8x8xf32>
    %195 = arith.subf %191, %194 : vector<8x8xf32>
    %196 = math.exp %195 : vector<8x8xf32>
    %cst_87 = arith.constant dense<0.000000e+00> : vector<8xf32>
    %197 = vector.multi_reduction <add>, %196, %cst_87 [1] : vector<8x8xf32> to vector<8xf32>
    %198 = vector.shape_cast %197 : vector<8xf32> to vector<8x1xf32>
    %199 = tpu.reciprocal %198 {approx = true} : vector<8x1xf32> -> vector<8x1xf32>
    %200 = vector.broadcast %199 : vector<8x1xf32> to vector<8x8xf32>
    %201 = arith.mulf %196, %200 : vector<8x8xf32>
    %202 = arith.truncf %201 : vector<8x8xf32> to vector<8x8xbf16>
    %203 = vector.extract_strided_slice %181 {offsets = [0, 0], sizes = [8, 8], strides = [1, 1]} : vector<8x32xf32> to vector<8x8xf32>
    %204 = arith.truncf %203 : vector<8x8xf32> to vector<8x8xbf16>
    %cst_88 = arith.constant dense<0.000000e+00> : vector<8x8xf32>
    %205 = tpu.matmul %202, %204, %cst_88 {dimension_numbers = #tpu.dot_dimension_numbers<[1], [0], [0], [1], [0, 0, 1, 1], [], []>} : vector<8x8xbf16>, vector<8x8xbf16>, vector<8x8xf32> -> vector<8x8xf32>
    %206 = arith.truncf %205 : vector<8x8xf32> to vector<8x8xbf16>
    %207 = vector.extract_strided_slice %166 {offsets = [0, 0, 0], sizes = [1, 8, 32], strides = [1, 1, 1]} : vector<4x8x32xbf16> to vector<1x8x32xbf16>
    %208 = vector.shape_cast %207 : vector<1x8x32xbf16> to vector<8x32xbf16>
    %cst_89 = arith.constant dense<0.000000e+00> : vector<8x32xf32>
    %209 = tpu.matmul %206, %208, %cst_89 {dimension_numbers = #tpu.dot_dimension_numbers<[1], [0], [0], [1], [0, 0, 1, 1], [], []>} : vector<8x8xbf16>, vector<8x32xbf16>, vector<8x32xf32> -> vector<8x32xf32>
    %210 = arith.addf %182, %209 : vector<8x32xf32>
    %211 = vector.extract_strided_slice %179 {offsets = [0, 8], sizes = [8, 8], strides = [1, 1]} : vector<8x32xf32> to vector<8x8xf32>
    %212 = arith.truncf %211 : vector<8x8xf32> to vector<8x8xbf16>
    %213 = vector.extract_strided_slice %180 {offsets = [0, 8], sizes = [8, 8], strides = [1, 1]} : vector<8x32xf32> to vector<8x8xf32>
    %214 = arith.truncf %213 : vector<8x8xf32> to vector<8x8xbf16>
    %cst_90 = arith.constant dense<0.000000e+00> : vector<8x8xf32>
    %215 = tpu.matmul %212, %214, %cst_90 {dimension_numbers = #tpu.dot_dimension_numbers<[1], [1], [0], [0], [0, 0, 1, 0], [], []>} : vector<8x8xbf16>, vector<8x8xbf16>, vector<8x8xf32> -> vector<8x8xf32>
    %cst_91 = arith.constant -1.000000e-10 : f32
    %216 = vector.shape_cast %11 : vector<1x8xi1> to vector<1x8xi1>
    %217 = vector.broadcast %216 : vector<1x8xi1> to vector<8x8xi1>
    %218 = vector.broadcast %cst_91 : f32 to vector<8x8xf32>
    %219 = arith.select %217, %218, %215 : vector<8x8xi1>, vector<8x8xf32>
    %cst_92 = arith.constant dense<0xFF800000> : vector<8xf32>
    %220 = vector.multi_reduction <maximumf>, %219, %cst_92 [1] : vector<8x8xf32> to vector<8xf32>
    %221 = vector.shape_cast %220 : vector<8xf32> to vector<8x1xf32>
    %222 = vector.broadcast %221 : vector<8x1xf32> to vector<8x8xf32>
    %223 = arith.subf %219, %222 : vector<8x8xf32>
    %224 = math.exp %223 : vector<8x8xf32>
    %cst_93 = arith.constant dense<0.000000e+00> : vector<8xf32>
    %225 = vector.multi_reduction <add>, %224, %cst_93 [1] : vector<8x8xf32> to vector<8xf32>
    %226 = vector.shape_cast %225 : vector<8xf32> to vector<8x1xf32>
    %227 = tpu.reciprocal %226 {approx = true} : vector<8x1xf32> -> vector<8x1xf32>
    %228 = vector.broadcast %227 : vector<8x1xf32> to vector<8x8xf32>
    %229 = arith.mulf %224, %228 : vector<8x8xf32>
    %230 = arith.truncf %229 : vector<8x8xf32> to vector<8x8xbf16>
    %231 = vector.extract_strided_slice %181 {offsets = [0, 8], sizes = [8, 8], strides = [1, 1]} : vector<8x32xf32> to vector<8x8xf32>
    %232 = arith.truncf %231 : vector<8x8xf32> to vector<8x8xbf16>
    %cst_94 = arith.constant dense<0.000000e+00> : vector<8x8xf32>
    %233 = tpu.matmul %230, %232, %cst_94 {dimension_numbers = #tpu.dot_dimension_numbers<[1], [0], [0], [1], [0, 0, 1, 1], [], []>} : vector<8x8xbf16>, vector<8x8xbf16>, vector<8x8xf32> -> vector<8x8xf32>
    %234 = arith.truncf %233 : vector<8x8xf32> to vector<8x8xbf16>
    %235 = vector.extract_strided_slice %166 {offsets = [1, 0, 0], sizes = [1, 8, 32], strides = [1, 1, 1]} : vector<4x8x32xbf16> to vector<1x8x32xbf16>
    %236 = vector.shape_cast %235 : vector<1x8x32xbf16> to vector<8x32xbf16>
    %cst_95 = arith.constant dense<0.000000e+00> : vector<8x32xf32>
    %237 = tpu.matmul %234, %236, %cst_95 {dimension_numbers = #tpu.dot_dimension_numbers<[1], [0], [0], [1], [0, 0, 1, 1], [], []>} : vector<8x8xbf16>, vector<8x32xbf16>, vector<8x32xf32> -> vector<8x32xf32>
    %238 = arith.addf %210, %237 : vector<8x32xf32>
    %239 = vector.extract_strided_slice %179 {offsets = [0, 16], sizes = [8, 8], strides = [1, 1]} : vector<8x32xf32> to vector<8x8xf32>
    %240 = arith.truncf %239 : vector<8x8xf32> to vector<8x8xbf16>
    %241 = vector.extract_strided_slice %180 {offsets = [0, 16], sizes = [8, 8], strides = [1, 1]} : vector<8x32xf32> to vector<8x8xf32>
    %242 = arith.truncf %241 : vector<8x8xf32> to vector<8x8xbf16>
    %cst_96 = arith.constant dense<0.000000e+00> : vector<8x8xf32>
    %243 = tpu.matmul %240, %242, %cst_96 {dimension_numbers = #tpu.dot_dimension_numbers<[1], [1], [0], [0], [0, 0, 1, 0], [], []>} : vector<8x8xbf16>, vector<8x8xbf16>, vector<8x8xf32> -> vector<8x8xf32>
    %cst_97 = arith.constant -1.000000e-10 : f32
    %244 = vector.shape_cast %11 : vector<1x8xi1> to vector<1x8xi1>
    %245 = vector.broadcast %244 : vector<1x8xi1> to vector<8x8xi1>
    %246 = vector.broadcast %cst_97 : f32 to vector<8x8xf32>
    %247 = arith.select %245, %246, %243 : vector<8x8xi1>, vector<8x8xf32>
    %cst_98 = arith.constant dense<0xFF800000> : vector<8xf32>
    %248 = vector.multi_reduction <maximumf>, %247, %cst_98 [1] : vector<8x8xf32> to vector<8xf32>
    %249 = vector.shape_cast %248 : vector<8xf32> to vector<8x1xf32>
    %250 = vector.broadcast %249 : vector<8x1xf32> to vector<8x8xf32>
    %251 = arith.subf %247, %250 : vector<8x8xf32>
    %252 = math.exp %251 : vector<8x8xf32>
    %cst_99 = arith.constant dense<0.000000e+00> : vector<8xf32>
    %253 = vector.multi_reduction <add>, %252, %cst_99 [1] : vector<8x8xf32> to vector<8xf32>
    %254 = vector.shape_cast %253 : vector<8xf32> to vector<8x1xf32>
    %255 = tpu.reciprocal %254 {approx = true} : vector<8x1xf32> -> vector<8x1xf32>
    %256 = vector.broadcast %255 : vector<8x1xf32> to vector<8x8xf32>
    %257 = arith.mulf %252, %256 : vector<8x8xf32>
    %258 = arith.truncf %257 : vector<8x8xf32> to vector<8x8xbf16>
    %259 = vector.extract_strided_slice %181 {offsets = [0, 16], sizes = [8, 8], strides = [1, 1]} : vector<8x32xf32> to vector<8x8xf32>
    %260 = arith.truncf %259 : vector<8x8xf32> to vector<8x8xbf16>
    %cst_100 = arith.constant dense<0.000000e+00> : vector<8x8xf32>
    %261 = tpu.matmul %258, %260, %cst_100 {dimension_numbers = #tpu.dot_dimension_numbers<[1], [0], [0], [1], [0, 0, 1, 1], [], []>} : vector<8x8xbf16>, vector<8x8xbf16>, vector<8x8xf32> -> vector<8x8xf32>
    %262 = arith.truncf %261 : vector<8x8xf32> to vector<8x8xbf16>
    %263 = vector.extract_strided_slice %166 {offsets = [2, 0, 0], sizes = [1, 8, 32], strides = [1, 1, 1]} : vector<4x8x32xbf16> to vector<1x8x32xbf16>
    %264 = vector.shape_cast %263 : vector<1x8x32xbf16> to vector<8x32xbf16>
    %cst_101 = arith.constant dense<0.000000e+00> : vector<8x32xf32>
    %265 = tpu.matmul %262, %264, %cst_101 {dimension_numbers = #tpu.dot_dimension_numbers<[1], [0], [0], [1], [0, 0, 1, 1], [], []>} : vector<8x8xbf16>, vector<8x32xbf16>, vector<8x32xf32> -> vector<8x32xf32>
    %266 = arith.addf %238, %265 : vector<8x32xf32>
    %267 = vector.extract_strided_slice %179 {offsets = [0, 24], sizes = [8, 8], strides = [1, 1]} : vector<8x32xf32> to vector<8x8xf32>
    %268 = arith.truncf %267 : vector<8x8xf32> to vector<8x8xbf16>
    %269 = vector.extract_strided_slice %180 {offsets = [0, 24], sizes = [8, 8], strides = [1, 1]} : vector<8x32xf32> to vector<8x8xf32>
    %270 = arith.truncf %269 : vector<8x8xf32> to vector<8x8xbf16>
    %cst_102 = arith.constant dense<0.000000e+00> : vector<8x8xf32>
    %271 = tpu.matmul %268, %270, %cst_102 {dimension_numbers = #tpu.dot_dimension_numbers<[1], [1], [0], [0], [0, 0, 1, 0], [], []>} : vector<8x8xbf16>, vector<8x8xbf16>, vector<8x8xf32> -> vector<8x8xf32>
    %cst_103 = arith.constant -1.000000e-10 : f32
    %272 = vector.shape_cast %11 : vector<1x8xi1> to vector<1x8xi1>
    %273 = vector.broadcast %272 : vector<1x8xi1> to vector<8x8xi1>
    %274 = vector.broadcast %cst_103 : f32 to vector<8x8xf32>
    %275 = arith.select %273, %274, %271 : vector<8x8xi1>, vector<8x8xf32>
    %cst_104 = arith.constant dense<0xFF800000> : vector<8xf32>
    %276 = vector.multi_reduction <maximumf>, %275, %cst_104 [1] : vector<8x8xf32> to vector<8xf32>
    %277 = vector.shape_cast %276 : vector<8xf32> to vector<8x1xf32>
    %278 = vector.broadcast %277 : vector<8x1xf32> to vector<8x8xf32>
    %279 = arith.subf %275, %278 : vector<8x8xf32>
    %280 = math.exp %279 : vector<8x8xf32>
    %cst_105 = arith.constant dense<0.000000e+00> : vector<8xf32>
    %281 = vector.multi_reduction <add>, %280, %cst_105 [1] : vector<8x8xf32> to vector<8xf32>
    %282 = vector.shape_cast %281 : vector<8xf32> to vector<8x1xf32>
    %283 = tpu.reciprocal %282 {approx = true} : vector<8x1xf32> -> vector<8x1xf32>
    %284 = vector.broadcast %283 : vector<8x1xf32> to vector<8x8xf32>
    %285 = arith.mulf %280, %284 : vector<8x8xf32>
    %286 = arith.truncf %285 : vector<8x8xf32> to vector<8x8xbf16>
    %287 = vector.extract_strided_slice %181 {offsets = [0, 24], sizes = [8, 8], strides = [1, 1]} : vector<8x32xf32> to vector<8x8xf32>
    %288 = arith.truncf %287 : vector<8x8xf32> to vector<8x8xbf16>
    %cst_106 = arith.constant dense<0.000000e+00> : vector<8x8xf32>
    %289 = tpu.matmul %286, %288, %cst_106 {dimension_numbers = #tpu.dot_dimension_numbers<[1], [0], [0], [1], [0, 0, 1, 1], [], []>} : vector<8x8xbf16>, vector<8x8xbf16>, vector<8x8xf32> -> vector<8x8xf32>
    %290 = arith.truncf %289 : vector<8x8xf32> to vector<8x8xbf16>
    %291 = vector.extract_strided_slice %166 {offsets = [3, 0, 0], sizes = [1, 8, 32], strides = [1, 1, 1]} : vector<4x8x32xbf16> to vector<1x8x32xbf16>
    %292 = vector.shape_cast %291 : vector<1x8x32xbf16> to vector<8x32xbf16>
    %cst_107 = arith.constant dense<0.000000e+00> : vector<8x32xf32>
    %293 = tpu.matmul %290, %292, %cst_107 {dimension_numbers = #tpu.dot_dimension_numbers<[1], [0], [0], [1], [0, 0, 1, 1], [], []>} : vector<8x8xbf16>, vector<8x32xbf16>, vector<8x32xf32> -> vector<8x32xf32>
    %294 = arith.addf %266, %293 : vector<8x32xf32>
    %295 = vector.broadcast %167 : vector<1x32xf32> to vector<8x32xf32>
    %296 = arith.addf %294, %295 : vector<8x32xf32>
    %297 = arith.addf %161, %296 : vector<8x32xf32>
    %cst_108 = arith.constant dense<0.000000e+00> : vector<8xf32>
    %298 = vector.multi_reduction <add>, %297, %cst_108 [1] : vector<8x32xf32> to vector<8xf32>
    %299 = vector.shape_cast %298 : vector<8xf32> to vector<8x1xf32>
    %cst_109 = arith.constant 3.200000e+01 : f32
    %300 = vector.broadcast %cst_109 : f32 to vector<8x1xf32>
    %301 = arith.divf %299, %300 : vector<8x1xf32>
    %302 = vector.broadcast %301 : vector<8x1xf32> to vector<8x32xf32>
    %303 = arith.subf %297, %302 : vector<8x32xf32>
    %304 = arith.mulf %303, %303 : vector<8x32xf32>
    %cst_110 = arith.constant dense<0.000000e+00> : vector<8xf32>
    %305 = vector.multi_reduction <add>, %304, %cst_110 [1] : vector<8x32xf32> to vector<8xf32>
    %306 = vector.shape_cast %305 : vector<8xf32> to vector<8x1xf32>
    %cst_111 = arith.constant 3.200000e+01 : f32
    %307 = vector.broadcast %cst_111 : f32 to vector<8x1xf32>
    %308 = arith.divf %306, %307 : vector<8x1xf32>
    %309 = vector.broadcast %301 : vector<8x1xf32> to vector<8x32xf32>
    %310 = arith.subf %297, %309 : vector<8x32xf32>
    %cst_112 = arith.constant 9.99999974E-6 : f32
    %311 = vector.broadcast %cst_112 : f32 to vector<8x1xf32>
    %312 = arith.addf %308, %311 : vector<8x1xf32>
    %313 = math.rsqrt %312 : vector<8x1xf32>
    %314 = vector.broadcast %313 : vector<8x1xf32> to vector<8x32xf32>
    %315 = arith.mulf %310, %314 : vector<8x32xf32>
    %316 = vector.broadcast %168 : vector<1x32xf32> to vector<8x32xf32>
    %317 = arith.mulf %315, %316 : vector<8x32xf32>
    %318 = vector.broadcast %169 : vector<1x32xf32> to vector<8x32xf32>
    %319 = arith.addf %317, %318 : vector<8x32xf32>
    %c0_113 = arith.constant 0 : index
    %c0_114 = arith.constant 0 : index
    %320 = vector.load %arg21[%c0_113, %c0_114] : memref<32x64xbf16, #tpu.memory_space<vmem>>, vector<32x64xbf16>
    %c0_115 = arith.constant 0 : index
    %c0_116 = arith.constant 0 : index
    %321 = vector.load %arg22[%c0_115, %c0_116] : memref<1x64xf32, #tpu.memory_space<vmem>>, vector<1x64xf32>
    %c0_117 = arith.constant 0 : index
    %c0_118 = arith.constant 0 : index
    %322 = vector.load %arg23[%c0_117, %c0_118] : memref<64x32xbf16, #tpu.memory_space<vmem>>, vector<64x32xbf16>
    %c0_119 = arith.constant 0 : index
    %c0_120 = arith.constant 0 : index
    %323 = vector.load %arg24[%c0_119, %c0_120] : memref<1x32xf32, #tpu.memory_space<vmem>>, vector<1x32xf32>
    %c0_121 = arith.constant 0 : index
    %c0_122 = arith.constant 0 : index
    %324 = vector.load %arg25[%c0_121, %c0_122] : memref<1x32xf32, #tpu.memory_space<vmem>>, vector<1x32xf32>
    %c0_123 = arith.constant 0 : index
    %c0_124 = arith.constant 0 : index
    %325 = vector.load %arg26[%c0_123, %c0_124] : memref<1x32xf32, #tpu.memory_space<vmem>>, vector<1x32xf32>
    %326 = arith.truncf %319 : vector<8x32xf32> to vector<8x32xbf16>
    %cst_125 = arith.constant dense<0.000000e+00> : vector<8x64xf32>
    %327 = tpu.matmul %326, %320, %cst_125 {dimension_numbers = #tpu.dot_dimension_numbers<[1], [0], [0], [1], [0, 0, 1, 1], [], []>} : vector<8x32xbf16>, vector<32x64xbf16>, vector<8x64xf32> -> vector<8x64xf32>
    %328 = vector.broadcast %321 : vector<1x64xf32> to vector<8x64xf32>
    %329 = arith.addf %327, %328 : vector<8x64xf32>
    %cst_126 = arith.constant 0.000000e+00 : f32
    %330 = vector.broadcast %cst_126 : f32 to vector<8x64xf32>
    %331 = arith.maximumf %329, %330 : vector<8x64xf32>
    %332 = arith.truncf %331 : vector<8x64xf32> to vector<8x64xbf16>
    %cst_127 = arith.constant dense<0.000000e+00> : vector<8x32xf32>
    %333 = tpu.matmul %332, %322, %cst_127 {dimension_numbers = #tpu.dot_dimension_numbers<[1], [0], [0], [1], [0, 0, 1, 1], [], []>} : vector<8x64xbf16>, vector<64x32xbf16>, vector<8x32xf32> -> vector<8x32xf32>
    %334 = vector.broadcast %323 : vector<1x32xf32> to vector<8x32xf32>
    %335 = arith.addf %333, %334 : vector<8x32xf32>
    %cst_128 = arith.constant dense<0.000000e+00> : vector<8xf32>
    %336 = vector.multi_reduction <add>, %335, %cst_128 [1] : vector<8x32xf32> to vector<8xf32>
    %337 = vector.shape_cast %336 : vector<8xf32> to vector<8x1xf32>
    %cst_129 = arith.constant 3.200000e+01 : f32
    %338 = vector.broadcast %cst_129 : f32 to vector<8x1xf32>
    %339 = arith.divf %337, %338 : vector<8x1xf32>
    %340 = vector.broadcast %339 : vector<8x1xf32> to vector<8x32xf32>
    %341 = arith.subf %335, %340 : vector<8x32xf32>
    %342 = arith.mulf %341, %341 : vector<8x32xf32>
    %cst_130 = arith.constant dense<0.000000e+00> : vector<8xf32>
    %343 = vector.multi_reduction <add>, %342, %cst_130 [1] : vector<8x32xf32> to vector<8xf32>
    %344 = vector.shape_cast %343 : vector<8xf32> to vector<8x1xf32>
    %cst_131 = arith.constant 3.200000e+01 : f32
    %345 = vector.broadcast %cst_131 : f32 to vector<8x1xf32>
    %346 = arith.divf %344, %345 : vector<8x1xf32>
    %347 = vector.broadcast %339 : vector<8x1xf32> to vector<8x32xf32>
    %348 = arith.subf %335, %347 : vector<8x32xf32>
    %cst_132 = arith.constant 9.99999974E-6 : f32
    %349 = vector.broadcast %cst_132 : f32 to vector<8x1xf32>
    %350 = arith.addf %346, %349 : vector<8x1xf32>
    %351 = math.rsqrt %350 : vector<8x1xf32>
    %352 = vector.broadcast %351 : vector<8x1xf32> to vector<8x32xf32>
    %353 = arith.mulf %348, %352 : vector<8x32xf32>
    %354 = vector.broadcast %324 : vector<1x32xf32> to vector<8x32xf32>
    %355 = arith.mulf %353, %354 : vector<8x32xf32>
    %356 = vector.broadcast %325 : vector<1x32xf32> to vector<8x32xf32>
    %357 = arith.addf %355, %356 : vector<8x32xf32>
    %c0_133 = arith.constant 0 : index
    %c0_134 = arith.constant 0 : index
    %c0_135 = arith.constant 0 : index
    %358 = vector.load %arg27[%c0_133, %c0_134, %c0_135] : memref<1x8x32xf32, #tpu.memory_space<vmem>>, vector<1x8x32xf32>
    %359 = vector.shape_cast %358 : vector<1x8x32xf32> to vector<8x32xf32>
    %360 = vector.shape_cast %357 : vector<8x32xf32> to vector<1x8x32xf32>
    tpu.vector_store %arg27[%c0_133, %c0_134, %c0_135], %360 {strides = array<i32>} : memref<1x8x32xf32, #tpu.memory_space<vmem>>, vector<1x8x32xf32>,
    return
  }
  func.func @transform_0(%arg0: i32) -> (i32, i32, i32) {
    %c0_i32 = arith.constant 0 : i32
    %c0_i32_0 = arith.constant 0 : i32
    %c0_i32_1 = arith.constant 0 : i32
    return %arg0, %c0_i32, %c0_i32_0 : i32, i32, i32
  }
  func.func @transform_1(%arg0: i32) -> (i32, i32, i32) {
    %c0_i32 = arith.constant 0 : i32
    %c0_i32_0 = arith.constant 0 : i32
    %c0_i32_1 = arith.constant 0 : i32
    return %arg0, %c0_i32, %c0_i32_0 : i32, i32, i32
  }
  func.func @transform_2(%arg0: i32) -> (i32, i32, i32, i32) {
    %c0_i32 = arith.constant 0 : i32
    %c0_i32_0 = arith.constant 0 : i32
    %c0_i32_1 = arith.constant 0 : i32
    %c0_i32_2 = arith.constant 0 : i32
    return %arg0, %c0_i32, %c0_i32_0, %c0_i32_1 : i32, i32, i32, i32
  }
  func.func @transform_3(%arg0: i32) -> (i32, i32, i32, i32) {
    %c0_i32 = arith.constant 0 : i32
    %c0_i32_0 = arith.constant 0 : i32
    %c0_i32_1 = arith.constant 0 : i32
    %c0_i32_2 = arith.constant 0 : i32
    return %arg0, %c0_i32, %c0_i32_0, %c0_i32_1 : i32, i32, i32, i32
  }
  func.func @transform_4(%arg0: i32) -> (i32, i32) {
    %c0_i32 = arith.constant 0 : i32
    %c0_i32_0 = arith.constant 0 : i32
    %c0_i32_1 = arith.constant 0 : i32
    return %c0_i32, %c0_i32_0 : i32, i32
  }
  func.func @transform_5(%arg0: i32) -> (i32, i32) {
    %c0_i32 = arith.constant 0 : i32
    %c0_i32_0 = arith.constant 0 : i32
    %c0_i32_1 = arith.constant 0 : i32
    return %c0_i32, %c0_i32_0 : i32, i32
  }
  func.func @transform_6(%arg0: i32) -> (i32, i32) {
    %c0_i32 = arith.constant 0 : i32
    %c0_i32_0 = arith.constant 0 : i32
    %c0_i32_1 = arith.constant 0 : i32
    return %c0_i32, %c0_i32_0 : i32, i32
  }
  func.func @transform_7(%arg0: i32) -> (i32, i32) {
    %c0_i32 = arith.constant 0 : i32
    %c0_i32_0 = arith.constant 0 : i32
    %c0_i32_1 = arith.constant 0 : i32
    return %c0_i32, %c0_i32_0 : i32, i32
  }
  func.func @transform_8(%arg0: i32) -> (i32, i32, i32) {
    %c0_i32 = arith.constant 0 : i32
    %c0_i32_0 = arith.constant 0 : i32
    %c0_i32_1 = arith.constant 0 : i32
    %c0_i32_2 = arith.constant 0 : i32
    return %c0_i32, %c0_i32_0, %c0_i32_1 : i32, i32, i32
  }
  func.func @transform_9(%arg0: i32) -> (i32, i32) {
    %c0_i32 = arith.constant 0 : i32
    %c0_i32_0 = arith.constant 0 : i32
    %c0_i32_1 = arith.constant 0 : i32
    return %c0_i32, %c0_i32_0 : i32, i32
  }
  func.func @transform_10(%arg0: i32) -> (i32, i32) {
    %c0_i32 = arith.constant 0 : i32
    %c0_i32_0 = arith.constant 0 : i32
    %c0_i32_1 = arith.constant 0 : i32
    return %c0_i32, %c0_i32_0 : i32, i32
  }
  func.func @transform_11(%arg0: i32) -> (i32, i32) {
    %c0_i32 = arith.constant 0 : i32
    %c0_i32_0 = arith.constant 0 : i32
    %c0_i32_1 = arith.constant 0 : i32
    return %c0_i32, %c0_i32_0 : i32, i32
  }
  func.func @transform_12(%arg0: i32) -> (i32, i32) {
    %c0_i32 = arith.constant 0 : i32
    %c0_i32_0 = arith.constant 0 : i32
    %c0_i32_1 = arith.constant 0 : i32
    return %c0_i32, %c0_i32_0 : i32, i32
  }
  func.func @transform_13(%arg0: i32) -> (i32, i32) {
    %c0_i32 = arith.constant 0 : i32
    %c0_i32_0 = arith.constant 0 : i32
    %c0_i32_1 = arith.constant 0 : i32
    return %c0_i32, %c0_i32_0 : i32, i32
  }
  func.func @transform_14(%arg0: i32) -> (i32, i32) {
    %c0_i32 = arith.constant 0 : i32
    %c0_i32_0 = arith.constant 0 : i32
    %c0_i32_1 = arith.constant 0 : i32
    return %c0_i32, %c0_i32_0 : i32, i32
  }
  func.func @transform_15(%arg0: i32) -> (i32, i32) {
    %c0_i32 = arith.constant 0 : i32
    %c0_i32_0 = arith.constant 0 : i32
    %c0_i32_1 = arith.constant 0 : i32
    return %c0_i32, %c0_i32_0 : i32, i32
  }
  func.func @transform_16(%arg0: i32) -> (i32, i32, i32) {
    %c0_i32 = arith.constant 0 : i32
    %c0_i32_0 = arith.constant 0 : i32
    %c0_i32_1 = arith.constant 0 : i32
    %c0_i32_2 = arith.constant 0 : i32
    return %c0_i32, %c0_i32_0, %c0_i32_1 : i32, i32, i32
  }
  func.func @transform_17(%arg0: i32) -> (i32, i32) {
    %c0_i32 = arith.constant 0 : i32
    %c0_i32_0 = arith.constant 0 : i32
    %c0_i32_1 = arith.constant 0 : i32
    return %c0_i32, %c0_i32_0 : i32, i32
  }
  func.func @transform_18(%arg0: i32) -> (i32, i32) {
    %c0_i32 = arith.constant 0 : i32
    %c0_i32_0 = arith.constant 0 : i32
    %c0_i32_1 = arith.constant 0 : i32
    return %c0_i32, %c0_i32_0 : i32, i32
  }
  func.func @transform_19(%arg0: i32) -> (i32, i32) {
    %c0_i32 = arith.constant 0 : i32
    %c0_i32_0 = arith.constant 0 : i32
    %c0_i32_1 = arith.constant 0 : i32
    return %c0_i32, %c0_i32_0 : i32, i32
  }
  func.func @transform_20(%arg0: i32) -> (i32, i32) {
    %c0_i32 = arith.constant 0 : i32
    %c0_i32_0 = arith.constant 0 : i32
    %c0_i32_1 = arith.constant 0 : i32
    return %c0_i32, %c0_i32_0 : i32, i32
  }
  func.func @transform_21(%arg0: i32) -> (i32, i32) {
    %c0_i32 = arith.constant 0 : i32
    %c0_i32_0 = arith.constant 0 : i32
    %c0_i32_1 = arith.constant 0 : i32
    return %c0_i32, %c0_i32_0 : i32, i32
  }
  func.func @transform_22(%arg0: i32) -> (i32, i32) {
    %c0_i32 = arith.constant 0 : i32
    %c0_i32_0 = arith.constant 0 : i32
    %c0_i32_1 = arith.constant 0 : i32
    return %c0_i32, %c0_i32_0 : i32, i32
  }
  func.func @transform_23(%arg0: i32) -> (i32, i32) {
    %c0_i32 = arith.constant 0 : i32
    %c0_i32_0 = arith.constant 0 : i32
    %c0_i32_1 = arith.constant 0 : i32
    return %c0_i32, %c0_i32_0 : i32, i32
  }
  func.func @transform_24(%arg0: i32) -> (i32, i32) {
    %c0_i32 = arith.constant 0 : i32
    %c0_i32_0 = arith.constant 0 : i32
    %c0_i32_1 = arith.constant 0 : i32
    return %c0_i32, %c0_i32_0 : i32, i32
  }
  func.func @transform_25(%arg0: i32) -> (i32, i32) {
    %c0_i32 = arith.constant 0 : i32
    %c0_i32_0 = arith.constant 0 : i32
    %c0_i32_1 = arith.constant 0 : i32
    return %c0_i32, %c0_i32_0 : i32, i32
  }
  func.func @transform_26(%arg0: i32) -> (i32, i32, i32) {
    %c0_i32 = arith.constant 0 : i32
    %c0_i32_0 = arith.constant 0 : i32
    %c0_i32_1 = arith.constant 0 : i32
    return %arg0, %c0_i32, %c0_i32_0 : i32, i32, i32
  }
}

module attributes {stable_mosaic.version = 11 : i64} {
  func.func @_encoder_layer_kernel(%arg0: i32, %arg1: memref<1x8x32xf32, #tpu.memory_space<vmem>>, %arg2: memref<1x1x1x8xi32, #tpu.memory_space<vmem>>, %arg3: memref<32x32xbf16, #tpu.memory_space<vmem>>, %arg4: memref<1x32xf32, #tpu.memory_space<vmem>>, %arg5: memref<32x64xbf16, #tpu.memory_space<vmem>>, %arg6: memref<1x64xf32, #tpu.memory_space<vmem>>, %arg7: memref<4x8x32xbf16, #tpu.memory_space<vmem>>, %arg8: memref<1x32xf32, #tpu.memory_space<vmem>>, %arg9: memref<1x32xf32, #tpu.memory_space<vmem>>, %arg10: memref<1x32xf32, #tpu.memory_space<vmem>>, %arg11: memref<32x64xbf16, #tpu.memory_space<vmem>>, %arg12: memref<1x64xf32, #tpu.memory_space<vmem>>, %arg13: memref<64x32xbf16, #tpu.memory_space<vmem>>, %arg14: memref<1x32xf32, #tpu.memory_space<vmem>>, %arg15: memref<1x32xf32, #tpu.memory_space<vmem>>, %arg16: memref<1x32xf32, #tpu.memory_space<vmem>>, %arg17: memref<1x8x32xf32, #tpu.memory_space<vmem>>) attributes {dimension_semantics = [#tpu.dimension_semantics<parallel>], iteration_bounds = array<i64: 2>, scalar_prefetch = 0 : i64, scratch_operands = 0 : i64, tpu.core_type = #tpu.core_type<tc>, window_params = [{transform_indices = @transform_0, window_bounds = array<i64: 1, 8, 32>}, {transform_indices = @transform_1, window_bounds = array<i64: 1, 1, 1, 8>}, {pipeline_mode = #tpu.pipeline_mode<synchronous>, transform_indices = @transform_2, window_bounds = array<i64: 32, 32>}, {pipeline_mode = #tpu.pipeline_mode<synchronous>, transform_indices = @transform_3, window_bounds = array<i64: 1, 32>}, {pipeline_mode = #tpu.pipeline_mode<synchronous>, transform_indices = @transform_4, window_bounds = array<i64: 32, 64>}, {pipeline_mode = #tpu.pipeline_mode<synchronous>, transform_indices = @transform_5, window_bounds = array<i64: 1, 64>}, {pipeline_mode = #tpu.pipeline_mode<synchronous>, transform_indices = @transform_6, window_bounds = array<i64: 4, 8, 32>}, {pipeline_mode = #tpu.pipeline_mode<synchronous>, transform_indices = @transform_7, window_bounds = array<i64: 1, 32>}, {pipeline_mode = #tpu.pipeline_mode<synchronous>, transform_indices = @transform_8, window_bounds = array<i64: 1, 32>}, {pipeline_mode = #tpu.pipeline_mode<synchronous>, transform_indices = @transform_9, window_bounds = array<i64: 1, 32>}, {pipeline_mode = #tpu.pipeline_mode<synchronous>, transform_indices = @transform_10, window_bounds = array<i64: 32, 64>}, {pipeline_mode = #tpu.pipeline_mode<synchronous>, transform_indices = @transform_11, window_bounds = array<i64: 1, 64>}, {pipeline_mode = #tpu.pipeline_mode<synchronous>, transform_indices = @transform_12, window_bounds = array<i64: 64, 32>}, {pipeline_mode = #tpu.pipeline_mode<synchronous>, transform_indices = @transform_13, window_bounds = array<i64: 1, 32>}, {pipeline_mode = #tpu.pipeline_mode<synchronous>, transform_indices = @transform_14, window_bounds = array<i64: 1, 32>}, {pipeline_mode = #tpu.pipeline_mode<synchronous>, transform_indices = @transform_15, window_bounds = array<i64: 1, 32>}, {transform_indices = @transform_16, window_bounds = array<i64: 1, 8, 32>}]} {
    %c0 = arith.constant 0 : index
    %c0_0 = arith.constant 0 : index
    %c0_1 = arith.constant 0 : index
    %0 = vector.load %arg1[%c0, %c0_0, %c0_1] : memref<1x8x32xf32, #tpu.memory_space<vmem>>, vector<1x8x32xf32>
    %1 = vector.shape_cast %0 : vector<1x8x32xf32> to vector<8x32xf32>
    %c0_2 = arith.constant 0 : index
    %c0_3 = arith.constant 0 : index
    %c0_4 = arith.constant 0 : index
    %c0_5 = arith.constant 0 : index
    %2 = vector.load %arg2[%c0_2, %c0_3, %c0_4, %c0_5] : memref<1x1x1x8xi32, #tpu.memory_space<vmem>>, vector<1x1x1x8xi32>
    %3 = vector.shape_cast %2 : vector<1x1x1x8xi32> to vector<1x8xi32>
    %c0_i32 = arith.constant 0 : i32
    %4 = vector.broadcast %c0_i32 : i32 to vector<1x8xi32>
    %5 = arith.cmpi eq, %3, %4 : vector<1x8xi32>
    %c0_6 = arith.constant 0 : index
    %c0_7 = arith.constant 0 : index
    %6 = vector.load %arg3[%c0_6, %c0_7] : memref<32x32xbf16, #tpu.memory_space<vmem>>, vector<32x32xbf16>
    %c0_8 = arith.constant 0 : index
    %c0_9 = arith.constant 0 : index
    %7 = vector.load %arg4[%c0_8, %c0_9] : memref<1x32xf32, #tpu.memory_space<vmem>>, vector<1x32xf32>
    %c0_10 = arith.constant 0 : index
    %c0_11 = arith.constant 0 : index
    %8 = vector.load %arg5[%c0_10, %c0_11] : memref<32x64xbf16, #tpu.memory_space<vmem>>, vector<32x64xbf16>
    %c0_12 = arith.constant 0 : index
    %c0_13 = arith.constant 0 : index
    %9 = vector.load %arg6[%c0_12, %c0_13] : memref<1x64xf32, #tpu.memory_space<vmem>>, vector<1x64xf32>
    %c0_14 = arith.constant 0 : index
    %c0_15 = arith.constant 0 : index
    %c0_16 = arith.constant 0 : index
    %10 = vector.load %arg7[%c0_14, %c0_15, %c0_16] : memref<4x8x32xbf16, #tpu.memory_space<vmem>>, vector<4x8x32xbf16>
    %c0_17 = arith.constant 0 : index
    %c0_18 = arith.constant 0 : index
    %11 = vector.load %arg8[%c0_17, %c0_18] : memref<1x32xf32, #tpu.memory_space<vmem>>, vector<1x32xf32>
    %c0_19 = arith.constant 0 : index
    %c0_20 = arith.constant 0 : index
    %12 = vector.load %arg9[%c0_19, %c0_20] : memref<1x32xf32, #tpu.memory_space<vmem>>, vector<1x32xf32>
    %c0_21 = arith.constant 0 : index
    %c0_22 = arith.constant 0 : index
    %13 = vector.load %arg10[%c0_21, %c0_22] : memref<1x32xf32, #tpu.memory_space<vmem>>, vector<1x32xf32>
    %14 = arith.truncf %1 : vector<8x32xf32> to vector<8x32xbf16>
    %cst = arith.constant dense<0.000000e+00> : vector<8x32xf32>
    %15 = tpu.matmul %14, %6, %cst {dimension_numbers = #tpu.dot_dimension_numbers<[1], [0], [0], [1], [0, 0, 1, 1], [], []>} : vector<8x32xbf16>, vector<32x32xbf16>, vector<8x32xf32> -> vector<8x32xf32>
    %16 = vector.broadcast %7 : vector<1x32xf32> to vector<8x32xf32>
    %17 = arith.addf %15, %16 : vector<8x32xf32>
    %18 = arith.truncf %1 : vector<8x32xf32> to vector<8x32xbf16>
    %cst_23 = arith.constant dense<0.000000e+00> : vector<8x64xf32>
    %19 = tpu.matmul %18, %8, %cst_23 {dimension_numbers = #tpu.dot_dimension_numbers<[1], [0], [0], [1], [0, 0, 1, 1], [], []>} : vector<8x32xbf16>, vector<32x64xbf16>, vector<8x64xf32> -> vector<8x64xf32>
    %20 = vector.broadcast %9 : vector<1x64xf32> to vector<8x64xf32>
    %21 = arith.addf %19, %20 : vector<8x64xf32>
    %cst_24 = arith.constant 0.176776692 : f32
    %22 = vector.broadcast %cst_24 : f32 to vector<8x32xf32>
    %23 = arith.mulf %17, %22 : vector<8x32xf32>
    %24 = vector.extract_strided_slice %21 {offsets = [0, 0], sizes = [8, 32], strides = [1, 1]} : vector<8x64xf32> to vector<8x32xf32>
    %25 = vector.extract_strided_slice %21 {offsets = [0, 32], sizes = [8, 32], strides = [1, 1]} : vector<8x64xf32> to vector<8x32xf32>
    %cst_25 = arith.constant 0.000000e+00 : f32
    %26 = vector.broadcast %cst_25 : f32 to vector<8x32xf32>
    %27 = vector.extract_strided_slice %23 {offsets = [0, 0], sizes = [8, 8], strides = [1, 1]} : vector<8x32xf32> to vector<8x8xf32>
    %28 = arith.truncf %27 : vector<8x8xf32> to vector<8x8xbf16>
    %29 = vector.extract_strided_slice %24 {offsets = [0, 0], sizes = [8, 8], strides = [1, 1]} : vector<8x32xf32> to vector<8x8xf32>
    %30 = arith.truncf %29 : vector<8x8xf32> to vector<8x8xbf16>
    %cst_26 = arith.constant dense<0.000000e+00> : vector<8x8xf32>
    %31 = tpu.matmul %28, %30, %cst_26 {dimension_numbers = #tpu.dot_dimension_numbers<[1], [1], [0], [0], [0, 0, 1, 0], [], []>} : vector<8x8xbf16>, vector<8x8xbf16>, vector<8x8xf32> -> vector<8x8xf32>
    %cst_27 = arith.constant -1.000000e-10 : f32
    %32 = vector.shape_cast %5 : vector<1x8xi1> to vector<1x8xi1>
    %33 = vector.broadcast %32 : vector<1x8xi1> to vector<8x8xi1>
    %34 = vector.broadcast %cst_27 : f32 to vector<8x8xf32>
    %35 = arith.select %33, %34, %31 : vector<8x8xi1>, vector<8x8xf32>
    %cst_28 = arith.constant dense<0xFF800000> : vector<8xf32>
    %36 = vector.multi_reduction <maximumf>, %35, %cst_28 [1] : vector<8x8xf32> to vector<8xf32>
    %37 = vector.shape_cast %36 : vector<8xf32> to vector<8x1xf32>
    %38 = vector.broadcast %37 : vector<8x1xf32> to vector<8x8xf32>
    %39 = arith.subf %35, %38 : vector<8x8xf32>
    %40 = math.exp %39 : vector<8x8xf32>
    %cst_29 = arith.constant dense<0.000000e+00> : vector<8xf32>
    %41 = vector.multi_reduction <add>, %40, %cst_29 [1] : vector<8x8xf32> to vector<8xf32>
    %42 = vector.shape_cast %41 : vector<8xf32> to vector<8x1xf32>
    %43 = tpu.reciprocal %42 {approx = true} : vector<8x1xf32> -> vector<8x1xf32>
    %44 = vector.broadcast %43 : vector<8x1xf32> to vector<8x8xf32>
    %45 = arith.mulf %40, %44 : vector<8x8xf32>
    %46 = arith.truncf %45 : vector<8x8xf32> to vector<8x8xbf16>
    %47 = vector.extract_strided_slice %25 {offsets = [0, 0], sizes = [8, 8], strides = [1, 1]} : vector<8x32xf32> to vector<8x8xf32>
    %48 = arith.truncf %47 : vector<8x8xf32> to vector<8x8xbf16>
    %cst_30 = arith.constant dense<0.000000e+00> : vector<8x8xf32>
    %49 = tpu.matmul %46, %48, %cst_30 {dimension_numbers = #tpu.dot_dimension_numbers<[1], [0], [0], [1], [0, 0, 1, 1], [], []>} : vector<8x8xbf16>, vector<8x8xbf16>, vector<8x8xf32> -> vector<8x8xf32>
    %50 = arith.truncf %49 : vector<8x8xf32> to vector<8x8xbf16>
    %51 = vector.extract_strided_slice %10 {offsets = [0, 0, 0], sizes = [1, 8, 32], strides = [1, 1, 1]} : vector<4x8x32xbf16> to vector<1x8x32xbf16>
    %52 = vector.shape_cast %51 : vector<1x8x32xbf16> to vector<8x32xbf16>
    %cst_31 = arith.constant dense<0.000000e+00> : vector<8x32xf32>
    %53 = tpu.matmul %50, %52, %cst_31 {dimension_numbers = #tpu.dot_dimension_numbers<[1], [0], [0], [1], [0, 0, 1, 1], [], []>} : vector<8x8xbf16>, vector<8x32xbf16>, vector<8x32xf32> -> vector<8x32xf32>
    %54 = arith.addf %26, %53 : vector<8x32xf32>
    %55 = vector.extract_strided_slice %23 {offsets = [0, 8], sizes = [8, 8], strides = [1, 1]} : vector<8x32xf32> to vector<8x8xf32>
    %56 = arith.truncf %55 : vector<8x8xf32> to vector<8x8xbf16>
    %57 = vector.extract_strided_slice %24 {offsets = [0, 8], sizes = [8, 8], strides = [1, 1]} : vector<8x32xf32> to vector<8x8xf32>
    %58 = arith.truncf %57 : vector<8x8xf32> to vector<8x8xbf16>
    %cst_32 = arith.constant dense<0.000000e+00> : vector<8x8xf32>
    %59 = tpu.matmul %56, %58, %cst_32 {dimension_numbers = #tpu.dot_dimension_numbers<[1], [1], [0], [0], [0, 0, 1, 0], [], []>} : vector<8x8xbf16>, vector<8x8xbf16>, vector<8x8xf32> -> vector<8x8xf32>
    %cst_33 = arith.constant -1.000000e-10 : f32
    %60 = vector.shape_cast %5 : vector<1x8xi1> to vector<1x8xi1>
    %61 = vector.broadcast %60 : vector<1x8xi1> to vector<8x8xi1>
    %62 = vector.broadcast %cst_33 : f32 to vector<8x8xf32>
    %63 = arith.select %61, %62, %59 : vector<8x8xi1>, vector<8x8xf32>
    %cst_34 = arith.constant dense<0xFF800000> : vector<8xf32>
    %64 = vector.multi_reduction <maximumf>, %63, %cst_34 [1] : vector<8x8xf32> to vector<8xf32>
    %65 = vector.shape_cast %64 : vector<8xf32> to vector<8x1xf32>
    %66 = vector.broadcast %65 : vector<8x1xf32> to vector<8x8xf32>
    %67 = arith.subf %63, %66 : vector<8x8xf32>
    %68 = math.exp %67 : vector<8x8xf32>
    %cst_35 = arith.constant dense<0.000000e+00> : vector<8xf32>
    %69 = vector.multi_reduction <add>, %68, %cst_35 [1] : vector<8x8xf32> to vector<8xf32>
    %70 = vector.shape_cast %69 : vector<8xf32> to vector<8x1xf32>
    %71 = tpu.reciprocal %70 {approx = true} : vector<8x1xf32> -> vector<8x1xf32>
    %72 = vector.broadcast %71 : vector<8x1xf32> to vector<8x8xf32>
    %73 = arith.mulf %68, %72 : vector<8x8xf32>
    %74 = arith.truncf %73 : vector<8x8xf32> to vector<8x8xbf16>
    %75 = vector.extract_strided_slice %25 {offsets = [0, 8], sizes = [8, 8], strides = [1, 1]} : vector<8x32xf32> to vector<8x8xf32>
    %76 = arith.truncf %75 : vector<8x8xf32> to vector<8x8xbf16>
    %cst_36 = arith.constant dense<0.000000e+00> : vector<8x8xf32>
    %77 = tpu.matmul %74, %76, %cst_36 {dimension_numbers = #tpu.dot_dimension_numbers<[1], [0], [0], [1], [0, 0, 1, 1], [], []>} : vector<8x8xbf16>, vector<8x8xbf16>, vector<8x8xf32> -> vector<8x8xf32>
    %78 = arith.truncf %77 : vector<8x8xf32> to vector<8x8xbf16>
    %79 = vector.extract_strided_slice %10 {offsets = [1, 0, 0], sizes = [1, 8, 32], strides = [1, 1, 1]} : vector<4x8x32xbf16> to vector<1x8x32xbf16>
    %80 = vector.shape_cast %79 : vector<1x8x32xbf16> to vector<8x32xbf16>
    %cst_37 = arith.constant dense<0.000000e+00> : vector<8x32xf32>
    %81 = tpu.matmul %78, %80, %cst_37 {dimension_numbers = #tpu.dot_dimension_numbers<[1], [0], [0], [1], [0, 0, 1, 1], [], []>} : vector<8x8xbf16>, vector<8x32xbf16>, vector<8x32xf32> -> vector<8x32xf32>
    %82 = arith.addf %54, %81 : vector<8x32xf32>
    %83 = vector.extract_strided_slice %23 {offsets = [0, 16], sizes = [8, 8], strides = [1, 1]} : vector<8x32xf32> to vector<8x8xf32>
    %84 = arith.truncf %83 : vector<8x8xf32> to vector<8x8xbf16>
    %85 = vector.extract_strided_slice %24 {offsets = [0, 16], sizes = [8, 8], strides = [1, 1]} : vector<8x32xf32> to vector<8x8xf32>
    %86 = arith.truncf %85 : vector<8x8xf32> to vector<8x8xbf16>
    %cst_38 = arith.constant dense<0.000000e+00> : vector<8x8xf32>
    %87 = tpu.matmul %84, %86, %cst_38 {dimension_numbers = #tpu.dot_dimension_numbers<[1], [1], [0], [0], [0, 0, 1, 0], [], []>} : vector<8x8xbf16>, vector<8x8xbf16>, vector<8x8xf32> -> vector<8x8xf32>
    %cst_39 = arith.constant -1.000000e-10 : f32
    %88 = vector.shape_cast %5 : vector<1x8xi1> to vector<1x8xi1>
    %89 = vector.broadcast %88 : vector<1x8xi1> to vector<8x8xi1>
    %90 = vector.broadcast %cst_39 : f32 to vector<8x8xf32>
    %91 = arith.select %89, %90, %87 : vector<8x8xi1>, vector<8x8xf32>
    %cst_40 = arith.constant dense<0xFF800000> : vector<8xf32>
    %92 = vector.multi_reduction <maximumf>, %91, %cst_40 [1] : vector<8x8xf32> to vector<8xf32>
    %93 = vector.shape_cast %92 : vector<8xf32> to vector<8x1xf32>
    %94 = vector.broadcast %93 : vector<8x1xf32> to vector<8x8xf32>
    %95 = arith.subf %91, %94 : vector<8x8xf32>
    %96 = math.exp %95 : vector<8x8xf32>
    %cst_41 = arith.constant dense<0.000000e+00> : vector<8xf32>
    %97 = vector.multi_reduction <add>, %96, %cst_41 [1] : vector<8x8xf32> to vector<8xf32>
    %98 = vector.shape_cast %97 : vector<8xf32> to vector<8x1xf32>
    %99 = tpu.reciprocal %98 {approx = true} : vector<8x1xf32> -> vector<8x1xf32>
    %100 = vector.broadcast %99 : vector<8x1xf32> to vector<8x8xf32>
    %101 = arith.mulf %96, %100 : vector<8x8xf32>
    %102 = arith.truncf %101 : vector<8x8xf32> to vector<8x8xbf16>
    %103 = vector.extract_strided_slice %25 {offsets = [0, 16], sizes = [8, 8], strides = [1, 1]} : vector<8x32xf32> to vector<8x8xf32>
    %104 = arith.truncf %103 : vector<8x8xf32> to vector<8x8xbf16>
    %cst_42 = arith.constant dense<0.000000e+00> : vector<8x8xf32>
    %105 = tpu.matmul %102, %104, %cst_42 {dimension_numbers = #tpu.dot_dimension_numbers<[1], [0], [0], [1], [0, 0, 1, 1], [], []>} : vector<8x8xbf16>, vector<8x8xbf16>, vector<8x8xf32> -> vector<8x8xf32>
    %106 = arith.truncf %105 : vector<8x8xf32> to vector<8x8xbf16>
    %107 = vector.extract_strided_slice %10 {offsets = [2, 0, 0], sizes = [1, 8, 32], strides = [1, 1, 1]} : vector<4x8x32xbf16> to vector<1x8x32xbf16>
    %108 = vector.shape_cast %107 : vector<1x8x32xbf16> to vector<8x32xbf16>
    %cst_43 = arith.constant dense<0.000000e+00> : vector<8x32xf32>
    %109 = tpu.matmul %106, %108, %cst_43 {dimension_numbers = #tpu.dot_dimension_numbers<[1], [0], [0], [1], [0, 0, 1, 1], [], []>} : vector<8x8xbf16>, vector<8x32xbf16>, vector<8x32xf32> -> vector<8x32xf32>
    %110 = arith.addf %82, %109 : vector<8x32xf32>
    %111 = vector.extract_strided_slice %23 {offsets = [0, 24], sizes = [8, 8], strides = [1, 1]} : vector<8x32xf32> to vector<8x8xf32>
    %112 = arith.truncf %111 : vector<8x8xf32> to vector<8x8xbf16>
    %113 = vector.extract_strided_slice %24 {offsets = [0, 24], sizes = [8, 8], strides = [1, 1]} : vector<8x32xf32> to vector<8x8xf32>
    %114 = arith.truncf %113 : vector<8x8xf32> to vector<8x8xbf16>
    %cst_44 = arith.constant dense<0.000000e+00> : vector<8x8xf32>
    %115 = tpu.matmul %112, %114, %cst_44 {dimension_numbers = #tpu.dot_dimension_numbers<[1], [1], [0], [0], [0, 0, 1, 0], [], []>} : vector<8x8xbf16>, vector<8x8xbf16>, vector<8x8xf32> -> vector<8x8xf32>
    %cst_45 = arith.constant -1.000000e-10 : f32
    %116 = vector.shape_cast %5 : vector<1x8xi1> to vector<1x8xi1>
    %117 = vector.broadcast %116 : vector<1x8xi1> to vector<8x8xi1>
    %118 = vector.broadcast %cst_45 : f32 to vector<8x8xf32>
    %119 = arith.select %117, %118, %115 : vector<8x8xi1>, vector<8x8xf32>
    %cst_46 = arith.constant dense<0xFF800000> : vector<8xf32>
    %120 = vector.multi_reduction <maximumf>, %119, %cst_46 [1] : vector<8x8xf32> to vector<8xf32>
    %121 = vector.shape_cast %120 : vector<8xf32> to vector<8x1xf32>
    %122 = vector.broadcast %121 : vector<8x1xf32> to vector<8x8xf32>
    %123 = arith.subf %119, %122 : vector<8x8xf32>
    %124 = math.exp %123 : vector<8x8xf32>
    %cst_47 = arith.constant dense<0.000000e+00> : vector<8xf32>
    %125 = vector.multi_reduction <add>, %124, %cst_47 [1] : vector<8x8xf32> to vector<8xf32>
    %126 = vector.shape_cast %125 : vector<8xf32> to vector<8x1xf32>
    %127 = tpu.reciprocal %126 {approx = true} : vector<8x1xf32> -> vector<8x1xf32>
    %128 = vector.broadcast %127 : vector<8x1xf32> to vector<8x8xf32>
    %129 = arith.mulf %124, %128 : vector<8x8xf32>
    %130 = arith.truncf %129 : vector<8x8xf32> to vector<8x8xbf16>
    %131 = vector.extract_strided_slice %25 {offsets = [0, 24], sizes = [8, 8], strides = [1, 1]} : vector<8x32xf32> to vector<8x8xf32>
    %132 = arith.truncf %131 : vector<8x8xf32> to vector<8x8xbf16>
    %cst_48 = arith.constant dense<0.000000e+00> : vector<8x8xf32>
    %133 = tpu.matmul %130, %132, %cst_48 {dimension_numbers = #tpu.dot_dimension_numbers<[1], [0], [0], [1], [0, 0, 1, 1], [], []>} : vector<8x8xbf16>, vector<8x8xbf16>, vector<8x8xf32> -> vector<8x8xf32>
    %134 = arith.truncf %133 : vector<8x8xf32> to vector<8x8xbf16>
    %135 = vector.extract_strided_slice %10 {offsets = [3, 0, 0], sizes = [1, 8, 32], strides = [1, 1, 1]} : vector<4x8x32xbf16> to vector<1x8x32xbf16>
    %136 = vector.shape_cast %135 : vector<1x8x32xbf16> to vector<8x32xbf16>
    %cst_49 = arith.constant dense<0.000000e+00> : vector<8x32xf32>
    %137 = tpu.matmul %134, %136, %cst_49 {dimension_numbers = #tpu.dot_dimension_numbers<[1], [0], [0], [1], [0, 0, 1, 1], [], []>} : vector<8x8xbf16>, vector<8x32xbf16>, vector<8x32xf32> -> vector<8x32xf32>
    %138 = arith.addf %110, %137 : vector<8x32xf32>
    %139 = vector.broadcast %11 : vector<1x32xf32> to vector<8x32xf32>
    %140 = arith.addf %138, %139 : vector<8x32xf32>
    %141 = arith.addf %1, %140 : vector<8x32xf32>
    %cst_50 = arith.constant dense<0.000000e+00> : vector<8xf32>
    %142 = vector.multi_reduction <add>, %141, %cst_50 [1] : vector<8x32xf32> to vector<8xf32>
    %143 = vector.shape_cast %142 : vector<8xf32> to vector<8x1xf32>
    %cst_51 = arith.constant 3.200000e+01 : f32
    %144 = vector.broadcast %cst_51 : f32 to vector<8x1xf32>
    %145 = arith.divf %143, %144 : vector<8x1xf32>
    %146 = vector.broadcast %145 : vector<8x1xf32> to vector<8x32xf32>
    %147 = arith.subf %141, %146 : vector<8x32xf32>
    %148 = arith.mulf %147, %147 : vector<8x32xf32>
    %cst_52 = arith.constant dense<0.000000e+00> : vector<8xf32>
    %149 = vector.multi_reduction <add>, %148, %cst_52 [1] : vector<8x32xf32> to vector<8xf32>
    %150 = vector.shape_cast %149 : vector<8xf32> to vector<8x1xf32>
    %cst_53 = arith.constant 3.200000e+01 : f32
    %151 = vector.broadcast %cst_53 : f32 to vector<8x1xf32>
    %152 = arith.divf %150, %151 : vector<8x1xf32>
    %153 = vector.broadcast %145 : vector<8x1xf32> to vector<8x32xf32>
    %154 = arith.subf %141, %153 : vector<8x32xf32>
    %cst_54 = arith.constant 9.99999974E-6 : f32
    %155 = vector.broadcast %cst_54 : f32 to vector<8x1xf32>
    %156 = arith.addf %152, %155 : vector<8x1xf32>
    %157 = math.rsqrt %156 : vector<8x1xf32>
    %158 = vector.broadcast %157 : vector<8x1xf32> to vector<8x32xf32>
    %159 = arith.mulf %154, %158 : vector<8x32xf32>
    %160 = vector.broadcast %12 : vector<1x32xf32> to vector<8x32xf32>
    %161 = arith.mulf %159, %160 : vector<8x32xf32>
    %162 = vector.broadcast %13 : vector<1x32xf32> to vector<8x32xf32>
    %163 = arith.addf %161, %162 : vector<8x32xf32>
    %c0_55 = arith.constant 0 : index
    %c0_56 = arith.constant 0 : index
    %164 = vector.load %arg11[%c0_55, %c0_56] : memref<32x64xbf16, #tpu.memory_space<vmem>>, vector<32x64xbf16>
    %c0_57 = arith.constant 0 : index
    %c0_58 = arith.constant 0 : index
    %165 = vector.load %arg12[%c0_57, %c0_58] : memref<1x64xf32, #tpu.memory_space<vmem>>, vector<1x64xf32>
    %c0_59 = arith.constant 0 : index
    %c0_60 = arith.constant 0 : index
    %166 = vector.load %arg13[%c0_59, %c0_60] : memref<64x32xbf16, #tpu.memory_space<vmem>>, vector<64x32xbf16>
    %c0_61 = arith.constant 0 : index
    %c0_62 = arith.constant 0 : index
    %167 = vector.load %arg14[%c0_61, %c0_62] : memref<1x32xf32, #tpu.memory_space<vmem>>, vector<1x32xf32>
    %c0_63 = arith.constant 0 : index
    %c0_64 = arith.constant 0 : index
    %168 = vector.load %arg15[%c0_63, %c0_64] : memref<1x32xf32, #tpu.memory_space<vmem>>, vector<1x32xf32>
    %c0_65 = arith.constant 0 : index
    %c0_66 = arith.constant 0 : index
    %169 = vector.load %arg16[%c0_65, %c0_66] : memref<1x32xf32, #tpu.memory_space<vmem>>, vector<1x32xf32>
    %170 = arith.truncf %163 : vector<8x32xf32> to vector<8x32xbf16>
    %cst_67 = arith.constant dense<0.000000e+00> : vector<8x64xf32>
    %171 = tpu.matmul %170, %164, %cst_67 {dimension_numbers = #tpu.dot_dimension_numbers<[1], [0], [0], [1], [0, 0, 1, 1], [], []>} : vector<8x32xbf16>, vector<32x64xbf16>, vector<8x64xf32> -> vector<8x64xf32>
    %172 = vector.broadcast %165 : vector<1x64xf32> to vector<8x64xf32>
    %173 = arith.addf %171, %172 : vector<8x64xf32>
    %cst_68 = arith.constant 0.000000e+00 : f32
    %174 = vector.broadcast %cst_68 : f32 to vector<8x64xf32>
    %175 = arith.maximumf %173, %174 : vector<8x64xf32>
    %176 = arith.truncf %175 : vector<8x64xf32> to vector<8x64xbf16>
    %cst_69 = arith.constant dense<0.000000e+00> : vector<8x32xf32>
    %177 = tpu.matmul %176, %166, %cst_69 {dimension_numbers = #tpu.dot_dimension_numbers<[1], [0], [0], [1], [0, 0, 1, 1], [], []>} : vector<8x64xbf16>, vector<64x32xbf16>, vector<8x32xf32> -> vector<8x32xf32>
    %178 = vector.broadcast %167 : vector<1x32xf32> to vector<8x32xf32>
    %179 = arith.addf %177, %178 : vector<8x32xf32>
    %180 = arith.addf %163, %179 : vector<8x32xf32>
    %cst_70 = arith.constant dense<0.000000e+00> : vector<8xf32>
    %181 = vector.multi_reduction <add>, %180, %cst_70 [1] : vector<8x32xf32> to vector<8xf32>
    %182 = vector.shape_cast %181 : vector<8xf32> to vector<8x1xf32>
    %cst_71 = arith.constant 3.200000e+01 : f32
    %183 = vector.broadcast %cst_71 : f32 to vector<8x1xf32>
    %184 = arith.divf %182, %183 : vector<8x1xf32>
    %185 = vector.broadcast %184 : vector<8x1xf32> to vector<8x32xf32>
    %186 = arith.subf %180, %185 : vector<8x32xf32>
    %187 = arith.mulf %186, %186 : vector<8x32xf32>
    %cst_72 = arith.constant dense<0.000000e+00> : vector<8xf32>
    %188 = vector.multi_reduction <add>, %187, %cst_72 [1] : vector<8x32xf32> to vector<8xf32>
    %189 = vector.shape_cast %188 : vector<8xf32> to vector<8x1xf32>
    %cst_73 = arith.constant 3.200000e+01 : f32
    %190 = vector.broadcast %cst_73 : f32 to vector<8x1xf32>
    %191 = arith.divf %189, %190 : vector<8x1xf32>
    %192 = vector.broadcast %184 : vector<8x1xf32> to vector<8x32xf32>
    %193 = arith.subf %180, %192 : vector<8x32xf32>
    %cst_74 = arith.constant 9.99999974E-6 : f32
    %194 = vector.broadcast %cst_74 : f32 to vector<8x1xf32>
    %195 = arith.addf %191, %194 : vector<8x1xf32>
    %196 = math.rsqrt %195 : vector<8x1xf32>
    %197 = vector.broadcast %196 : vector<8x1xf32> to vector<8x32xf32>
    %198 = arith.mulf %193, %197 : vector<8x32xf32>
    %199 = vector.broadcast %168 : vector<1x32xf32> to vector<8x32xf32>
    %200 = arith.mulf %198, %199 : vector<8x32xf32>
    %201 = vector.broadcast %169 : vector<1x32xf32> to vector<8x32xf32>
    %202 = arith.addf %200, %201 : vector<8x32xf32>
    %c0_75 = arith.constant 0 : index
    %c0_76 = arith.constant 0 : index
    %c0_77 = arith.constant 0 : index
    %203 = vector.load %arg17[%c0_75, %c0_76, %c0_77] : memref<1x8x32xf32, #tpu.memory_space<vmem>>, vector<1x8x32xf32>
    %204 = vector.shape_cast %203 : vector<1x8x32xf32> to vector<8x32xf32>
    %205 = vector.shape_cast %202 : vector<8x32xf32> to vector<1x8x32xf32>
    tpu.vector_store %arg17[%c0_75, %c0_76, %c0_77], %205 {strides = array<i32>} : memref<1x8x32xf32, #tpu.memory_space<vmem>>, vector<1x8x32xf32>,
    return
  }
  func.func @transform_0(%arg0: i32) -> (i32, i32, i32) {
    %c0_i32 = arith.constant 0 : i32
    %c0_i32_0 = arith.constant 0 : i32
    %c0_i32_1 = arith.constant 0 : i32
    return %arg0, %c0_i32, %c0_i32_0 : i32, i32, i32
  }
  func.func @transform_1(%arg0: i32) -> (i32, i32, i32, i32) {
    %c0_i32 = arith.constant 0 : i32
    %c0_i32_0 = arith.constant 0 : i32
    %c0_i32_1 = arith.constant 0 : i32
    %c0_i32_2 = arith.constant 0 : i32
    return %arg0, %c0_i32, %c0_i32_0, %c0_i32_1 : i32, i32, i32, i32
  }
  func.func @transform_2(%arg0: i32) -> (i32, i32) {
    %c0_i32 = arith.constant 0 : i32
    %c0_i32_0 = arith.constant 0 : i32
    %c0_i32_1 = arith.constant 0 : i32
    return %c0_i32, %c0_i32_0 : i32, i32
  }
  func.func @transform_3(%arg0: i32) -> (i32, i32) {
    %c0_i32 = arith.constant 0 : i32
    %c0_i32_0 = arith.constant 0 : i32
    %c0_i32_1 = arith.constant 0 : i32
    return %c0_i32, %c0_i32_0 : i32, i32
  }
  func.func @transform_4(%arg0: i32) -> (i32, i32) {
    %c0_i32 = arith.constant 0 : i32
    %c0_i32_0 = arith.constant 0 : i32
    %c0_i32_1 = arith.constant 0 : i32
    return %c0_i32, %c0_i32_0 : i32, i32
  }
  func.func @transform_5(%arg0: i32) -> (i32, i32) {
    %c0_i32 = arith.constant 0 : i32
    %c0_i32_0 = arith.constant 0 : i32
    %c0_i32_1 = arith.constant 0 : i32
    return %c0_i32, %c0_i32_0 : i32, i32
  }
  func.func @transform_6(%arg0: i32) -> (i32, i32, i32) {
    %c0_i32 = arith.constant 0 : i32
    %c0_i32_0 = arith.constant 0 : i32
    %c0_i32_1 = arith.constant 0 : i32
    %c0_i32_2 = arith.constant 0 : i32
    return %c0_i32, %c0_i32_0, %c0_i32_1 : i32, i32, i32
  }
  func.func @transform_7(%arg0: i32) -> (i32, i32) {
    %c0_i32 = arith.constant 0 : i32
    %c0_i32_0 = arith.constant 0 : i32
    %c0_i32_1 = arith.constant 0 : i32
    return %c0_i32, %c0_i32_0 : i32, i32
  }
  func.func @transform_8(%arg0: i32) -> (i32, i32) {
    %c0_i32 = arith.constant 0 : i32
    %c0_i32_0 = arith.constant 0 : i32
    %c0_i32_1 = arith.constant 0 : i32
    return %c0_i32, %c0_i32_0 : i32, i32
  }
  func.func @transform_9(%arg0: i32) -> (i32, i32) {
    %c0_i32 = arith.constant 0 : i32
    %c0_i32_0 = arith.constant 0 : i32
    %c0_i32_1 = arith.constant 0 : i32
    return %c0_i32, %c0_i32_0 : i32, i32
  }
  func.func @transform_10(%arg0: i32) -> (i32, i32) {
    %c0_i32 = arith.constant 0 : i32
    %c0_i32_0 = arith.constant 0 : i32
    %c0_i32_1 = arith.constant 0 : i32
    return %c0_i32, %c0_i32_0 : i32, i32
  }
  func.func @transform_11(%arg0: i32) -> (i32, i32) {
    %c0_i32 = arith.constant 0 : i32
    %c0_i32_0 = arith.constant 0 : i32
    %c0_i32_1 = arith.constant 0 : i32
    return %c0_i32, %c0_i32_0 : i32, i32
  }
  func.func @transform_12(%arg0: i32) -> (i32, i32) {
    %c0_i32 = arith.constant 0 : i32
    %c0_i32_0 = arith.constant 0 : i32
    %c0_i32_1 = arith.constant 0 : i32
    return %c0_i32, %c0_i32_0 : i32, i32
  }
  func.func @transform_13(%arg0: i32) -> (i32, i32) {
    %c0_i32 = arith.constant 0 : i32
    %c0_i32_0 = arith.constant 0 : i32
    %c0_i32_1 = arith.constant 0 : i32
    return %c0_i32, %c0_i32_0 : i32, i32
  }
  func.func @transform_14(%arg0: i32) -> (i32, i32) {
    %c0_i32 = arith.constant 0 : i32
    %c0_i32_0 = arith.constant 0 : i32
    %c0_i32_1 = arith.constant 0 : i32
    return %c0_i32, %c0_i32_0 : i32, i32
  }
  func.func @transform_15(%arg0: i32) -> (i32, i32) {
    %c0_i32 = arith.constant 0 : i32
    %c0_i32_0 = arith.constant 0 : i32
    %c0_i32_1 = arith.constant 0 : i32
    return %c0_i32, %c0_i32_0 : i32, i32
  }
  func.func @transform_16(%arg0: i32) -> (i32, i32, i32) {
    %c0_i32 = arith.constant 0 : i32
    %c0_i32_0 = arith.constant 0 : i32
    %c0_i32_1 = arith.constant 0 : i32
    return %arg0, %c0_i32, %c0_i32_0 : i32, i32, i32
  }
}

module attributes {stable_mosaic.version = 11 : i64} {
  func.func @_linear_kernel(%arg0: i32, %arg1: memref<8x32xf32, #tpu.memory_space<vmem>>, %arg2: memref<32x128xbf16, #tpu.memory_space<vmem>>, %arg3: memref<1x128xf32, #tpu.memory_space<vmem>>, %arg4: memref<8x128xf32, #tpu.memory_space<vmem>>) attributes {dimension_semantics = [#tpu.dimension_semantics<parallel>], iteration_bounds = array<i64: 2>, scalar_prefetch = 0 : i64, scratch_operands = 0 : i64, tpu.core_type = #tpu.core_type<tc>, window_params = [{transform_indices = @transform_0, window_bounds = array<i64: 8, 32>}, {pipeline_mode = #tpu.pipeline_mode<synchronous>, transform_indices = @transform_1, window_bounds = array<i64: 32, 128>}, {pipeline_mode = #tpu.pipeline_mode<synchronous>, transform_indices = @transform_2, window_bounds = array<i64: 1, 128>}, {transform_indices = @transform_3, window_bounds = array<i64: 8, 128>}]} {
    %c0 = arith.constant 0 : index
    %c0_0 = arith.constant 0 : index
    %0 = vector.load %arg1[%c0, %c0_0] : memref<8x32xf32, #tpu.memory_space<vmem>>, vector<8x32xf32>
    %1 = arith.truncf %0 : vector<8x32xf32> to vector<8x32xbf16>
    %c0_1 = arith.constant 0 : index
    %c0_2 = arith.constant 0 : index
    %2 = vector.load %arg2[%c0_1, %c0_2] : memref<32x128xbf16, #tpu.memory_space<vmem>>, vector<32x128xbf16>
    %cst = arith.constant dense<0.000000e+00> : vector<8x128xf32>
    %3 = tpu.matmul %1, %2, %cst {dimension_numbers = #tpu.dot_dimension_numbers<[1], [0], [0], [1], [0, 0, 1, 1], [], []>} : vector<8x32xbf16>, vector<32x128xbf16>, vector<8x128xf32> -> vector<8x128xf32>
    %c0_3 = arith.constant 0 : index
    %c0_4 = arith.constant 0 : index
    %4 = vector.load %arg3[%c0_3, %c0_4] : memref<1x128xf32, #tpu.memory_space<vmem>>, vector<1x128xf32>
    %5 = vector.broadcast %4 : vector<1x128xf32> to vector<8x128xf32>
    %6 = arith.addf %3, %5 : vector<8x128xf32>
    %c0_5 = arith.constant 0 : index
    %c0_6 = arith.constant 0 : index
    %7 = vector.load %arg4[%c0_5, %c0_6] : memref<8x128xf32, #tpu.memory_space<vmem>>, vector<8x128xf32>
    tpu.vector_store %arg4[%c0_5, %c0_6], %6 {strides = array<i32>} : memref<8x128xf32, #tpu.memory_space<vmem>>, vector<8x128xf32>,
    return
  }
  func.func @transform_0(%arg0: i32) -> (i32, i32) {
    %c0_i32 = arith.constant 0 : i32
    %c0_i32_0 = arith.constant 0 : i32
    return %arg0, %c0_i32 : i32, i32
  }
  func.func @transform_1(%arg0: i32) -> (i32, i32) {
    %c0_i32 = arith.constant 0 : i32
    %c0_i32_0 = arith.constant 0 : i32
    %c0_i32_1 = arith.constant 0 : i32
    return %c0_i32, %c0_i32_0 : i32, i32
  }
  func.func @transform_2(%arg0: i32) -> (i32, i32) {
    %c0_i32 = arith.constant 0 : i32
    %c0_i32_0 = arith.constant 0 : i32
    %c0_i32_1 = arith.constant 0 : i32
    return %c0_i32, %c0_i32_0 : i32, i32
  }
  func.func @transform_3(%arg0: i32) -> (i32, i32) {
    %c0_i32 = arith.constant 0 : i32
    %c0_i32_0 = arith.constant 0 : i32
    return %arg0, %c0_i32 : i32, i32
  }
}

</mosaic_0001>

<bundles_post_ra>
// kernel: transformer_forward.5
= control target key start
LH: loop header
LB: loop body
LE: loop exit
PB: predicated region body
PF: predicated region fallthrough
CT: control target
= control target key end

     0   :  { %s356_s12 = smov 0   ;;  %s382_s0 = inlined_call_operand.vmem [shape: f32[16,32], index: 0, kind: input, shape index: {}]   ;;  %s383_s1 = inlined_call_operand.vmem [shape: bf16[32,128], index: 1, kind: input, shape index: {}]   ;;  %s384_s2 = inlined_call_operand.vmem [shape: f32[1,128], index: 2, kind: input, shape index: {}]   ;;  %s385_s3 = inlined_call_operand.vmem [shape: f32[16,128], index: 3, kind: output, shape index: {}]  }
   0x1 LB: > { %s290_s13 = sadd.s32 4294967295, %s332_s12   ;;  %p294_p0 = scmp.ge.s32.totalorder %s332_s12, 1  ;;  %s332_s12 = sphi %s356_s12, %s13_s12  }
   0x2   : > { %p136_p1 = scmp.lt.s32.totalorder %s332_s12, 3 }
   0x4   : > { %p137_p2 = pnand %p294_p0, %p136_p1 }
   0x5   : > { %v324_v0 = vld [vmem:[%s383_s1] sm:$0xff] (!%p137_p2)   ;;  %v334_v1 = vmov (!%p137_p2), 0.0   ;;  %v325_v2 = vld [vmem:[%s383_s1 + $0x8] sm:$0xff] (!%p137_p2)   ;;  %vm335_vm0 = vmmov (!%p137_p2), 0   ;;  %p158_p3 = scmp.lt.s32.totalorder (!%p137_p2), %s290_s13, 1  ;;  %vm192_vm1 = vcmask (!%p137_p2), 261120  }
   0x6   : > { %140 = sbr.rel (%p137_p2) target bundleno = 234 (0xea), region = 32  ;;  %306 = vmatprep.subr.bf16.mxu0 (!%p137_p2), %v334_v1  ;;  %310 = vmatprep.mubr.msk.bf16.mxu0 (!%p137_p2), %vm335_vm0, %v334_v1  ;;  %v297_v5 = vld [vmem:[%s384_s2] ss:$0 sm:$0xff] (!%p137_p2) }
   0x7   : > { %307 = vmatpush3.bf16.msra.mxu0 (!%p137_p2), %v324_v0 }
   0x8   : > { %308 = vmatprep.subr.bf16.mxu0 (!%p137_p2), %v334_v1 }
   0xb   : > { %309 = vmatpush3.bf16.msra.mxu0 (!%p137_p2), %v325_v2 }
   0xd   : > { %s387_s13 = smov (!%p158_p3, %s290_s13), 1 }
   0xe   : > { %s295_s18 = sshll.u32 %s387_s13, 3 }
   0xf   : > { %s161_s21 = scalar_lea.vmem %s382_s0, %s295_s18  ;;  %s165_s26 = scalar_lea.vmem %s385_s3, %s295_s18 }
  0x10   : > { %v167_v3 = vld [vmem:[%s161_s21] sm:$0xff] }
  0x11   : > { %v168_v4 = vpack.c.bf16 %v167_v3, %v167_v3 }
  0x13   : > { %311 = vmatmul.mubr.msk.bf16.vlgmr.msra.gmra.mrb[0].mxu0 %vm192_vm1, %v168_v4 }
  0xe6   : > { %v230_v6 = vpop.f32.mrb[0].mxu0 }
  0xe7   : > { %v231_v7 = vadd.f32 %v297_v5, %v230_v6  ;;  %v312_v8 = vpop.f32.mrb[1].mxu0 }
  0xe8   : > { %v233_v9 = vpop.f32.mrb[2].mxu0 }
  0xe9   : > { %236 = vst [vmem:[%s165_s26] sm:$0xff] %v231_v7  ;;  %v313_v10 = vpop.f32.mrb[3].mxu0 }
  0xea PF: > { %s13_s12 = sadd.s32 1, %s332_s12  }
  0xeb   : > { %p10_p4 = scmp.ge.s32.totalorder %s13_s12, 4  }
  0xed   :  { %12 = sbr.rel (!%p10_p4) target bundleno = 1 (0x1), region = 62 }

// kernel: transformer_forward.3
= control target key start
LH: loop header
LB: loop body
LE: loop exit
PB: predicated region body
PF: predicated region fallthrough
CT: control target
= control target key end

     0   :  { %s1938_s21 = smov 0   ;;  %s2164_s0 = inlined_call_operand.vmem [shape: f32[2,8,32], index: 0, kind: input, shape index: {}]   ;;  %s2165_s1 = inlined_call_operand.vmem [shape: s32[2,1,1,8], index: 1, kind: input, shape index: {}]   ;;  %s2166_s2 = inlined_call_operand.vmem [shape: bf16[32,32], index: 2, kind: input, shape index: {}]   ;;  %s2167_s3 = inlined_call_operand.vmem [shape: f32[1,32], index: 3, kind: input, shape index: {}]   ;;  %s2168_s4 = inlined_call_operand.vmem [shape: bf16[32,64], index: 4, kind: input, shape index: {}]   ;;  %s2169_s5 = inlined_call_operand.vmem [shape: f32[1,64], index: 5, kind: input, shape index: {}]   ;;  %s2170_s6 = inlined_call_operand.vmem [shape: bf16[4,8,32], index: 6, kind: input, shape index: {}]   ;;  %s2171_s7 = inlined_call_operand.vmem [shape: f32[1,32], index: 7, kind: input, shape index: {}]   ;;  %s2172_s8 = inlined_call_operand.vmem [shape: f32[1,32], index: 8, kind: input, shape index: {}]   ;;  %s2173_s9 = inlined_call_operand.vmem [shape: f32[1,32], index: 9, kind: input, shape index: {}]   ;;  %s2174_s10 = inlined_call_operand.vmem [shape: bf16[32,64], index: 10, kind: input, shape index: {}]   ;;  %s2175_s11 = inlined_call_operand.vmem [shape: f32[1,64], index: 11, kind: input, shape index: {}]   ;;  %s2176_s12 = inlined_call_operand.vmem [shape: bf16[64,32], index: 12, kind: input, shape index: {}]   ;;  %s2177_s13 = inlined_call_operand.vmem [shape: f32[1,32], index: 13, kind: input, shape index: {}]   ;;  %s2178_s14 = inlined_call_operand.vmem [shape: f32[1,32], index: 14, kind: input, shape index: {}]   ;;  %s2179_s15 = inlined_call_operand.vmem [shape: f32[1,32], index: 15, kind: input, shape index: {}]   ;;  %s2180_s16 = inlined_call_operand.vmem [shape: f32[2,8,32], index: 16, kind: output, shape index: {}]  }
   0x1   :  { %2181 = sst [smem:[#allocation2_spill]] %s2164_s0 }
   0x2 LB: > { %s1597_s22 = sadd.s32 4294967295, %s1841_s21   ;;  %p1601_p0 = scmp.ge.s32.totalorder %s1841_s21, 1  ;;  %s1841_s21 = sphi %s1938_s21, %s26_s21  }
   0x3   : > { %p469_p1 = scmp.lt.s32.totalorder %s1841_s21, 3 }
   0x5   : > { %p470_p2 = pnand %p1601_p0, %p469_p1 }
   0x6   : > { %v1805_v0 = vld [vmem:[%s2168_s4] sm:$0xff] (!%p470_p2)   ;;  %v1843_v1 = vmov (!%p470_p2), 0.0   ;;  %v1807_v3 = vld [vmem:[%s2168_s4 + $0x8] sm:$0xff] (!%p470_p2)   ;;  %vm1844_vm0 = vmmov (!%p470_p2), 0   ;;  %p520_p3 = scmp.lt.s32.totalorder (!%p470_p2), %s1597_s22, 1  ;;  %s2182_s19 = sld [smem:[#allocation2_spill]] (!%p470_p2)  ;;  %v724_v26 = vlaneseq (!%p470_p2) }
   0x7   : > { %473 = sbr.rel (%p470_p2) target bundleno = 3671 (0xe57), region = 84  ;;  %1687 = vmatprep.subr.bf16.mxu1 (!%p470_p2), %v1843_v1  ;;  %1679 = vmatprep.subr.bf16.mxu0 (!%p470_p2), %v1843_v1  ;;  %v1806_v2 = vld [vmem:[%s2166_s2] sm:$0xff] (!%p470_p2)   ;;  %v1808_v4 = vld [vmem:[%s2166_s2 + $0x8] sm:$0xff] (!%p470_p2)   ;;  %vm571_vm1 = vcmask (!%p470_p2), 261120   ;;  %vm676_vm2 = vcmask (!%p470_p2), 64512   ;;  %s1845_s27 = smov (!%p470_p2), 120  }
   0x8   : > { %1688 = vmatpush3.bf16.msra.mxu1 (!%p470_p2), %v1805_v0  ;;  %1691 = vmatprep.mubr.msk.bf16.mxu1 (!%p470_p2), %vm1844_vm0, %v1843_v1  ;;  %v1608_v7 = vld [vmem:[%s2169_s5] ss:$0 sm:$0xff] (!%p470_p2)  ;;  %v725_v28 = vshrl.u32 (!%p470_p2), %v724_v26, 7  ;;  %v1846_v30 = vmov (!%p470_p2), 0   ;;  %s1847_s17 = smov (!%p470_p2), 96   ;;  %vm748_vm5 = vcmask (!%p470_p2), 1043456  }
   0x9   : > { %1689 = vmatprep.subr.bf16.mxu1 (!%p470_p2), %v1843_v1  ;;  %1680 = vmatpush3.bf16.msra.mxu0 (!%p470_p2), %v1806_v2  ;;  %v1604_v8 = vld [vmem:[%s2167_s3] ss:$0 sm:$0xff] (!%p470_p2)  ;;  %s1848_s18 = smov (!%p470_p2), 88   ;;  %v546_v61 = vld [vmem:[%s2170_s6 + $0x4] sm:$0xf] (!%p470_p2)  ;;  %s1850_s26 = smov (!%p470_p2), 80  }
   0xa   : > { %1681 = vmatprep.subr.bf16.mxu0 (!%p470_p2), %v1843_v1  ;;  %1683 = vmatprep.mubr.msk.bf16.mxu0 (!%p470_p2), %vm1844_vm0, %v1843_v1  ;;  %v726_v29 = vsub.s32 (!%p470_p2), 0, %v725_v28  ;;  %v910_v62 = vsel (!%p470_p2), %vm748_vm5, %v546_v61, 0  ;;  %vm1462_vm6 = vcmask (!%p470_p2), 523264  }
   0xc   : > { %1690 = vmatpush3.bf16.msra.mxu1 (!%p470_p2), %v1807_v3 }
   0xd   : > { %1682 = vmatpush3.bf16.msra.mxu0 (!%p470_p2), %v1808_v4  ;;  %1701 = vmatprep.subr.bf16.mxu1 (!%p470_p2), %v1843_v1  ;;  %v545_v4 = vld [vmem:[%s2170_s6] sm:$0xf] (!%p470_p2) }
   0xe   : > { %s2184_s22 = smov (!%p520_p3, %s1597_s22), 1  ;;  %1695 = vmatprep.subr.bf16.mxu0 %v1843_v1 }
   0xf   : > { %s1602_s0 = sshll.u32 %s2184_s22, 3  ;;  %s526_s30 = scalar_lea.vmem %s2165_s1, %s2184_s22 }
  0x10   : > { %s523_s20 = scalar_lea.vmem %s2182_s19, %s1602_s0  ;;  %v533_v27 = vld [vmem:[%s526_s30] sm:$0x1]  ;;  %s1849_s19 = smov 112  }
  0x11   : > { %v1975_v5 = vld [vmem:[%s523_s20] sm:$0xff]  ;;  %vm534_vm3 = vcmp.eq.s32.totalorder %v533_v27, 0  ;;  %s1852_s30 = smov 72   ;;  %s530_s25 = scalar_lea.vmem %s2180_s16, %s1602_s0 }
  0x12   : > { %v552_v6 = vpack.c.bf16 %v1975_v5, %v1975_v5  ;;  %v723_v31 = vsel %vm534_vm3, 1, %v1846_v30 }
  0x13   : > { %v2014_v32 = vrot.slane %v723_v31, %v726_v29 }
  0x14   : > { %1692 = vmatmul.mubr.msk.bf16.vlgmr.msra.gmra.mrb[0].mxu1 %vm571_vm1, %v552_v6  ;;  %1684 = vmatmul.mubr.msk.bf16.vlgmr.msra.gmra.mrb[0].mxu0 %vm571_vm1, %v552_v6 }
  0x15   : > { %1697 = vmatprep.mubr.msk.bf16.mxu0 %vm1844_vm0, %v1843_v1  ;;  %1703 = vmatprep.mubr.msk.bf16.mxu1 %vm1844_vm0, %v1843_v1  ;;  %vm728_vm4 = vcmp.eq.s32.totalorder %v2014_v32, 1  ;;  %v548_v32 = vld [vmem:[%s2170_s6 + $0xc] sm:$0xf] }
  0xe7   : > { %v667_v9 = vpop.f32.mrb[0].mxu1  ;;  %v609_v10 = vpop.f32.mrb[0].mxu0 }
  0xe8   : > { %v668_v11 = vadd.f32 %v1608_v7, %v667_v9  ;;  %v1693_v12 = vpop.f32.mrb[1].mxu1  ;;  %v610_v13 = vadd.f32 %v1604_v8, %v609_v10  ;;  %v1685_v14 = vpop.f32.mrb[1].mxu0  ;;  %v956_v8 = vsel %vm748_vm5, %v545_v4, 0 }
  0xe9   : > { %v670_v15 = vpop.f32.mrb[2].mxu1  ;;  %v612_v16 = vpop.f32.mrb[2].mxu0 }
  0xea   : > { %v1992_v17 = vpack.c.bf16 %v668_v11, %v668_v11  ;;  %v1694_v18 = vpop.f32.mrb[3].mxu1  ;;  %v673_v19 = vmul.f32 0.17677669, %v610_v13  ;;  %v1686_v20 = vpop.f32.mrb[3].mxu0 }
  0xec   : > { %v1994_v21 = vpack.c.bf16 %v673_v19, %v673_v19  ;;  %796 = vrot.lane.b32.xlu0 %v1992_v17, %s1845_s27  ;;  %v681_v22 = vsel %vm676_vm2, %v1992_v17, 0 }
  0xed   : > { %1696 = vmatpush3.bf16.xpose.msra.mxu0 %v681_v22 }
  0xee   : > { %1707 = vmatprep.subr.bf16.mxu0 %v1843_v1 }
  0xf0   : > { %794 = vrot.lane.b32.xlu0 %v1994_v21, %s1845_s27  ;;  %s1851_s27 = smov 104  }
  0xf4   : > { %1698 = vmatmul.mubr.msk.bf16.vlgmr.msra.gmra.mrb[4].mxu0 %vm676_vm2, %v1994_v21 }
  0xf5   : > { %1709 = vmatprep.mubr.msk.bf16.mxu0 %vm1844_vm0, %v1843_v1 }
 0x15e   : > { %v797_v23 = vpop.permute.xlu0 %796 }
 0x15f   : > { %v802_v24 = vsel %vm676_vm2, %v797_v23, 0 }
 0x160   : > { %1708 = vmatpush3.bf16.xpose.msra.mxu0 %v802_v24 }
 0x161   : > { %1719 = vmatprep.subr.bf16.mxu0 %v1843_v1 }
 0x162   : > { %v795_v25 = vpop.permute.xlu0 %794 }
 0x167   : > { %1710 = vmatmul.mubr.msk.bf16.vlgmr.msra.gmra.mrb[8].mxu0 %vm676_vm2, %v795_v25 }
 0x168   : > { %1721 = vmatprep.mubr.msk.bf16.mxu0 %vm1844_vm0, %v1843_v1  ;;  %1720 = vmatpush3.bf16.msra.mxu0 %v910_v62 }
 0x169   : > { %1731 = vmatprep.subr.bf16.mxu0 %v1843_v1 }
 0x1c7   : > { %v717_v33 = vpop.f32.mrb[4].mxu0 }
 0x1c8   : > { %v729_v34 = vsel %vm728_vm4, -1e-10, %v717_v33  ;;  %v1699_v35 = vpop.f32.mrb[5].mxu0 }
 0x1c9   : > { %v720_v36 = vpop.f32.mrb[6].mxu0  ;;  %v730_v37 = vsel %vm676_vm2, %v729_v34, -inf }
 0x1ca   : > { %731 = vmax.xlane.f32.xlu1 %v730_v37  ;;  %v1700_v38 = vpop.f32.mrb[7].mxu0 }
 0x23a   : > { %v838_v39 = vpop.f32.mrb[8].mxu0 }
 0x23b   : > { %v844_v40 = vsel %vm728_vm4, -1e-10, %v838_v39  ;;  %v1711_v41 = vpop.f32.mrb[9].mxu0 }
 0x23c   : > { %v841_v42 = vpop.f32.mrb[10].mxu0  ;;  %v845_v43 = vsel %vm676_vm2, %v844_v40, -inf }
 0x23d   : > { %846 = vmax.xlane.f32.xlu1 %v845_v43  ;;  %v1712_v44 = vpop.f32.mrb[11].mxu0 }
 0x24e   : > { %743 = vrot.lane.b32.xlu1 %v1992_v17, %s1847_s17 }
 0x257   : > { %v732_v45 = vpop.xlane.xlu1 %731 }
 0x258   : > { %v733_v46 = vsub.f32 %v729_v34, %v732_v45 }
 0x25a   : > { %v734_v47 = vmul.f32 1.442695, %v733_v46 }
 0x25c   : > { %1815 = vpow2.f32 %v734_v47 }
 0x266   : > { %v1816_v48 = vpop.eup %1815 }
 0x267   : > { %v736_v49 = vsel %vm676_vm2, %v1816_v48, 0.0 }
 0x268   : > { %737 = vadd.xlane.f32.xlu0 %v736_v49 }
 0x2ca   : > { %v847_v50 = vpop.xlane.xlu1 %846 }
 0x2cb   : > { %v848_v51 = vsub.f32 %v844_v40, %v847_v50 }
 0x2cd   : > { %v849_v52 = vmul.f32 1.442695, %v848_v51 }
 0x2ce   : > { %v744_v53 = vpop.permute.xlu1 %743 }
 0x2cf   : > { %1817 = vpow2.f32 %v849_v52  ;;  %v750_v54 = vsel %vm748_vm5, %v744_v53, 0  ;;  %v547_v53 = vld [vmem:[%s2170_s6 + $0x8] sm:$0xf] }
 0x2d0   : > { %1702 = vmatpush3.bf16.msra.mxu1 %v750_v54  ;;  %v1114_v54 = vsel %vm748_vm5, %v547_v53, 0 }
 0x2d1   : > { %1713 = vmatprep.subr.bf16.mxu1 %v1843_v1 }
 0x2d9   : > { %v1818_v55 = vpop.eup %1817 }
 0x2da   : > { %v851_v56 = vsel %vm676_vm2, %v1818_v55, 0.0 }
 0x2db   : > { %852 = vadd.xlane.f32.xlu1 %v851_v56 }
 0x2ec   : > { %857 = vrot.lane.b32.xlu1 %v1992_v17, %s1848_s18 }
 0x2f0   : > { %1000 = vrot.lane.b32.xlu1 %v1992_v17, %s1849_s19 }
 0x2f4   : > { %998 = vrot.lane.b32.xlu1 %v1994_v21, %s1849_s19 }
 0x2f5   : > { %v738_v57 = vpop.xlane.xlu0 %737 }
 0x2f6   : > { %1819 = vrcp.f32 %v738_v57 }
 0x300   : > { %v1820_v58 = vpop.eup %1819 }
 0x301   : > { %v740_v59 = vmul.f32 %v1820_v58, %v1816_v48 }
 0x303   : > { %v741_v60 = vpack.c.bf16 %v740_v59, %v740_v59 }
 0x305   : > { %1704 = vmatmul.mubr.msk.bf16.vlgmr.msra.gmra.mrb[4].mxu1 %vm676_vm2, %v741_v60 }
 0x306   : > { %1715 = vmatprep.mubr.msk.bf16.mxu1 %vm1844_vm0, %v1843_v1 }
 0x368   : > { %v853_v63 = vpop.xlane.xlu1 %852 }
 0x369   : > { %1821 = vrcp.f32 %v853_v63 }
 0x36c   : > { %v858_v0 = vpop.permute.xlu1 %857 }
 0x36d   : > { %v863_v2 = vsel %vm748_vm5, %v858_v0, 0 }
 0x36e   : > { %1714 = vmatpush3.bf16.msra.mxu1 %v863_v2 }
 0x36f   : > { %1725 = vmatprep.subr.bf16.mxu1 %v1843_v1 }
 0x370   : > { %v1001_v14 = vpop.permute.xlu1 %1000 }
 0x371   : > { %v1006_v20 = vsel %vm676_vm2, %v1001_v14, 0 }
 0x373   : > { %v1822_v3 = vpop.eup %1821 }
 0x374   : > { %v855_v6 = vmul.f32 %v1822_v3, %v1818_v55  ;;  %v999_v23 = vpop.permute.xlu1 %998 }
 0x376   : > { %v856_v7 = vpack.c.bf16 %v855_v6, %v855_v6 }
 0x378   : > { %1716 = vmatmul.mubr.msk.bf16.vlgmr.msra.gmra.mrb[8].mxu1 %vm676_vm2, %v856_v7 }
 0x379   : > { %1726 = vmatpush3.bf16.msra.mxu1 %v956_v8  ;;  %1727 = vmatprep.mubr.msk.bf16.mxu1 %vm1844_vm0, %v1843_v1 }
 0x37a   : > { %1737 = vmatprep.subr.bf16.mxu1 %v1843_v1 }
 0x3d8   : > { %v786_v9 = vpop.f32.mrb[4].mxu1 }
 0x3d9   : > { %v792_v10 = vpack.c.bf16 %v786_v9, %v786_v9  ;;  %v1705_v11 = vpop.f32.mrb[5].mxu1  ;;  %v1273_v9 = vsel %vm748_vm5, %v548_v32, 0 }
 0x3da   : > { %v789_v12 = vpop.f32.mrb[6].mxu1 }
 0x3db   : > { %v1706_v13 = vpop.f32.mrb[7].mxu1  ;;  %1728 = vmatmul.mubr.msk.bf16.vlgmr.msra.gmra.mrb[12].mxu1 %vm676_vm2, %v792_v10 }
 0x3dc   : > { %1739 = vmatprep.mubr.msk.bf16.mxu1 %vm1844_vm0, %v1843_v1 }
 0x44b   : > { %v899_v15 = vpop.f32.mrb[8].mxu1 }
 0x44c   : > { %v905_v16 = vpack.c.bf16 %v899_v15, %v899_v15  ;;  %v1717_v18 = vpop.f32.mrb[9].mxu1 }
 0x44d   : > { %v902_v19 = vpop.f32.mrb[10].mxu1 }
 0x44e   : > { %v1718_v22 = vpop.f32.mrb[11].mxu1  ;;  %1722 = vmatmul.mubr.msk.bf16.vlgmr.msra.gmra.mrb[12].mxu0 %vm676_vm2, %v905_v16 }
 0x44f   : > { %1732 = vmatpush3.bf16.xpose.msra.mxu0 %v1006_v20  ;;  %1733 = vmatprep.mubr.msk.bf16.mxu0 %vm1844_vm0, %v1843_v1 }
 0x450   : > { %1743 = vmatprep.subr.bf16.mxu0 %v1843_v1 }
 0x456   : > { %1734 = vmatmul.mubr.msk.bf16.vlgmr.msra.gmra.mrb[16].mxu0 %vm676_vm2, %v999_v23 }
 0x457   : > { %1745 = vmatprep.mubr.msk.bf16.mxu0 %vm1844_vm0, %v1843_v1  ;;  %1744 = vmatpush3.bf16.msra.mxu0 %v1114_v54  ;;  %v1813_v54 = vld [vmem:[%s2176_s12 + $0x10] sm:$0xff]  }
 0x458   : > { %1755 = vmatprep.subr.bf16.mxu0 %v1843_v1 }
 0x4ae   : > { %v992_v24 = vpop.f32.mrb[12].mxu1 }
 0x4af   : > { %v1729_v25 = vpop.f32.mrb[13].mxu1 }
 0x4b0   : > { %v995_v26 = vpop.f32.mrb[14].mxu1 }
 0x4b1   : > { %v1730_v27 = vpop.f32.mrb[15].mxu1 }
 0x4b2   : > { %v1624_v27 = vld [vmem:[%s2171_s7] ss:$0 sm:$0xff] }
 0x521   : > { %v946_v28 = vpop.f32.mrb[12].mxu0 }
 0x522   : > { %v2060_v29 = vadd.f32 %v992_v24, %v946_v28  ;;  %v1723_v30 = vpop.f32.mrb[13].mxu0 }
 0x523   : > { %v949_v31 = vpop.f32.mrb[14].mxu0 }
 0x524   : > { %v1724_v33 = vpop.f32.mrb[15].mxu0 }
 0x529   : > { %v1042_v34 = vpop.f32.mrb[16].mxu0 }
 0x52a   : > { %v1048_v35 = vsel %vm728_vm4, -1e-10, %v1042_v34  ;;  %v1735_v36 = vpop.f32.mrb[17].mxu0 }
 0x52b   : > { %v1045_v37 = vpop.f32.mrb[18].mxu0  ;;  %v1049_v38 = vsel %vm676_vm2, %v1048_v35, -inf }
 0x52c   : > { %1050 = vmax.xlane.f32.xlu0 %v1049_v38  ;;  %v1736_v39 = vpop.f32.mrb[19].mxu0 }
 0x542   : > { %1061 = vrot.lane.b32.xlu0 %v1992_v17, %s1850_s26 }
 0x546   : > { %1159 = vrot.lane.b32.xlu0 %v1992_v17, %s1851_s27 }
 0x54a   : > { %1157 = vrot.lane.b32.xlu0 %v1994_v21, %s1851_s27 }
 0x5b9   : > { %v1051_v40 = vpop.xlane.xlu0 %1050 }
 0x5ba   : > { %v1052_v41 = vsub.f32 %v1048_v35, %v1051_v40 }
 0x5bc   : > { %v1053_v42 = vmul.f32 1.442695, %v1052_v41 }
 0x5bd   : > { %v1062_v43 = vpop.permute.xlu0 %1061 }
 0x5be   : > { %1823 = vpow2.f32 %v1053_v42  ;;  %v1067_v44 = vsel %vm748_vm5, %v1062_v43, 0  ;;  %v1809_v42 = vld [vmem:[%s2174_s10] sm:$0xff]   ;;  %v1810_v43 = vld [vmem:[%s2174_s10 + $0x8] sm:$0xff]  }
 0x5bf   : > { %1738 = vmatpush3.bf16.msra.mxu1 %v1067_v44  ;;  %v1812_v44 = vld [vmem:[%s2176_s12 + $0x8] sm:$0xff]  }
 0x5c0   : > { %1749 = vmatprep.subr.bf16.mxu1 %v1843_v1 }
 0x5c1   : > { %v1160_v50 = vpop.permute.xlu0 %1159 }
 0x5c2   : > { %v1165_v51 = vsel %vm676_vm2, %v1160_v50, 0 }
 0x5c5   : > { %v1158_v52 = vpop.permute.xlu0 %1157 }
 0x5c8   : > { %v1824_v45 = vpop.eup %1823 }
 0x5c9   : > { %v1055_v46 = vsel %vm676_vm2, %v1824_v45, 0.0 }
 0x5ca   : > { %1056 = vadd.xlane.f32.xlu1 %v1055_v46 }
 0x657   : > { %v1057_v47 = vpop.xlane.xlu1 %1056 }
 0x658   : > { %1825 = vrcp.f32 %v1057_v47 }
 0x662   : > { %v1826_v48 = vpop.eup %1825 }
 0x663   : > { %v1059_v49 = vmul.f32 %v1826_v48, %v1824_v45 }
 0x665   : > { %v1060_v21 = vpack.c.bf16 %v1059_v49, %v1059_v49  ;;  %v1625_v49 = vld [vmem:[%s2172_s8] ss:$0 sm:$0xff] }
 0x667   : > { %1740 = vmatmul.mubr.msk.bf16.vlgmr.msra.gmra.mrb[16].mxu1 %vm676_vm2, %v1060_v21  ;;  %v1626_v21 = vld [vmem:[%s2173_s9] ss:$0 sm:$0xff] }
 0x668   : > { %1750 = vmatpush3.bf16.xpose.msra.mxu1 %v1165_v51  ;;  %1751 = vmatprep.mubr.msk.bf16.mxu1 %vm1844_vm0, %v1843_v1 }
 0x669   : > { %1761 = vmatprep.subr.bf16.mxu1 %v1843_v1 }
 0x66f   : > { %1752 = vmatmul.mubr.msk.bf16.vlgmr.msra.gmra.mrb[20].mxu1 %vm676_vm2, %v1158_v52 }
 0x670   : > { %1763 = vmatprep.mubr.msk.bf16.mxu1 %vm1844_vm0, %v1843_v1  ;;  %1762 = vmatpush3.bf16.msra.mxu1 %v1273_v9 }
 0x671   : > { %1775 = vmatprep.subr.bf16.mxu1 %v1843_v1 }
 0x73a   : > { %v1103_v55 = vpop.f32.mrb[16].mxu1 }
 0x73b   : > { %v1109_v56 = vpack.c.bf16 %v1103_v55, %v1103_v55  ;;  %v1741_v57 = vpop.f32.mrb[17].mxu1  ;;  %v1814_v55 = vld [vmem:[%s2176_s12 + $0x18] sm:$0xff]  }
 0x73c   : > { %v1106_v58 = vpop.f32.mrb[18].mxu1 }
 0x73d   : > { %v1742_v59 = vpop.f32.mrb[19].mxu1  ;;  %1746 = vmatmul.mubr.msk.bf16.vlgmr.msra.gmra.mrb[20].mxu0 %vm676_vm2, %v1109_v56  ;;  %v1627_v56 = vld [vmem:[%s2175_s11] ss:$0 sm:$0xff] }
 0x73e   : > { %1757 = vmatprep.mubr.msk.bf16.mxu0 %vm1844_vm0, %v1843_v1 }
 0x742   : > { %v1201_v60 = vpop.f32.mrb[20].mxu1 }
 0x743   : > { %v1207_v61 = vsel %vm728_vm4, -1e-10, %v1201_v60  ;;  %v1753_v62 = vpop.f32.mrb[21].mxu1 }
 0x744   : > { %v1204_v63 = vpop.f32.mrb[22].mxu1  ;;  %v1208_v0 = vsel %vm676_vm2, %v1207_v61, -inf }
 0x745   : > { %1209 = vmax.xlane.f32.xlu0 %v1208_v0  ;;  %v1754_v2 = vpop.f32.mrb[23].mxu1 }
 0x7d2   : > { %v1210_v3 = vpop.xlane.xlu0 %1209 }
 0x7d3   : > { %v1211_v4 = vsub.f32 %v1207_v61, %v1210_v3 }
 0x7d5   : > { %v1212_v6 = vmul.f32 1.442695, %v1211_v4 }
 0x7d7   : > { %1827 = vpow2.f32 %v1212_v6 }
 0x7e1   : > { %v1828_v7 = vpop.eup %1827 }
 0x7e2   : > { %v1214_v8 = vsel %vm676_vm2, %v1828_v7, 0.0 }
 0x7e3   : > { %1215 = vadd.xlane.f32.xlu1 %v1214_v8 }
 0x7f4   : > { %1220 = vrot.lane.b32.xlu1 %v1992_v17, %s1852_s30 }
 0x810   : > { %v1150_v10 = vpop.f32.mrb[20].mxu0 }
 0x811   : > { %v1156_v11 = vadd.f32 %v1150_v10, %v2060_v29  ;;  %v1747_v12 = vpop.f32.mrb[21].mxu0 }
 0x812   : > { %v1153_v13 = vpop.f32.mrb[22].mxu0 }
 0x813   : > { %v1748_v14 = vpop.f32.mrb[23].mxu0 }
 0x870   : > { %v1216_v15 = vpop.xlane.xlu1 %1215 }
 0x871   : > { %1829 = vrcp.f32 %v1216_v15 }
 0x874   : > { %v1221_v16 = vpop.permute.xlu1 %1220 }
 0x875   : > { %v1226_v17 = vsel %vm748_vm5, %v1221_v16, 0 }
 0x876   : > { %1756 = vmatpush3.bf16.msra.mxu0 %v1226_v17  ;;  %v1637_v17 = vld [vmem:[%s2178_s14] ss:$0 sm:$0xff] }
 0x877   : > { %1767 = vmatprep.subr.bf16.mxu0 %v1843_v1 }
 0x87b   : > { %v1830_v18 = vpop.eup %1829 }
 0x87c   : > { %v1218_v19 = vmul.f32 %v1830_v18, %v1828_v7 }
 0x87e   : > { %v1219_v20 = vpack.c.bf16 %v1218_v19, %v1218_v19  ;;  %v1638_v19 = vld [vmem:[%s2179_s15] ss:$0 sm:$0xff] }
 0x880   : > { %1758 = vmatmul.mubr.msk.bf16.vlgmr.msra.gmra.mrb[24].mxu0 %vm676_vm2, %v1219_v20 }
 0x881   : > { %1771 = vmatprep.mubr.msk.bf16.mxu0 %vm1844_vm0, %v1843_v1  ;;  %1768 = vmatpush3.bf16.msra.mxu0 %v1809_v42 }
 0x882   : > { %1769 = vmatprep.subr.bf16.mxu0 %v1843_v1 }
 0x885   : > { %1770 = vmatpush3.bf16.msra.mxu0 %v1810_v43 }
 0x953   : > { %v1262_v22 = vpop.f32.mrb[24].mxu0 }
 0x954   : > { %v1268_v23 = vpack.c.bf16 %v1262_v22, %v1262_v22  ;;  %v1759_v24 = vpop.f32.mrb[25].mxu0 }
 0x955   : > { %v1265_v25 = vpop.f32.mrb[26].mxu0 }
 0x956   : > { %v1760_v26 = vpop.f32.mrb[27].mxu0  ;;  %1764 = vmatmul.mubr.msk.bf16.vlgmr.msra.gmra.mrb[24].mxu1 %vm676_vm2, %v1268_v23 }
 0x957   : > { %1783 = vmatprep.mubr.msk.bf16.mxu1 %vm1844_vm0, %v1843_v1 }
 0xa29   : > { %v1309_v28 = vpop.f32.mrb[24].mxu1 }
 0xa2a   : > { %v1315_v29 = vadd.f32 %v1309_v28, %v1156_v11  ;;  %v1765_v30 = vpop.f32.mrb[25].mxu1 }
 0xa2b   : > { %v1312_v31 = vpop.f32.mrb[26].mxu1 }
 0xa2c   : > { %v1322_v33 = vadd.f32 %v1624_v27, %v1315_v29  ;;  %v1766_v34 = vpop.f32.mrb[27].mxu1 }
 0xa2e   : > { %v1323_v35 = vadd.f32 %v1322_v33, %v1975_v5  ;;  %v1811_v5 = vld [vmem:[%s2176_s12] sm:$0xff]  }
 0xa2f   : > { %1776 = vmatpush3.bf16.msra.mxu1 %v1811_v5 }
 0xa30   : > { %v1324_v36 = vsel %vm571_vm1, %v1323_v35, 0.0  ;;  %1777 = vmatprep.subr.bf16.mxu1 %v1843_v1 }
 0xa31   : > { %1325 = vadd.xlane.f32.xlu1 %v1324_v36 }
 0xa33   : > { %1778 = vmatpush3.bf16.msra.mxu1 %v1812_v44 }
 0xa34   : > { %1779 = vmatprep.subr.bf16.mxu1 %v1843_v1 }
 0xa37   : > { %1780 = vmatpush3.bf16.msra.mxu1 %v1813_v54 }
 0xa38   : > { %1781 = vmatprep.subr.bf16.mxu1 %v1843_v1  ;;  %v1631_v1 = vld [vmem:[%s2177_s13] ss:$0 sm:$0xff] }
 0xa3b   : > { %1782 = vmatpush3.bf16.msra.mxu1 %v1814_v55 }
 0xabe   : > { %v1326_v37 = vpop.xlane.xlu1 %1325 }
 0xabf   : > { %v1328_v38 = vmul.f32 0.03125, %v1326_v37 }
 0xac1   : > { %v1329_v39 = vsub.f32 %v1323_v35, %v1328_v38 }
 0xac3   : > { %v1330_v40 = vmul.f32 %v1329_v39, %v1329_v39 }
 0xac5   : > { %v1331_v41 = vsel %vm571_vm1, %v1330_v40, 0.0 }
 0xac6   : > { %1332 = vadd.xlane.f32.xlu0 %v1331_v41 }
 0xb53   : > { %v1333_v45 = vpop.xlane.xlu0 %1332 }
 0xb54   : > { %v1334_v46 = vmul.f32 0.03125, %v1333_v45 }
 0xb56   : > { %v1335_v47 = vadd.f32 1e-05, %v1334_v46 }
 0xb58   : > { %1831 = vrsqrt.f32 %v1335_v47 }
 0xb62   : > { %v1832_v48 = vpop.eup %1831 }
 0xb63   : > { %v1337_v50 = vmul.f32 %v1832_v48, %v1329_v39 }
 0xb65   : > { %v1344_v51 = vmul.f32 %v1625_v49, %v1337_v50 }
 0xb67   : > { %v1351_v52 = vadd.f32 %v1626_v21, %v1344_v51 }
 0xb69   : > { %v1368_v53 = vpack.c.bf16 %v1351_v52, %v1351_v52 }
 0xb6b   : > { %1772 = vmatmul.mubr.msk.bf16.vlgmr.msra.gmra.mrb[28].mxu0 %vm571_vm1, %v1368_v53 }
 0xc3e   : > { %v1424_v57 = vpop.f32.mrb[28].mxu0 }
 0xc3f   : > { %v1425_v58 = vadd.f32 %v1627_v56, %v1424_v57  ;;  %v1773_v59 = vpop.f32.mrb[29].mxu0 }
 0xc40   : > { %v1427_v60 = vpop.f32.mrb[30].mxu0 }
 0xc41   : > { %v1430_v61 = vmax.f32 %v1425_v58, 0.0  ;;  %v1774_v62 = vpop.f32.mrb[31].mxu0 }
 0xc43   : > { %v1431_v63 = vpack.c.bf16 %v1430_v61, %v1430_v61 }
 0xc45   : > { %1784 = vmatmul.mubr.msk.bf16.vlgmr.msra.gmra.mrb[28].mxu1 %vm1462_vm6, %v1431_v63 }
 0xd18   : > { %v1500_v0 = vpop.f32.mrb[28].mxu1 }
 0xd19   : > { %v1501_v2 = vadd.f32 %v1631_v1, %v1500_v0  ;;  %v1785_v3 = vpop.f32.mrb[29].mxu1 }
 0xd1a   : > { %v1503_v4 = vpop.f32.mrb[30].mxu1 }
 0xd1b   : > { %v1786_v6 = vpop.f32.mrb[31].mxu1  ;;  %v1506_v7 = vadd.f32 %v1501_v2, %v1351_v52 }
 0xd1d   : > { %v1507_v8 = vsel %vm571_vm1, %v1506_v7, 0.0 }
 0xd1e   : > { %1508 = vadd.xlane.f32.xlu0 %v1507_v8 }
 0xdab   : > { %v1509_v32 = vpop.xlane.xlu0 %1508 }
 0xdac   : > { %v1510_v9 = vmul.f32 0.03125, %v1509_v32 }
 0xdae   : > { %v1511_v10 = vsub.f32 %v1506_v7, %v1510_v9 }
 0xdb0   : > { %v1512_v11 = vmul.f32 %v1511_v10, %v1511_v10 }
 0xdb2   : > { %v1513_v12 = vsel %vm571_vm1, %v1512_v11, 0.0 }
 0xdb3   : > { %1514 = vadd.xlane.f32.xlu0 %v1513_v12 }
 0xe40   : > { %v1515_v13 = vpop.xlane.xlu0 %1514 }
 0xe41   : > { %v1516_v14 = vmul.f32 0.03125, %v1515_v13 }
 0xe43   : > { %v1517_v15 = vadd.f32 1e-05, %v1516_v14 }
 0xe45   : > { %1833 = vrsqrt.f32 %v1517_v15 }
 0xe4f   : > { %v1834_v16 = vpop.eup %1833 }
 0xe50   : > { %v1519_v18 = vmul.f32 %v1834_v16, %v1511_v10 }
 0xe52   : > { %v1526_v20 = vmul.f32 %v1637_v17, %v1519_v18 }
 0xe54   : > { %v1533_v22 = vadd.f32 %v1638_v19, %v1526_v20 }
 0xe56   : > { %1534 = vst.msk [vmem:[%s530_s25] sm:$0xff] %vm571_vm1, %v1533_v22 }
 0xe57 PF: > { %s26_s21 = sadd.s32 1, %s1841_s21  }
 0xe58   : > { %p23_p4 = scmp.ge.s32.totalorder %s26_s21, 4  }
 0xe5a   :  { %25 = sbr.rel (!%p23_p4) target bundleno = 2 (0x2), region = 117 }

// kernel: transformer_forward.4
= control target key start
LH: loop header
LB: loop body
LE: loop exit
PB: predicated region body
PF: predicated region fallthrough
CT: control target
= control target key end

     0   :  { %s3294_s27 = smov 0   ;;  %s3702_s0 = inlined_call_operand.vmem [shape: f32[2,8,32], index: 0, kind: input, shape index: {}]   ;;  %s3703_s1 = inlined_call_operand.vmem [shape: f32[2,8,32], index: 1, kind: input, shape index: {}]   ;;  %s3704_s2 = inlined_call_operand.vmem [shape: s32[2,1,8,8], index: 2, kind: input, shape index: {}]   ;;  %s3705_s3 = inlined_call_operand.vmem [shape: s32[2,1,1,8], index: 3, kind: input, shape index: {}]   ;;  %s3706_s4 = inlined_call_operand.vmem [shape: bf16[32,32], index: 4, kind: input, shape index: {}]   ;;  %s3707_s5 = inlined_call_operand.vmem [shape: f32[1,32], index: 5, kind: input, shape index: {}]   ;;  %s3708_s6 = inlined_call_operand.vmem [shape: bf16[32,64], index: 6, kind: input, shape index: {}]   ;;  %s3709_s7 = inlined_call_operand.vmem [shape: f32[1,64], index: 7, kind: input, shape index: {}]   ;;  %s3710_s8 = inlined_call_operand.vmem [shape: bf16[4,8,32], index: 8, kind: input, shape index: {}]   ;;  %s3711_s9 = inlined_call_operand.vmem [shape: f32[1,32], index: 9, kind: input, shape index: {}]   ;;  %s3712_s10 = inlined_call_operand.vmem [shape: f32[1,32], index: 10, kind: input, shape index: {}]   ;;  %s3713_s11 = inlined_call_operand.vmem [shape: f32[1,32], index: 11, kind: input, shape index: {}]   ;;  %s3714_s12 = inlined_call_operand.vmem [shape: bf16[32,32], index: 12, kind: input, shape index: {}]   ;;  %s3715_s13 = inlined_call_operand.vmem [shape: f32[1,32], index: 13, kind: input, shape index: {}]   ;;  %s3716_s14 = inlined_call_operand.vmem [shape: bf16[32,64], index: 14, kind: input, shape index: {}]   ;;  %s3717_s15 = inlined_call_operand.vmem [shape: f32[1,64], index: 15, kind: input, shape index: {}]   ;;  %s3718_s16 = inlined_call_operand.vmem [shape: bf16[4,8,32], index: 16, kind: input, shape index: {}]   ;;  %s3719_s17 = inlined_call_operand.vmem [shape: f32[1,32], index: 17, kind: input, shape index: {}]   ;;  %s3720_s18 = inlined_call_operand.vmem [shape: f32[1,32], index: 18, kind: input, shape index: {}]   ;;  %s3721_s19 = inlined_call_operand.vmem [shape: f32[1,32], index: 19, kind: input, shape index: {}]   ;;  %s3722_s20 = inlined_call_operand.vmem [shape: bf16[32,64], index: 20, kind: input, shape index: {}]   ;;  %s3723_s21 = inlined_call_operand.vmem [shape: f32[1,64], index: 21, kind: input, shape index: {}]   ;;  %s3724_s22 = inlined_call_operand.vmem [shape: bf16[64,32], index: 22, kind: input, shape index: {}]   ;;  %s3725_s23 = inlined_call_operand.vmem [shape: f32[1,32], index: 23, kind: input, shape index: {}]   ;;  %s3726_s24 = inlined_call_operand.vmem [shape: f32[1,32], index: 24, kind: input, shape index: {}]   ;;  %s3727_s25 = inlined_call_operand.vmem [shape: f32[1,32], index: 25, kind: input, shape index: {}]   ;;  %s3728_s26 = inlined_call_operand.vmem [shape: f32[2,8,32], index: 26, kind: output, shape index: {}]  }
   0x1   :  { %3740 = sst [smem:[#allocation2_spill]] %s3702_s0 }
   0x2   :  { %3741 = sst [smem:[#allocation3_spill]] %s3703_s1 }
   0x3   :  { %3742 = sst [smem:[#allocation4_spill]] %s3704_s2 }
   0x4   :  { %3743 = sst [smem:[#allocation5_spill]] %s3705_s3 }
   0x5   :  { %3744 = sst [smem:[#allocation6_spill]] %s3706_s4 }
   0x6   :  { %3745 = sst [smem:[#allocation7_spill]] %s3707_s5 }
   0x7   :  { %3746 = sst [smem:[#allocation8_spill]] %s3708_s6 }
   0x8   :  { %3747 = sst [smem:[#allocation9_spill]] %s3709_s7 }
   0x9   :  { %3748 = sst [smem:[#allocation10_spill]] %s3710_s8 }
   0xa   :  { %3749 = sst [smem:[#allocation11_spill]] %s3711_s9 }
   0xb   :  { %3750 = sst [smem:[#allocation12_spill]] %s3712_s10 }
   0xc LB: > { %s2738_s3 = sadd.s32 4294967295, %s3147_s27   ;;  %p2742_p0 = scmp.ge.s32.totalorder %s3147_s27, 1  ;;  %s3147_s27 = sphi %s3294_s27, %s36_s27  }
   0xd   : > { %p737_p1 = scmp.lt.s32.totalorder %s3147_s27, 3 }
   0xf   : > { %p738_p2 = pnand %p2742_p0, %p737_p1 }
  0x10   : > { %s3751_s8 = sld [smem:[#allocation8_spill]] (!%p738_p2)  ;;  %v3149_v1 = vmov (!%p738_p2), 0.0   ;;  %s3752_s0 = sld [smem:[#allocation6_spill]] (!%p738_p2)  ;;  %vm3150_vm0 = vmmov (!%p738_p2), 0   ;;  %vm878_vm1 = vcmask (!%p738_p2), 261120   ;;  %vm983_vm2 = vcmask (!%p738_p2), 64512  }
  0x11   : > { %741 = sbr.rel (%p738_p2) target bundleno = 6576 (0x19b0), region = 124  ;;  %2883 = vmatprep.subr.bf16.mxu1 (!%p738_p2), %v3149_v1  ;;  %2875 = vmatprep.subr.bf16.mxu0 (!%p738_p2), %v3149_v1  ;;  %p816_p3 = scmp.lt.s32.totalorder (!%p738_p2), %s2738_s3, 1  ;;  %vm1049_vm4 = vcmask (!%p738_p2), 1043456   ;;  %vm2580_vm7 = vcmask (!%p738_p2), 523264  }
  0x12   : > { %2887 = vmatprep.mubr.msk.bf16.mxu1 (!%p738_p2), %vm3150_vm0, %v3149_v1  ;;  %2879 = vmatprep.mubr.msk.bf16.mxu0 (!%p738_p2), %vm3150_vm0, %v3149_v1  ;;  %s3753_s7 = sld [smem:[#allocation2_spill]] (!%p738_p2)  ;;  %s3754_s9 = sld [smem:[#allocation9_spill]] (!%p738_p2) }
  0x13   : > { %s3755_s5 = sld [smem:[#allocation7_spill]] (!%p738_p2)  ;;  %s3151_s6 = smov (!%p738_p2), 120  }
  0x14   : > { %s3737_s29 = smov (!%p738_p2), 96   ;;  %s3738_s30 = smov (!%p738_p2), 112  }
  0x15   : > { %s3757_s1 = sld [smem:[#allocation10_spill]] (!%p738_p2)  ;;  %s3733_s2 = smov (!%p738_p2), 104  }
  0x16   : > { %v3089_v0 = vld [vmem:[%s3751_s8] sm:$0xff] (!%p738_p2)   ;;  %v3091_v3 = vld [vmem:[%s3751_s8 + $0x8] sm:$0xff] (!%p738_p2)  }
  0x17   : > { %v3090_v2 = vld [vmem:[%s3752_s0] sm:$0xff] (!%p738_p2)   ;;  %2884 = vmatpush3.bf16.msra.mxu1 (!%p738_p2), %v3089_v0  ;;  %v3092_v4 = vld [vmem:[%s3752_s0 + $0x8] sm:$0xff] (!%p738_p2)  }
  0x18   : > { %2885 = vmatprep.subr.bf16.mxu1 %v3149_v1  ;;  %2876 = vmatpush3.bf16.msra.mxu0 %v3090_v2  ;;  %s3769_s3 = smov (!%p816_p3, %s2738_s3), 1  ;;  %v2751_v7 = vld [vmem:[%s3754_s9] ss:$0 sm:$0xff]  ;;  %s3736_s9 = smov 88  }
  0x19   : > { %2877 = vmatprep.subr.bf16.mxu0 %v3149_v1  ;;  %s3325_s10 = sshll.u32 %s3769_s3, 3  ;;  %v2747_v8 = vld [vmem:[%s3755_s5] ss:$0 sm:$0xff]  ;;  %s3764_s5 = smov 88  }
  0x1a   : > { %s819_s28 = scalar_lea.vmem %s3753_s7, %s3325_s10 }
  0x1b   : > { %2886 = vmatpush3.bf16.msra.mxu1 %v3091_v3  ;;  %v3332_v5 = vld [vmem:[%s819_s28] sm:$0xff]  ;;  %s3756_s28 = sld [smem:[#allocation4_spill]] }
  0x1c   : > { %2878 = vmatpush3.bf16.msra.mxu0 %v3092_v4  ;;  %2897 = vmatprep.subr.bf16.mxu1 %v3149_v1  ;;  %v859_v6 = vpack.c.bf16 %v3332_v5, %v3332_v5  ;;  %v853_v55 = vld [vmem:[%s3757_s1 + $0x4] sm:$0xf]  ;;  %v852_v61 = vld [vmem:[%s3757_s1] sm:$0xf] }
  0x1d   : > { %2891 = vmatprep.subr.bf16.mxu0 %v3149_v1  ;;  %v1211_v56 = vsel %vm1049_vm4, %v853_v55, 0  ;;  %v1257_v0 = vsel %vm1049_vm4, %v852_v61, 0 }
  0x1e   : > { %2888 = vmatmul.mubr.msk.bf16.vlgmr.msra.gmra.mrb[0].mxu1 %vm878_vm1, %v859_v6 }
  0x1f   : > { %2880 = vmatmul.mubr.msk.bf16.vlgmr.msra.gmra.mrb[0].mxu0 %vm878_vm1, %v859_v6  ;;  %2899 = vmatprep.mubr.msk.bf16.mxu1 %vm3150_vm0, %v3149_v1 }
  0x20   : > { %2893 = vmatprep.mubr.msk.bf16.mxu0 %vm3150_vm0, %v3149_v1 }
  0x21   : > { %s827_s4 = scalar_lea.vmem %s3756_s28, %s3325_s10  ;;  %s3732_s28 = smov 72  }
  0x22   : > { %v3373_v26 = vld [vmem:[%s827_s4] sm:$0xff]  ;;  %s3735_s4 = smov 80  }
  0x23   : > { %vm839_vm3 = vcmp.eq.s32.totalorder %v3373_v26, 0  ;;  %v855_v26 = vld [vmem:[%s3757_s1 + $0xc] sm:$0xf] }
  0xf1   : > { %v974_v9 = vpop.f32.mrb[0].mxu1 }
  0xf2   : > { %v916_v10 = vpop.f32.mrb[0].mxu0  ;;  %v975_v11 = vadd.f32 %v2751_v7, %v974_v9  ;;  %v2889_v12 = vpop.f32.mrb[1].mxu1 }
  0xf3   : > { %v917_v13 = vadd.f32 %v2747_v8, %v916_v10  ;;  %v2881_v14 = vpop.f32.mrb[1].mxu0  ;;  %v977_v15 = vpop.f32.mrb[2].mxu1 }
  0xf4   : > { %v919_v16 = vpop.f32.mrb[2].mxu0  ;;  %v3349_v17 = vpack.c.bf16 %v975_v11, %v975_v11  ;;  %v2890_v18 = vpop.f32.mrb[3].mxu1 }
  0xf5   : > { %v980_v19 = vmul.f32 0.17677669, %v917_v13  ;;  %v2882_v20 = vpop.f32.mrb[3].mxu0 }
  0xf6   : > { %1097 = vrot.lane.b32.xlu0 %v3349_v17, %s3151_s6  ;;  %v988_v22 = vsel %vm983_vm2, %v3349_v17, 0 }
  0xf7   : > { %v3351_v21 = vpack.c.bf16 %v980_v19, %v980_v19  ;;  %2892 = vmatpush3.bf16.xpose.msra.mxu0 %v988_v22 }
  0xf8   : > { %2903 = vmatprep.subr.bf16.mxu0 %v3149_v1 }
  0xfa   : > { %1095 = vrot.lane.b32.xlu0 %v3351_v21, %s3151_s6 }
  0xfe   : > { %2894 = vmatmul.mubr.msk.bf16.vlgmr.msra.gmra.mrb[4].mxu0 %vm983_vm2, %v3351_v21 }
  0xff   : > { %2905 = vmatprep.mubr.msk.bf16.mxu0 %vm3150_vm0, %v3149_v1 }
 0x168   : > { %v1098_v23 = vpop.permute.xlu0 %1097 }
 0x169   : > { %v1103_v24 = vsel %vm983_vm2, %v1098_v23, 0 }
 0x16a   : > { %2904 = vmatpush3.bf16.xpose.msra.mxu0 %v1103_v24 }
 0x16b   : > { %2915 = vmatprep.subr.bf16.mxu0 %v3149_v1 }
 0x16c   : > { %v1096_v25 = vpop.permute.xlu0 %1095 }
 0x171   : > { %2906 = vmatmul.mubr.msk.bf16.vlgmr.msra.gmra.mrb[8].mxu0 %vm983_vm2, %v1096_v25 }
 0x172   : > { %2917 = vmatprep.mubr.msk.bf16.mxu0 %vm3150_vm0, %v3149_v1  ;;  %2916 = vmatpush3.bf16.msra.mxu0 %v1211_v56 }
 0x173   : > { %2927 = vmatprep.subr.bf16.mxu0 %v3149_v1 }
 0x1d1   : > { %v1024_v27 = vpop.f32.mrb[4].mxu0 }
 0x1d2   : > { %v1030_v28 = vsel %vm839_vm3, -1e-10, %v1024_v27  ;;  %v2895_v29 = vpop.f32.mrb[5].mxu0 }
 0x1d3   : > { %v1027_v30 = vpop.f32.mrb[6].mxu0  ;;  %v1031_v31 = vsel %vm983_vm2, %v1030_v28, -inf }
 0x1d4   : > { %1032 = vmax.xlane.f32.xlu1 %v1031_v31  ;;  %v2896_v32 = vpop.f32.mrb[7].mxu0 }
 0x244   : > { %v1139_v33 = vpop.f32.mrb[8].mxu0 }
 0x245   : > { %v1145_v34 = vsel %vm839_vm3, -1e-10, %v1139_v33  ;;  %v2907_v35 = vpop.f32.mrb[9].mxu0 }
 0x246   : > { %v1142_v36 = vpop.f32.mrb[10].mxu0  ;;  %v1146_v37 = vsel %vm983_vm2, %v1145_v34, -inf }
 0x247   : > { %1147 = vmax.xlane.f32.xlu1 %v1146_v37  ;;  %v2908_v38 = vpop.f32.mrb[11].mxu0 }
 0x258   : > { %1044 = vrot.lane.b32.xlu1 %v3349_v17, %s3737_s29  ;;  %s3759_s29 = sld [smem:[#allocation3_spill]] }
 0x261   : > { %v1033_v39 = vpop.xlane.xlu1 %1032 }
 0x262   : > { %v1034_v40 = vsub.f32 %v1030_v28, %v1033_v39 }
 0x264   : > { %v1035_v41 = vmul.f32 1.442695, %v1034_v40 }
 0x266   : > { %3103 = vpow2.f32 %v1035_v41 }
 0x270   : > { %v3104_v42 = vpop.eup %3103 }
 0x271   : > { %v1037_v43 = vsel %vm983_vm2, %v3104_v42, 0.0 }
 0x272   : > { %1038 = vadd.xlane.f32.xlu0 %v1037_v43 }
 0x2d4   : > { %v1148_v44 = vpop.xlane.xlu1 %1147 }
 0x2d5   : > { %v1149_v45 = vsub.f32 %v1145_v34, %v1148_v44 }
 0x2d7   : > { %v1150_v46 = vmul.f32 1.442695, %v1149_v45 }
 0x2d8   : > { %v1045_v47 = vpop.permute.xlu1 %1044 }
 0x2d9   : > { %3105 = vpow2.f32 %v1150_v46  ;;  %v1051_v48 = vsel %vm1049_vm4, %v1045_v47, 0  ;;  %v854_v47 = vld [vmem:[%s3757_s1 + $0x8] sm:$0xf] }
 0x2da   : > { %2898 = vmatpush3.bf16.msra.mxu1 %v1051_v48  ;;  %v1415_v48 = vsel %vm1049_vm4, %v854_v47, 0 }
 0x2db   : > { %2909 = vmatprep.subr.bf16.mxu1 %v3149_v1 }
 0x2e3   : > { %v3106_v49 = vpop.eup %3105 }
 0x2e4   : > { %v1152_v50 = vsel %vm983_vm2, %v3106_v49, 0.0 }
 0x2e5   : > { %1153 = vadd.xlane.f32.xlu1 %v1152_v50 }
 0x2f6   : > { %1158 = vrot.lane.b32.xlu1 %v3349_v17, %s3736_s9 }
 0x2fa   : > { %1301 = vrot.lane.b32.xlu1 %v3349_v17, %s3738_s30 }
 0x2fe   : > { %1299 = vrot.lane.b32.xlu1 %v3351_v21, %s3738_s30  ;;  %s823_s30 = scalar_lea.vmem %s3759_s29, %s3325_s10 }
 0x2ff   : > { %v1039_v51 = vpop.xlane.xlu0 %1038 }
 0x300   : > { %3107 = vrcp.f32 %v1039_v51 }
 0x30a   : > { %v3108_v52 = vpop.eup %3107 }
 0x30b   : > { %v1041_v53 = vmul.f32 %v3108_v52, %v3104_v42 }
 0x30d   : > { %v1042_v54 = vpack.c.bf16 %v1041_v53, %v1041_v53 }
 0x30f   : > { %2900 = vmatmul.mubr.msk.bf16.vlgmr.msra.gmra.mrb[4].mxu1 %vm983_vm2, %v1042_v54 }
 0x310   : > { %2911 = vmatprep.mubr.msk.bf16.mxu1 %vm3150_vm0, %v3149_v1 }
 0x372   : > { %v1154_v57 = vpop.xlane.xlu1 %1153 }
 0x373   : > { %3109 = vrcp.f32 %v1154_v57 }
 0x376   : > { %v1159_v58 = vpop.permute.xlu1 %1158 }
 0x377   : > { %v1164_v59 = vsel %vm1049_vm4, %v1159_v58, 0 }
 0x378   : > { %2910 = vmatpush3.bf16.msra.mxu1 %v1164_v59 }
 0x379   : > { %2921 = vmatprep.subr.bf16.mxu1 %v3149_v1 }
 0x37a   : > { %v1302_v8 = vpop.permute.xlu1 %1301 }
 0x37b   : > { %v1307_v13 = vsel %vm983_vm2, %v1302_v8, 0 }
 0x37d   : > { %v3110_v60 = vpop.eup %3109 }
 0x37e   : > { %v1156_v62 = vmul.f32 %v3110_v60, %v3106_v49  ;;  %v1300_v15 = vpop.permute.xlu1 %1299 }
 0x380   : > { %v1157_v63 = vpack.c.bf16 %v1156_v62, %v1156_v62 }
 0x382   : > { %2912 = vmatmul.mubr.msk.bf16.vlgmr.msra.gmra.mrb[8].mxu1 %vm983_vm2, %v1157_v63 }
 0x383   : > { %2922 = vmatpush3.bf16.msra.mxu1 %v1257_v0  ;;  %2923 = vmatprep.mubr.msk.bf16.mxu1 %vm3150_vm0, %v3149_v1 }
 0x384   : > { %2933 = vmatprep.subr.bf16.mxu1 %v3149_v1 }
 0x3e2   : > { %v1087_v2 = vpop.f32.mrb[4].mxu1 }
 0x3e3   : > { %v1093_v3 = vpack.c.bf16 %v1087_v2, %v1087_v2  ;;  %v2901_v4 = vpop.f32.mrb[5].mxu1  ;;  %v1574_v2 = vsel %vm1049_vm4, %v855_v26, 0 }
 0x3e4   : > { %v1090_v6 = vpop.f32.mrb[6].mxu1 }
 0x3e5   : > { %v2902_v7 = vpop.f32.mrb[7].mxu1  ;;  %2924 = vmatmul.mubr.msk.bf16.vlgmr.msra.gmra.mrb[12].mxu1 %vm983_vm2, %v1093_v3 }
 0x3e6   : > { %2935 = vmatprep.mubr.msk.bf16.mxu1 %vm3150_vm0, %v3149_v1 }
 0x455   : > { %v1200_v9 = vpop.f32.mrb[8].mxu1 }
 0x456   : > { %v1206_v10 = vpack.c.bf16 %v1200_v9, %v1200_v9  ;;  %v2913_v11 = vpop.f32.mrb[9].mxu1 }
 0x457   : > { %v1203_v12 = vpop.f32.mrb[10].mxu1 }
 0x458   : > { %v2914_v14 = vpop.f32.mrb[11].mxu1  ;;  %2918 = vmatmul.mubr.msk.bf16.vlgmr.msra.gmra.mrb[12].mxu0 %vm983_vm2, %v1206_v10 }
 0x459   : > { %2928 = vmatpush3.bf16.xpose.msra.mxu0 %v1307_v13  ;;  %2929 = vmatprep.mubr.msk.bf16.mxu0 %vm3150_vm0, %v3149_v1 }
 0x45a   : > { %2939 = vmatprep.subr.bf16.mxu0 %v3149_v1 }
 0x460   : > { %2930 = vmatmul.mubr.msk.bf16.vlgmr.msra.gmra.mrb[16].mxu0 %vm983_vm2, %v1300_v15 }
 0x461   : > { %2941 = vmatprep.mubr.msk.bf16.mxu0 %vm3150_vm0, %v3149_v1  ;;  %2940 = vmatpush3.bf16.msra.mxu0 %v1415_v48 }
 0x462   : > { %2951 = vmatprep.subr.bf16.mxu0 %v3149_v1 }
 0x4b8   : > { %v1293_v16 = vpop.f32.mrb[12].mxu1 }
 0x4b9   : > { %v2925_v18 = vpop.f32.mrb[13].mxu1 }
 0x4ba   : > { %v1296_v19 = vpop.f32.mrb[14].mxu1 }
 0x4bb   : > { %v2926_v20 = vpop.f32.mrb[15].mxu1 }
 0x52b   : > { %v1247_v22 = vpop.f32.mrb[12].mxu0 }
 0x52c   : > { %v3423_v23 = vadd.f32 %v1293_v16, %v1247_v22  ;;  %v2919_v24 = vpop.f32.mrb[13].mxu0 }
 0x52d   : > { %v1250_v25 = vpop.f32.mrb[14].mxu0 }
 0x52e   : > { %v2920_v27 = vpop.f32.mrb[15].mxu0 }
 0x533   : > { %v1343_v28 = vpop.f32.mrb[16].mxu0 }
 0x534   : > { %v1349_v29 = vsel %vm839_vm3, -1e-10, %v1343_v28  ;;  %v2931_v30 = vpop.f32.mrb[17].mxu0 }
 0x535   : > { %v1346_v31 = vpop.f32.mrb[18].mxu0  ;;  %v1350_v32 = vsel %vm983_vm2, %v1349_v29, -inf }
 0x536   : > { %1351 = vmax.xlane.f32.xlu0 %v1350_v32  ;;  %v2932_v33 = vpop.f32.mrb[19].mxu0 }
 0x54c   : > { %1362 = vrot.lane.b32.xlu0 %v3349_v17, %s3735_s4  ;;  %s3761_s4 = sld [smem:[#allocation5_spill]] }
 0x550   : > { %1460 = vrot.lane.b32.xlu0 %v3349_v17, %s3733_s2 }
 0x554   : > { %1458 = vrot.lane.b32.xlu0 %v3351_v21, %s3733_s2 }
 0x5c3   : > { %v1352_v34 = vpop.xlane.xlu0 %1351 }
 0x5c4   : > { %v1353_v35 = vsub.f32 %v1349_v29, %v1352_v34 }
 0x5c6   : > { %v1354_v36 = vmul.f32 1.442695, %v1353_v35 }
 0x5c7   : > { %v1363_v37 = vpop.permute.xlu0 %1362 }
 0x5c8   : > { %3111 = vpow2.f32 %v1354_v36  ;;  %v1368_v38 = vsel %vm1049_vm4, %v1363_v37, 0  ;;  %v3093_v36 = vld [vmem:[%s3716_s14] sm:$0xff]  }
 0x5c9   : > { %2934 = vmatpush3.bf16.msra.mxu1 %v1368_v38  ;;  %v837_v37 = vld [vmem:[%s823_s30] sm:$0xff]  ;;  %s3760_s30 = sld [smem:[#allocation12_spill]] }
 0x5ca   : > { %2945 = vmatprep.subr.bf16.mxu1 %v3149_v1  ;;  %v1732_v38 = vpack.c.bf16 %v837_v37, %v837_v37 }
 0x5cb   : > { %v1461_v44 = vpop.permute.xlu0 %1460 }
 0x5cc   : > { %v1466_v45 = vsel %vm983_vm2, %v1461_v44, 0 }
 0x5cf   : > { %v1459_v46 = vpop.permute.xlu0 %1458 }
 0x5d2   : > { %v3112_v39 = vpop.eup %3111 }
 0x5d3   : > { %v1356_v40 = vsel %vm983_vm2, %v3112_v39, 0.0 }
 0x5d4   : > { %1357 = vadd.xlane.f32.xlu1 %v1356_v40  ;;  %v3096_v40 = vld [vmem:[%s3714_s12 + $0x8] sm:$0xff]  }
 0x661   : > { %v1358_v41 = vpop.xlane.xlu1 %1357 }
 0x662   : > { %3113 = vrcp.f32 %v1358_v41 }
 0x66c   : > { %v3114_v42 = vpop.eup %3113 }
 0x66d   : > { %v1360_v43 = vmul.f32 %v3114_v42, %v3112_v39  ;;  %v3095_v39 = vld [vmem:[%s3714_s12] sm:$0xff]  }
 0x66f   : > { %v1361_v21 = vpack.c.bf16 %v1360_v43, %v1360_v43 }
 0x671   : > { %2936 = vmatmul.mubr.msk.bf16.vlgmr.msra.gmra.mrb[16].mxu1 %vm983_vm2, %v1361_v21  ;;  %v2768_v21 = vld [vmem:[%s3760_s30] ss:$0 sm:$0xff]  ;;  %s3765_s30 = smov 80  }
 0x672   : > { %2946 = vmatpush3.bf16.xpose.msra.mxu1 %v1466_v45  ;;  %2947 = vmatprep.mubr.msk.bf16.mxu1 %vm3150_vm0, %v3149_v1 }
 0x673   : > { %2957 = vmatprep.subr.bf16.mxu1 %v3149_v1 }
 0x679   : > { %2948 = vmatmul.mubr.msk.bf16.vlgmr.msra.gmra.mrb[20].mxu1 %vm983_vm2, %v1459_v46  ;;  %v2769_v46 = vld [vmem:[%s3713_s11] ss:$0 sm:$0xff] }
 0x67a   : > { %2959 = vmatprep.mubr.msk.bf16.mxu1 %vm3150_vm0, %v3149_v1  ;;  %2958 = vmatpush3.bf16.msra.mxu1 %v1574_v2 }
 0x67b   : > { %2971 = vmatprep.subr.bf16.mxu1 %v3149_v1 }
 0x744   : > { %v1404_v49 = vpop.f32.mrb[16].mxu1 }
 0x745   : > { %v1410_v50 = vpack.c.bf16 %v1404_v49, %v1404_v49  ;;  %v2937_v51 = vpop.f32.mrb[17].mxu1 }
 0x746   : > { %v1407_v52 = vpop.f32.mrb[18].mxu1 }
 0x747   : > { %v2938_v53 = vpop.f32.mrb[19].mxu1  ;;  %2942 = vmatmul.mubr.msk.bf16.vlgmr.msra.gmra.mrb[20].mxu0 %vm983_vm2, %v1410_v50  ;;  %v2774_v50 = vld [vmem:[%s3717_s15] ss:$0 sm:$0xff] }
 0x748   : > { %2953 = vmatprep.mubr.msk.bf16.mxu0 %vm3150_vm0, %v3149_v1 }
 0x74c   : > { %v1502_v54 = vpop.f32.mrb[20].mxu1 }
 0x74d   : > { %v1508_v55 = vsel %vm839_vm3, -1e-10, %v1502_v54  ;;  %v2949_v56 = vpop.f32.mrb[21].mxu1 }
 0x74e   : > { %v1505_v57 = vpop.f32.mrb[22].mxu1  ;;  %v1509_v58 = vsel %vm983_vm2, %v1508_v55, -inf }
 0x74f   : > { %1510 = vmax.xlane.f32.xlu0 %v1509_v58  ;;  %v2950_v59 = vpop.f32.mrb[23].mxu1  ;;  %v2770_v58 = vld [vmem:[%s3715_s13] ss:$0 sm:$0xff] }
 0x7dc   : > { %v1511_v60 = vpop.xlane.xlu0 %1510 }
 0x7dd   : > { %v1512_v61 = vsub.f32 %v1508_v55, %v1511_v60 }
 0x7df   : > { %v1513_v62 = vmul.f32 1.442695, %v1512_v61 }
 0x7e1   : > { %3115 = vpow2.f32 %v1513_v62 }
 0x7eb   : > { %v3116_v63 = vpop.eup %3115 }
 0x7ec   : > { %v1515_v0 = vsel %vm983_vm2, %v3116_v63, 0.0 }
 0x7ed   : > { %1516 = vadd.xlane.f32.xlu1 %v1515_v0 }
 0x7fe   : > { %1521 = vrot.lane.b32.xlu1 %v3349_v17, %s3732_s28  ;;  %s3758_s28 = sld [smem:[#allocation11_spill]] }
 0x804   : > { %v2767_v20 = vld [vmem:[%s3758_s28] ss:$0 sm:$0xff]  ;;  %s830_s28 = scalar_lea.vmem %s3761_s4, %s3769_s3  ;;  %s3762_s3 = smov 112  }
 0x805   : > { %s3766_s4 = smov 104  }
 0x81a   : > { %v1451_v3 = vpop.f32.mrb[20].mxu0 }
 0x81b   : > { %v1457_v4 = vadd.f32 %v1451_v3, %v3423_v23  ;;  %v2943_v6 = vpop.f32.mrb[21].mxu0 }
 0x81c   : > { %v1454_v7 = vpop.f32.mrb[22].mxu0  ;;  %v1844_v6 = vlaneseq }
 0x81d   : > { %v2944_v8 = vpop.f32.mrb[23].mxu0  ;;  %v840_v7 = vld [vmem:[%s830_s28] sm:$0x1] }
 0x81e   : > { %v1845_v8 = vshrl.u32 %v1844_v6, 7  ;;  %vm841_vm5 = vcmp.eq.s32.totalorder %v840_v7, 0 }
 0x87a   : > { %v1517_v9 = vpop.xlane.xlu1 %1516 }
 0x87b   : > { %3117 = vrcp.f32 %v1517_v9  ;;  %v1846_v9 = vsub.s32 0, %v1845_v8 }
 0x87e   : > { %v1522_v10 = vpop.permute.xlu1 %1521 }
 0x87f   : > { %v1527_v17 = vsel %vm1049_vm4, %v1522_v10, 0  ;;  %v3158_v10 = vmov 0  }
 0x880   : > { %2952 = vmatpush3.bf16.msra.mxu0 %v1527_v17  ;;  %v1843_v17 = vsel %vm841_vm5, 1, %v3158_v10 }
 0x881   : > { %2963 = vmatprep.subr.bf16.mxu0 %v3149_v1 }
 0x885   : > { %v3118_v11 = vpop.eup %3117 }
 0x886   : > { %v1519_v12 = vmul.f32 %v3118_v11, %v3116_v63  ;;  %v3545_v11 = vrot.slane %v1843_v17, %v1846_v9 }
 0x888   : > { %v1520_v13 = vpack.c.bf16 %v1519_v12, %v1519_v12  ;;  %vm1848_vm6 = vcmp.eq.s32.totalorder %v3545_v11, 1 }
 0x88a   : > { %2954 = vmatmul.mubr.msk.bf16.vlgmr.msra.gmra.mrb[24].mxu0 %vm983_vm2, %v1520_v13 }
 0x88b   : > { %2967 = vmatprep.mubr.msk.bf16.mxu0 %vm3150_vm0, %v3149_v1  ;;  %2964 = vmatpush3.bf16.msra.mxu0 %v3095_v39 }
 0x88c   : > { %2965 = vmatprep.subr.bf16.mxu0 %v3149_v1 }
 0x88f   : > { %2966 = vmatpush3.bf16.msra.mxu0 %v3096_v40 }
 0x890   : > { %2979 = vmatprep.subr.bf16.mxu0 %v3149_v1 }
 0x95d   : > { %v1563_v14 = vpop.f32.mrb[24].mxu0 }
 0x95e   : > { %v1569_v15 = vpack.c.bf16 %v1563_v14, %v1563_v14  ;;  %v2955_v16 = vpop.f32.mrb[25].mxu0 }
 0x95f   : > { %v1566_v18 = vpop.f32.mrb[26].mxu0 }
 0x960   : > { %v2956_v19 = vpop.f32.mrb[27].mxu0  ;;  %2960 = vmatmul.mubr.msk.bf16.vlgmr.msra.gmra.mrb[24].mxu1 %vm983_vm2, %v1569_v15 }
 0x961   : > { %2975 = vmatprep.mubr.msk.bf16.mxu1 %vm3150_vm0, %v3149_v1  ;;  %2972 = vmatpush3.bf16.msra.mxu1 %v3093_v36 }
 0x962   : > { %2973 = vmatprep.subr.bf16.mxu1 %v3149_v1 }
 0xa33   : > { %v1610_v22 = vpop.f32.mrb[24].mxu1 }
 0xa34   : > { %v1616_v23 = vadd.f32 %v1610_v22, %v1457_v4  ;;  %v2961_v24 = vpop.f32.mrb[25].mxu1 }
 0xa35   : > { %v1613_v25 = vpop.f32.mrb[26].mxu1 }
 0xa36   : > { %v1623_v27 = vadd.f32 %v2767_v20, %v1616_v23  ;;  %v2962_v28 = vpop.f32.mrb[27].mxu1 }
 0xa38   : > { %v1624_v29 = vadd.f32 %v1623_v27, %v3332_v5  ;;  %v3094_v5 = vld [vmem:[%s3716_s14 + $0x8] sm:$0xff]  }
 0xa39   : > { %2974 = vmatpush3.bf16.msra.mxu1 %v3094_v5 }
 0xa3a   : > { %v1625_v30 = vsel %vm878_vm1, %v1624_v29, 0.0  ;;  %2985 = vmatprep.subr.bf16.mxu1 %v3149_v1 }
 0xa3b   : > { %1626 = vadd.xlane.f32.xlu1 %v1625_v30 }
 0xa3c   : > { %2976 = vmatmul.mubr.msk.bf16.vlgmr.msra.gmra.mrb[28].mxu1 %vm878_vm1, %v1732_v38 }
 0xa3d   : > { %2987 = vmatprep.mubr.msk.bf16.mxu1 %vm3150_vm0, %v3149_v1 }
 0xac8   : > { %v1627_v31 = vpop.xlane.xlu1 %1626 }
 0xac9   : > { %v1629_v32 = vmul.f32 0.03125, %v1627_v31 }
 0xacb   : > { %v1630_v33 = vsub.f32 %v1624_v29, %v1629_v32 }
 0xacd   : > { %v1631_v34 = vmul.f32 %v1630_v33, %v1630_v33 }
 0xacf   : > { %v1632_v35 = vsel %vm878_vm1, %v1631_v34, 0.0 }
 0xad0   : > { %1633 = vadd.xlane.f32.xlu0 %v1632_v35 }
 0xb0f   : > { %v1788_v51 = vpop.f32.mrb[28].mxu1 }
 0xb10   : > { %v1789_v52 = vadd.f32 %v2774_v50, %v1788_v51  ;;  %v2977_v53 = vpop.f32.mrb[29].mxu1 }
 0xb11   : > { %v1791_v54 = vpop.f32.mrb[30].mxu1 }
 0xb12   : > { %v3518_v55 = vpack.c.bf16 %v1789_v52, %v1789_v52  ;;  %v2978_v56 = vpop.f32.mrb[31].mxu1 }
 0xb14   : > { %1915 = vrot.lane.b32.xlu0 %v3518_v55, %s3151_s6  ;;  %v1801_v57 = vsel %vm983_vm2, %v3518_v55, 0 }
 0xb5d   : > { %v1634_v41 = vpop.xlane.xlu0 %1633 }
 0xb5e   : > { %v1635_v42 = vmul.f32 0.03125, %v1634_v41 }
 0xb60   : > { %v1636_v43 = vadd.f32 1e-05, %v1635_v42  ;;  %v1664_v42 = vld [vmem:[%s3718_s16 + $0x4] sm:$0xf] }
 0xb62   : > { %3119 = vrsqrt.f32 %v1636_v43  ;;  %v2029_v43 = vsel %vm1049_vm4, %v1664_v42, 0 }
 0xb6c   : > { %v3120_v44 = vpop.eup %3119 }
 0xb6d   : > { %v1638_v45 = vmul.f32 %v3120_v44, %v1630_v33 }
 0xb6f   : > { %v1645_v47 = vmul.f32 %v2768_v21, %v1638_v45 }
 0xb71   : > { %v3508_v48 = vadd.f32 %v2769_v46, %v1645_v47  ;;  %v1663_v47 = vld [vmem:[%s3718_s16] sm:$0xf] }
 0xb72   : > { %v2075_v51 = vsel %vm1049_vm4, %v1663_v47, 0 }
 0xb73   : > { %v1670_v49 = vpack.c.bf16 %v3508_v48, %v3508_v48 }
 0xb75   : > { %2968 = vmatmul.mubr.msk.bf16.vlgmr.msra.gmra.mrb[28].mxu0 %vm878_vm1, %v1670_v49 }
 0xb76   : > { %2981 = vmatprep.mubr.msk.bf16.mxu0 %vm3150_vm0, %v3149_v1  ;;  %2980 = vmatpush3.bf16.xpose.msra.mxu0 %v1801_v57 }
 0xb77   : > { %2991 = vmatprep.subr.bf16.mxu0 %v3149_v1 }
 0xb86   : > { %v1916_v63 = vpop.permute.xlu0 %1915 }
 0xb87   : > { %v1921_v3 = vsel %vm983_vm2, %v1916_v63, 0 }
 0xc48   : > { %v1726_v59 = vpop.f32.mrb[28].mxu0 }
 0xc49   : > { %v1727_v60 = vadd.f32 %v2770_v58, %v1726_v59  ;;  %v2969_v61 = vpop.f32.mrb[29].mxu0 }
 0xc4a   : > { %v1729_v62 = vpop.f32.mrb[30].mxu0 }
 0xc4b   : > { %v1794_v0 = vmul.f32 0.17677669, %v1727_v60  ;;  %v2970_v26 = vpop.f32.mrb[31].mxu0 }
 0xc4d   : > { %v3528_v2 = vpack.c.bf16 %v1794_v0, %v1794_v0 }
 0xc4f   : > { %1913 = vrot.lane.b32.xlu0 %v3528_v2, %s3151_s6  ;;  %2982 = vmatmul.mubr.msk.bf16.vlgmr.msra.gmra.mrb[32].mxu0 %vm983_vm2, %v3528_v2  ;;  %s3763_s6 = smov 96  }
 0xc50   : > { %2992 = vmatpush3.bf16.xpose.msra.mxu0 %v1921_v3  ;;  %2993 = vmatprep.mubr.msk.bf16.mxu0 %vm3150_vm0, %v3149_v1 }
 0xc51   : > { %3003 = vmatprep.subr.bf16.mxu0 %v3149_v1 }
 0xcc1   : > { %v1914_v4 = vpop.permute.xlu0 %1913 }
 0xcc2   : > { %2994 = vmatmul.mubr.msk.bf16.vlgmr.msra.gmra.mrb[36].mxu0 %vm983_vm2, %v1914_v4 }
 0xcc3   : > { %3005 = vmatprep.mubr.msk.bf16.mxu0 %vm3150_vm0, %v3149_v1  ;;  %3004 = vmatpush3.bf16.msra.mxu0 %v2029_v43 }
 0xcc4   : > { %3015 = vmatprep.subr.bf16.mxu0 %v3149_v1 }
 0xd22   : > { %v1837_v12 = vpop.f32.mrb[32].mxu0 }
 0xd23   : > { %v1849_v13 = vsel %vm1848_vm6, -1e-10, %v1837_v12  ;;  %v2983_v14 = vpop.f32.mrb[33].mxu0 }
 0xd24   : > { %v1840_v15 = vpop.f32.mrb[34].mxu0  ;;  %v1850_v16 = vsel %vm983_vm2, %v1849_v13, -inf }
 0xd25   : > { %1851 = vmax.xlane.f32.xlu0 %v1850_v16  ;;  %v2984_v18 = vpop.f32.mrb[35].mxu0 }
 0xd3b   : > { %2119 = vrot.lane.b32.xlu0 %v3518_v55, %s3762_s3 }
 0xd95   : > { %v1957_v19 = vpop.f32.mrb[36].mxu0 }
 0xd96   : > { %v1963_v20 = vsel %vm1848_vm6, -1e-10, %v1957_v19  ;;  %v2995_v22 = vpop.f32.mrb[37].mxu0 }
 0xd97   : > { %v1960_v23 = vpop.f32.mrb[38].mxu0  ;;  %v1964_v24 = vsel %vm983_vm2, %v1963_v20, -inf }
 0xd98   : > { %1965 = vmax.xlane.f32.xlu1 %v1964_v24  ;;  %v2996_v25 = vpop.f32.mrb[39].mxu0 }
 0xda9   : > { %1863 = vrot.lane.b32.xlu1 %v3518_v55, %s3763_s6  ;;  %s3767_s6 = smov 72  }
 0xdb2   : > { %v1852_v27 = vpop.xlane.xlu0 %1851 }
 0xdb3   : > { %v1853_v28 = vsub.f32 %v1849_v13, %v1852_v27 }
 0xdb5   : > { %v1854_v29 = vmul.f32 1.442695, %v1853_v28 }
 0xdb6   : > { %v2120_v58 = vpop.permute.xlu0 %2119 }
 0xdb7   : > { %3121 = vpow2.f32 %v1854_v29  ;;  %v2125_v63 = vsel %vm983_vm2, %v2120_v58, 0 }
 0xdc1   : > { %v3122_v30 = vpop.eup %3121 }
 0xdc2   : > { %v1856_v31 = vsel %vm983_vm2, %v3122_v30, 0.0 }
 0xdcd   : > { %1857 = vadd.xlane.f32.xlu1 %v1856_v31 }
 0xe25   : > { %v1966_v32 = vpop.xlane.xlu1 %1965 }
 0xe26   : > { %v1967_v33 = vsub.f32 %v1963_v20, %v1966_v32 }
 0xe28   : > { %v1968_v34 = vmul.f32 1.442695, %v1967_v33 }
 0xe29   : > { %v1864_v35 = vpop.permute.xlu1 %1863 }
 0xe2a   : > { %3123 = vpow2.f32 %v1968_v34  ;;  %v1869_v36 = vsel %vm1049_vm4, %v1864_v35, 0  ;;  %v1665_v35 = vld [vmem:[%s3718_s16 + $0x8] sm:$0xf] }
 0xe2b   : > { %2986 = vmatpush3.bf16.msra.mxu1 %v1869_v36  ;;  %v2233_v36 = vsel %vm1049_vm4, %v1665_v35, 0 }
 0xe2c   : > { %2997 = vmatprep.subr.bf16.mxu1 %v3149_v1 }
 0xe34   : > { %v3124_v5 = vpop.eup %3123 }
 0xe35   : > { %v1970_v37 = vsel %vm983_vm2, %v3124_v5, 0.0 }
 0xe36   : > { %1971 = vadd.xlane.f32.xlu1 %v1970_v37 }
 0xe47   : > { %1976 = vrot.lane.b32.xlu1 %v3518_v55, %s3764_s5  ;;  %s834_s5 = scalar_lea.vmem %s3728_s26, %s3325_s10 }
 0xe4b   : > { %2117 = vrot.lane.b32.xlu1 %v3528_v2, %s3762_s3 }
 0xe5a   : > { %v1858_v38 = vpop.xlane.xlu1 %1857 }
 0xe5b   : > { %3125 = vrcp.f32 %v1858_v38 }
 0xe65   : > { %v3126_v39 = vpop.eup %3125 }
 0xe66   : > { %v1860_v40 = vmul.f32 %v3126_v39, %v3122_v30 }
 0xe68   : > { %v1861_v41 = vpack.c.bf16 %v1860_v40, %v1860_v40 }
 0xe6a   : > { %2988 = vmatmul.mubr.msk.bf16.vlgmr.msra.gmra.mrb[32].mxu1 %vm983_vm2, %v1861_v41 }
 0xe6b   : > { %2999 = vmatprep.mubr.msk.bf16.mxu1 %vm3150_vm0, %v3149_v1 }
 0xec3   : > { %v1972_v44 = vpop.xlane.xlu1 %1971 }
 0xec4   : > { %3127 = vrcp.f32 %v1972_v44 }
 0xec7   : > { %v1977_v21 = vpop.permute.xlu1 %1976 }
 0xec8   : > { %v1982_v45 = vsel %vm1049_vm4, %v1977_v21, 0 }
 0xec9   : > { %2998 = vmatpush3.bf16.msra.mxu1 %v1982_v45 }
 0xeca   : > { %3009 = vmatprep.subr.bf16.mxu1 %v3149_v1 }
 0xecb   : > { %v2118_v26 = vpop.permute.xlu1 %2117 }
 0xece   : > { %v3128_v46 = vpop.eup %3127 }
 0xecf   : > { %v1974_v49 = vmul.f32 %v3128_v46, %v3124_v5 }
 0xed1   : > { %v1975_v50 = vpack.c.bf16 %v1974_v49, %v1974_v49 }
 0xed3   : > { %3000 = vmatmul.mubr.msk.bf16.vlgmr.msra.gmra.mrb[36].mxu1 %vm983_vm2, %v1975_v50 }
 0xed4   : > { %3010 = vmatpush3.bf16.msra.mxu1 %v2075_v51  ;;  %3011 = vmatprep.mubr.msk.bf16.mxu1 %vm3150_vm0, %v3149_v1 }
 0xed5   : > { %3021 = vmatprep.subr.bf16.mxu1 %v3149_v1 }
 0xf3d   : > { %v1905_v52 = vpop.f32.mrb[32].mxu1 }
 0xf3e   : > { %v1911_v53 = vpack.c.bf16 %v1905_v52, %v1905_v52  ;;  %v2989_v54 = vpop.f32.mrb[33].mxu1 }
 0xf3f   : > { %v1908_v56 = vpop.f32.mrb[34].mxu1 }
 0xf40   : > { %v2990_v57 = vpop.f32.mrb[35].mxu1  ;;  %3012 = vmatmul.mubr.msk.bf16.vlgmr.msra.gmra.mrb[40].mxu1 %vm983_vm2, %v1911_v53  ;;  %v1666_v53 = vld [vmem:[%s3718_s16 + $0xc] sm:$0xf] }
 0xf41   : > { %3023 = vmatprep.mubr.msk.bf16.mxu1 %vm3150_vm0, %v3149_v1 }
 0xfa6   : > { %v2018_v59 = vpop.f32.mrb[36].mxu1 }
 0xfa7   : > { %v2024_v60 = vpack.c.bf16 %v2018_v59, %v2018_v59  ;;  %v3001_v61 = vpop.f32.mrb[37].mxu1 }
 0xfa8   : > { %v2021_v62 = vpop.f32.mrb[38].mxu1 }
 0xfa9   : > { %v3002_v0 = vpop.f32.mrb[39].mxu1  ;;  %3006 = vmatmul.mubr.msk.bf16.vlgmr.msra.gmra.mrb[40].mxu0 %vm983_vm2, %v2024_v60 }
 0xfaa   : > { %3016 = vmatpush3.bf16.xpose.msra.mxu0 %v2125_v63  ;;  %3017 = vmatprep.mubr.msk.bf16.mxu0 %vm3150_vm0, %v3149_v1 }
 0xfab   : > { %3027 = vmatprep.subr.bf16.mxu0 %v3149_v1 }
 0xfb1   : > { %3018 = vmatmul.mubr.msk.bf16.vlgmr.msra.gmra.mrb[44].mxu0 %vm983_vm2, %v2118_v26 }
 0xfb2   : > { %3029 = vmatprep.mubr.msk.bf16.mxu0 %vm3150_vm0, %v3149_v1  ;;  %3028 = vmatpush3.bf16.msra.mxu0 %v2233_v36  ;;  %v3101_v36 = vld [vmem:[%s3724_s22 + $0x10] sm:$0xff]  }
 0xfb3   : > { %3039 = vmatprep.subr.bf16.mxu0 %v3149_v1 }
0x1013   : > { %v2111_v3 = vpop.f32.mrb[40].mxu1 }
0x1014   : > { %v3013_v4 = vpop.f32.mrb[41].mxu1 }
0x1015   : > { %v2114_v6 = vpop.f32.mrb[42].mxu1 }
0x1016   : > { %v3014_v7 = vpop.f32.mrb[43].mxu1 }
0x1017   : > { %v2790_v7 = vld [vmem:[%s3719_s17] ss:$0 sm:$0xff] }
0x107c   : > { %v2065_v8 = vpop.f32.mrb[40].mxu0 }
0x107d   : > { %v3595_v9 = vadd.f32 %v2111_v3, %v2065_v8  ;;  %v3007_v10 = vpop.f32.mrb[41].mxu0 }
0x107e   : > { %v2068_v17 = vpop.f32.mrb[42].mxu0 }
0x107f   : > { %v3008_v12 = vpop.f32.mrb[43].mxu0 }
0x1084   : > { %v2161_v13 = vpop.f32.mrb[44].mxu0 }
0x1085   : > { %v2167_v14 = vsel %vm1848_vm6, -1e-10, %v2161_v13  ;;  %v3019_v15 = vpop.f32.mrb[45].mxu0 }
0x1086   : > { %v2164_v16 = vpop.f32.mrb[46].mxu0  ;;  %v2168_v18 = vsel %vm983_vm2, %v2167_v14, -inf }
0x1087   : > { %2169 = vmax.xlane.f32.xlu1 %v2168_v18  ;;  %v3020_v19 = vpop.f32.mrb[47].mxu0 }
0x1098   : > { %2180 = vrot.lane.b32.xlu1 %v3518_v55, %s3765_s30 }
0x109c   : > { %2276 = vrot.lane.b32.xlu1 %v3528_v2, %s3766_s4 }
0x1114   : > { %v2170_v20 = vpop.xlane.xlu1 %2169 }
0x1115   : > { %v2171_v22 = vsub.f32 %v2167_v14, %v2170_v20 }
0x1117   : > { %v2172_v23 = vmul.f32 1.442695, %v2171_v22 }
0x1118   : > { %v2181_v24 = vpop.permute.xlu1 %2180 }
0x1119   : > { %3129 = vpow2.f32 %v2172_v23  ;;  %v2186_v25 = vsel %vm1049_vm4, %v2181_v24, 0  ;;  %v3097_v23 = vld [vmem:[%s3722_s20] sm:$0xff]   ;;  %v3098_v24 = vld [vmem:[%s3722_s20 + $0x8] sm:$0xff]  }
0x111a   : > { %3022 = vmatpush3.bf16.msra.mxu1 %v2186_v25  ;;  %v3100_v25 = vld [vmem:[%s3724_s22 + $0x8] sm:$0xff]  }
0x111b   : > { %3033 = vmatprep.subr.bf16.mxu1 %v3149_v1 }
0x111c   : > { %v2277_v34 = vpop.permute.xlu1 %2276 }
0x1123   : > { %v3130_v27 = vpop.eup %3129 }
0x1124   : > { %v2174_v28 = vsel %vm983_vm2, %v3130_v27, 0.0 }
0x1125   : > { %2175 = vadd.xlane.f32.xlu0 %v2174_v28 }
0x113b   : > { %2278 = vrot.lane.b32.xlu0 %v3518_v55, %s3766_s4 }
0x11b2   : > { %v2176_v29 = vpop.xlane.xlu0 %2175 }
0x11b3   : > { %3131 = vrcp.f32 %v2176_v29 }
0x11b6   : > { %v2279_v31 = vpop.permute.xlu0 %2278 }
0x11b7   : > { %v2284_v33 = vsel %vm983_vm2, %v2279_v31, 0 }
0x11bd   : > { %v3132_v2 = vpop.eup %3131 }
0x11be   : > { %v2178_v30 = vmul.f32 %v3132_v2, %v3130_v27 }
0x11c0   : > { %v2179_v32 = vpack.c.bf16 %v2178_v30, %v2178_v30  ;;  %v2791_v30 = vld [vmem:[%s3720_s18] ss:$0 sm:$0xff] }
0x11c2   : > { %3024 = vmatmul.mubr.msk.bf16.vlgmr.msra.gmra.mrb[44].mxu1 %vm983_vm2, %v2179_v32  ;;  %v2792_v32 = vld [vmem:[%s3721_s19] ss:$0 sm:$0xff] }
0x11c3   : > { %3034 = vmatpush3.bf16.xpose.msra.mxu1 %v2284_v33  ;;  %3035 = vmatprep.mubr.msk.bf16.mxu1 %vm3150_vm0, %v3149_v1 }
0x11c4   : > { %3045 = vmatprep.subr.bf16.mxu1 %v3149_v1 }
0x11ca   : > { %3036 = vmatmul.mubr.msk.bf16.vlgmr.msra.gmra.mrb[48].mxu1 %vm983_vm2, %v2277_v34 }
0x11cb   : > { %3047 = vmatprep.mubr.msk.bf16.mxu1 %vm3150_vm0, %v3149_v1 }
0x1295   : > { %v2222_v5 = vpop.f32.mrb[44].mxu1 }
0x1296   : > { %v2228_v37 = vpack.c.bf16 %v2222_v5, %v2222_v5  ;;  %v3025_v38 = vpop.f32.mrb[45].mxu1  ;;  %v3102_v5 = vld [vmem:[%s3724_s22 + $0x18] sm:$0xff]  }
0x1297   : > { %v2225_v39 = vpop.f32.mrb[46].mxu1 }
0x1298   : > { %v3026_v40 = vpop.f32.mrb[47].mxu1  ;;  %3030 = vmatmul.mubr.msk.bf16.vlgmr.msra.gmra.mrb[48].mxu0 %vm983_vm2, %v2228_v37  ;;  %v2793_v37 = vld [vmem:[%s3723_s21] ss:$0 sm:$0xff] }
0x1299   : > { %3041 = vmatprep.mubr.msk.bf16.mxu0 %vm3150_vm0, %v3149_v1 }
0x129d   : > { %v2320_v41 = vpop.f32.mrb[48].mxu1 }
0x129e   : > { %v2326_v42 = vsel %vm1848_vm6, -1e-10, %v2320_v41  ;;  %v3037_v43 = vpop.f32.mrb[49].mxu1 }
0x129f   : > { %v2323_v44 = vpop.f32.mrb[50].mxu1  ;;  %v2327_v21 = vsel %vm983_vm2, %v2326_v42, -inf }
0x12a0   : > { %2328 = vmax.xlane.f32.xlu1 %v2327_v21  ;;  %v3038_v45 = vpop.f32.mrb[51].mxu1 }
0x12b1   : > { %2339 = vrot.lane.b32.xlu1 %v3518_v55, %s3767_s6  ;;  %v2392_v55 = vsel %vm1049_vm4, %v1666_v53, 0 }
0x12b2   : > { %3046 = vmatpush3.bf16.msra.mxu1 %v2392_v55 }
0x12b3   : > { %3059 = vmatprep.subr.bf16.mxu1 %v3149_v1 }
0x132d   : > { %v2329_v46 = vpop.xlane.xlu1 %2328 }
0x132e   : > { %v2330_v47 = vsub.f32 %v2326_v42, %v2329_v46 }
0x1330   : > { %v2331_v49 = vmul.f32 1.442695, %v2330_v47 }
0x1331   : > { %v2340_v50 = vpop.permute.xlu1 %2339 }
0x1332   : > { %3133 = vpow2.f32 %v2331_v49  ;;  %v2345_v51 = vsel %vm1049_vm4, %v2340_v50, 0 }
0x1333   : > { %3040 = vmatpush3.bf16.msra.mxu0 %v2345_v51 }
0x1334   : > { %3051 = vmatprep.subr.bf16.mxu0 %v3149_v1 }
0x133c   : > { %v3134_v11 = vpop.eup %3133 }
0x133d   : > { %v2333_v52 = vsel %vm983_vm2, %v3134_v11, 0.0 }
0x133e   : > { %2334 = vadd.xlane.f32.xlu0 %v2333_v52 }
0x136b   : > { %v2269_v54 = vpop.f32.mrb[48].mxu0 }
0x136c   : > { %v2275_v56 = vadd.f32 %v2269_v54, %v3595_v9  ;;  %v3031_v57 = vpop.f32.mrb[49].mxu0 }
0x136d   : > { %v2272_v58 = vpop.f32.mrb[50].mxu0 }
0x136e   : > { %v3032_v59 = vpop.f32.mrb[51].mxu0 }
0x136f   : > { %v2803_v59 = vld [vmem:[%s3726_s24] ss:$0 sm:$0xff] }
0x13cb   : > { %v2335_v60 = vpop.xlane.xlu0 %2334 }
0x13cc   : > { %3135 = vrcp.f32 %v2335_v60 }
0x13d6   : > { %v3136_v61 = vpop.eup %3135 }
0x13d7   : > { %v2337_v62 = vmul.f32 %v3136_v61, %v3134_v11  ;;  %v2804_v61 = vld [vmem:[%s3727_s25] ss:$0 sm:$0xff] }
0x13d9   : > { %v2338_v63 = vpack.c.bf16 %v2337_v62, %v2337_v62 }
0x13db   : > { %3042 = vmatmul.mubr.msk.bf16.vlgmr.msra.gmra.mrb[52].mxu0 %vm983_vm2, %v2338_v63 }
0x13dc   : > { %3055 = vmatprep.mubr.msk.bf16.mxu0 %vm3150_vm0, %v3149_v1  ;;  %3052 = vmatpush3.bf16.msra.mxu0 %v3097_v23 }
0x13dd   : > { %3053 = vmatprep.subr.bf16.mxu0 %v3149_v1 }
0x13e0   : > { %3054 = vmatpush3.bf16.msra.mxu0 %v3098_v24 }
0x14ae   : > { %v2381_v0 = vpop.f32.mrb[52].mxu0 }
0x14af   : > { %v2387_v26 = vpack.c.bf16 %v2381_v0, %v2381_v0  ;;  %v3043_v3 = vpop.f32.mrb[53].mxu0 }
0x14b0   : > { %v2384_v4 = vpop.f32.mrb[54].mxu0 }
0x14b1   : > { %v3044_v6 = vpop.f32.mrb[55].mxu0  ;;  %3048 = vmatmul.mubr.msk.bf16.vlgmr.msra.gmra.mrb[52].mxu1 %vm983_vm2, %v2387_v26 }
0x14b2   : > { %3067 = vmatprep.mubr.msk.bf16.mxu1 %vm3150_vm0, %v3149_v1 }
0x1584   : > { %v2428_v8 = vpop.f32.mrb[52].mxu1 }
0x1585   : > { %v2434_v9 = vadd.f32 %v2428_v8, %v2275_v56  ;;  %v3049_v10 = vpop.f32.mrb[53].mxu1 }
0x1586   : > { %v2431_v17 = vpop.f32.mrb[54].mxu1 }
0x1587   : > { %v2441_v12 = vadd.f32 %v2790_v7, %v2434_v9  ;;  %v3050_v13 = vpop.f32.mrb[55].mxu1 }
0x1589   : > { %v2442_v14 = vadd.f32 %v2441_v12, %v3508_v48  ;;  %v3099_v48 = vld [vmem:[%s3724_s22] sm:$0xff]  }
0x158a   : > { %3060 = vmatpush3.bf16.msra.mxu1 %v3099_v48 }
0x158b   : > { %v2443_v15 = vsel %vm878_vm1, %v2442_v14, 0.0  ;;  %3061 = vmatprep.subr.bf16.mxu1 %v3149_v1 }
0x158c   : > { %2444 = vadd.xlane.f32.xlu0 %v2443_v15 }
0x158e   : > { %3062 = vmatpush3.bf16.msra.mxu1 %v3100_v25 }
0x158f   : > { %3063 = vmatprep.subr.bf16.mxu1 %v3149_v1 }
0x1592   : > { %3064 = vmatpush3.bf16.msra.mxu1 %v3101_v36 }
0x1593   : > { %3065 = vmatprep.subr.bf16.mxu1 %v3149_v1  ;;  %v2797_v1 = vld [vmem:[%s3725_s23] ss:$0 sm:$0xff] }
0x1596   : > { %3066 = vmatpush3.bf16.msra.mxu1 %v3102_v5 }
0x1619   : > { %v2445_v16 = vpop.xlane.xlu0 %2444 }
0x161a   : > { %v2446_v18 = vmul.f32 0.03125, %v2445_v16 }
0x161c   : > { %v2447_v19 = vsub.f32 %v2442_v14, %v2446_v18 }
0x161e   : > { %v2448_v20 = vmul.f32 %v2447_v19, %v2447_v19 }
0x1620   : > { %v2449_v22 = vsel %vm878_vm1, %v2448_v20, 0.0 }
0x1621   : > { %2450 = vadd.xlane.f32.xlu0 %v2449_v22 }
0x16ae   : > { %v2451_v27 = vpop.xlane.xlu0 %2450 }
0x16af   : > { %v2452_v28 = vmul.f32 0.03125, %v2451_v27 }
0x16b1   : > { %v2453_v29 = vadd.f32 1e-05, %v2452_v28 }
0x16b3   : > { %3137 = vrsqrt.f32 %v2453_v29 }
0x16bd   : > { %v3138_v2 = vpop.eup %3137 }
0x16be   : > { %v2455_v31 = vmul.f32 %v3138_v2, %v2447_v19 }
0x16c0   : > { %v2462_v33 = vmul.f32 %v2791_v30, %v2455_v31 }
0x16c2   : > { %v2469_v34 = vadd.f32 %v2792_v32, %v2462_v33 }
0x16c4   : > { %v2486_v35 = vpack.c.bf16 %v2469_v34, %v2469_v34 }
0x16c6   : > { %3056 = vmatmul.mubr.msk.bf16.vlgmr.msra.gmra.mrb[56].mxu0 %vm878_vm1, %v2486_v35 }
0x1799   : > { %v2542_v38 = vpop.f32.mrb[56].mxu0 }
0x179a   : > { %v2543_v39 = vadd.f32 %v2793_v37, %v2542_v38  ;;  %v3057_v40 = vpop.f32.mrb[57].mxu0 }
0x179b   : > { %v2545_v41 = vpop.f32.mrb[58].mxu0 }
0x179c   : > { %v2548_v42 = vmax.f32 %v2543_v39, 0.0  ;;  %v3058_v43 = vpop.f32.mrb[59].mxu0 }
0x179e   : > { %v2549_v44 = vpack.c.bf16 %v2548_v42, %v2548_v42 }
0x17a0   : > { %3068 = vmatmul.mubr.msk.bf16.vlgmr.msra.gmra.mrb[56].mxu1 %vm2580_vm7, %v2549_v44 }
0x1873   : > { %v2618_v21 = vpop.f32.mrb[56].mxu1 }
0x1874   : > { %v2619_v45 = vadd.f32 %v2797_v1, %v2618_v21  ;;  %v3069_v46 = vpop.f32.mrb[57].mxu1 }
0x1875   : > { %v2621_v47 = vpop.f32.mrb[58].mxu1 }
0x1876   : > { %v3070_v49 = vpop.f32.mrb[59].mxu1  ;;  %v2624_v50 = vsel %vm878_vm1, %v2619_v45, 0.0 }
0x1877   : > { %2625 = vadd.xlane.f32.xlu0 %v2624_v50 }
0x1904   : > { %v2626_v51 = vpop.xlane.xlu0 %2625 }
0x1905   : > { %v2627_v11 = vmul.f32 0.03125, %v2626_v51 }
0x1907   : > { %v2628_v52 = vsub.f32 %v2619_v45, %v2627_v11 }
0x1909   : > { %v2629_v53 = vmul.f32 %v2628_v52, %v2628_v52 }
0x190b   : > { %v2630_v55 = vsel %vm878_vm1, %v2629_v53, 0.0 }
0x190c   : > { %2631 = vadd.xlane.f32.xlu1 %v2630_v55 }
0x1999   : > { %v2632_v54 = vpop.xlane.xlu1 %2631 }
0x199a   : > { %v2633_v56 = vmul.f32 0.03125, %v2632_v54 }
0x199c   : > { %v2634_v57 = vadd.f32 1e-05, %v2633_v56 }
0x199e   : > { %3139 = vrsqrt.f32 %v2634_v57 }
0x19a8   : > { %v3140_v58 = vpop.eup %3139 }
0x19a9   : > { %v2636_v60 = vmul.f32 %v3140_v58, %v2628_v52 }
0x19ab   : > { %v2643_v62 = vmul.f32 %v2803_v59, %v2636_v60 }
0x19ad   : > { %v2650_v63 = vadd.f32 %v2804_v61, %v2643_v62 }
0x19af   : > { %2651 = vst.msk [vmem:[%s834_s5] sm:$0xff] %vm878_vm1, %v2650_v63 }
0x19b0 PF: > { %s36_s27 = sadd.s32 1, %s3147_s27  }
0x19b1   : > { %p33_p4 = scmp.ge.s32.totalorder %s36_s27, 4  }
0x19b3   :  { %35 = sbr.rel (!%p33_p4) target bundleno = 12 (0xc), region = 163 }

</bundles_post_ra>
